<compile_context>
chip_gen: v6e
topology: v6e:2x2x1
jax: 0.10.0
libtpu: 0.0.40
codegen_flags: <defaults>
</compile_context>

<pallas_src>
from functools import partial

import jax
import jax.numpy as jnp
from jax.experimental import pallas as pl
from jax.experimental.pallas import tpu as pltpu

# Keep reference and in-kernel matmuls at full f32 accuracy so tolerances hold.
jax.config.update("jax_default_matmul_precision", "highest")

PACK_W = 128  # lane width of the packed parameter buffer and packed output


# ---------------------------------------------------------------------------
# Packed-parameter layout (shared by pack_params and the kernel)
# ---------------------------------------------------------------------------
def _param_layout(H, K):
    def align8(n):
        return ((n + 7) // 8) * 8

    off = {}
    r = 0
    for name, nrows in (("wih", H), ("whh", H), ("w3", H), ("w4", H),
                        ("w128t", H), ("w128b", H), ("w64", 2 * K)):
        off[name] = r
        r += align8(nrows)
    for name in ("bih_fold", "b_hn", "b3", "b4", "wb",
                 "b128", "b64", "wo", "bbo"):
        off[name] = r
        r += 1
    return off, align8(r)


def pack_params(p, H, K):
    """Pack all small weights/biases into one lane-dense (rows, 128) buffer."""
    assert 3 * H <= PACK_W and 2 * K <= PACK_W
    off, total = _param_layout(H, K)
    buf = jnp.zeros((total, PACK_W), jnp.float32)

    def put(buf, name, arr):
        arr = jnp.asarray(arr, jnp.float32)
        return buf.at[off[name]:off[name] + arr.shape[0], :arr.shape[1]].set(arr)

    # fold b_hr / b_hz into the hoisted input-side bias (b_hn must stay in-loop)
    bih_fold = p["bih"] + jnp.concatenate(
        [p["bhh"][:, :2 * H], jnp.zeros((1, H), jnp.float32)], axis=1)

    buf = put(buf, "wih", p["wih_t"])                 # (H, 3H)
    buf = put(buf, "whh", p["whh_t"])                 # (H, 3H)
    buf = put(buf, "w3", p["w3_t"])                   # (H, H)
    buf = put(buf, "w4", p["w4_t"])                   # (H, H)
    buf = put(buf, "w128t", p["w128_t"][:H])          # (H, 2K) acts on sum(outputs)
    buf = put(buf, "w128b", p["w128_t"][H:])          # (H, 2K) acts on elm product
    buf = put(buf, "w64", p["w64_t"])                 # (2K, K)
    buf = put(buf, "bih_fold", bih_fold)              # (1, 3H)
    buf = put(buf, "b_hn", p["bhh"][:, 2 * H:])       # (1, H)
    buf = put(buf, "b3", p["b3"])
    buf = put(buf, "b4", p["b4"])
    buf = put(buf, "wb", p["wb_t"].reshape(1, H))     # linear_beta weight as a row
    buf = put(buf, "b128", p["b128"])
    buf = put(buf, "b64", p["b64"])
    buf = put(buf, "wo", p["wo_t"].reshape(1, K))     # out_ weight as a row
    buf = put(buf, "bbo", jnp.concatenate([p["bb"], p["bo"]], axis=1))  # (1, 2)
    return buf


# ---------------------------------------------------------------------------
# Kernel
# ---------------------------------------------------------------------------
def _make_kernel(H, K, seq, TB, off):
    H2, H3, K2 = 2 * H, 3 * H, 2 * K

    def kernel(item_idx_ref, user_idx_ref,          # scalar-prefetch (SMEM)
               params_ref, item_emb_ref, user_emb_ref, x_ref,   # VMEM inputs
               out_ref,                              # VMEM output (TB, 128)
               gx_scr, outs_scr):                    # VMEM scratch
        blk = pl.program_id(0)

        # ---- static slices of the single packed parameter buffer ----
        wih = params_ref[off["wih"]:off["wih"] + H, :H3]
        whh = params_ref[off["whh"]:off["whh"] + H, :H3]
        w3 = params_ref[off["w3"]:off["w3"] + H, :H]
        w4 = params_ref[off["w4"]:off["w4"] + H, :H]
        w128t = params_ref[off["w128t"]:off["w128t"] + H, :K2]
        w128b = params_ref[off["w128b"]:off["w128b"] + H, :K2]
        w64 = params_ref[off["w64"]:off["w64"] + K2, :K]
        bih_f = params_ref[off["bih_fold"]:off["bih_fold"] + 1, :H3]
        b_hn = params_ref[off["b_hn"]:off["b_hn"] + 1, :H]
        b3 = params_ref[off["b3"]:off["b3"] + 1, :H]
        b4 = params_ref[off["b4"]:off["b4"] + 1, :H]
        wb = params_ref[off["wb"]:off["wb"] + 1, :H]
        b128 = params_ref[off["b128"]:off["b128"] + 1, :K2]
        b64 = params_ref[off["b64"]:off["b64"] + 1, :K]
        wo = params_ref[off["wo"]:off["wo"] + 1, :K]
        bbo = params_ref[off["bbo"]:off["bbo"] + 1, :2]
        bb = bbo[:, 0:1]
        bo = bbo[:, 1:2]

        # ---- in-kernel embedding gather: elm[b] = item_emb[it_b] * user_emb[us_b] ----
        rows = []
        for j in range(TB):
            b = blk * TB + j
            it = item_idx_ref[b]
            us = user_idx_ref[b]
            rows.append(item_emb_ref[pl.ds(it, 1), :] * user_emb_ref[pl.ds(us, 1), :])
        elm = jnp.concatenate(rows, axis=0)                       # (TB, H)

        # ---- hoisted input-side GRU matmul: one (seq*TB, H) @ (H, 3H) ----
        x_flat = jnp.concatenate([x_ref[t] for t in range(seq)], axis=0)   # seq-major
        gx_scr[...] = jnp.dot(x_flat, wih,
                              preferred_element_type=jnp.float32) + bih_f

        # ---- fully-unrolled GRU recurrence over seq; TB instances per pass ----
        b_hn_b = jnp.broadcast_to(b_hn, (TB, H))     # hoist broadcast out of the loop
        h = jnp.zeros((TB, H), jnp.float32)
        out_sum = jnp.zeros((TB, H), jnp.float32)
        for t in range(seq):
            g = gx_scr[t * TB:(t + 1) * TB, :]                    # (TB, 3H)
            gh = jnp.dot(h, whh, preferred_element_type=jnp.float32)
            rz = jax.nn.sigmoid(g[:, :H2] + gh[:, :H2])           # r,z in one EUP pass
            r = rz[:, :H]
            z = rz[:, H:]
            n = jnp.tanh(g[:, H2:] + r * (gh[:, H2:] + b_hn_b))
            h = (1.0 - z) * n + z * h
            outs_scr[t * TB:(t + 1) * TB, :] = h
            out_sum = out_sum + h                                 # plain sum over seq

        outs = outs_scr[...]                                      # (seq*TB, H)

        # ---- attention: relu(linear3(outputs) + linear4(elm)), linear_beta, softmax ----
        l3 = jnp.dot(outs, w3, preferred_element_type=jnp.float32) + b3
        l4 = jnp.dot(elm, w4, preferred_element_type=jnp.float32) + b4
        xact = jnp.maximum(l3 + jnp.concatenate([l4] * seq, axis=0), 0.0)
        ws_col = jnp.sum(xact * wb, axis=-1, keepdims=True) + bb  # (seq*TB, 1)
        ws = jnp.concatenate(
            [ws_col[t * TB:(t + 1) * TB, :] for t in range(seq)], axis=1)  # (TB, seq)
        m = jnp.max(ws, axis=-1, keepdims=True)
        e = jnp.exp(ws - m)
        attn = e * pl.reciprocal(jnp.sum(e, axis=-1, keepdims=True), approx=True)

        # NOTE: as in the PyTorch code, the attention-weighted sum is immediately
        # overwritten by the plain sum over outputs, so only out_sum feeds the MLP.
        h128 = (jnp.dot(out_sum, w128t, preferred_element_type=jnp.float32)
                + jnp.dot(elm, w128b, preferred_element_type=jnp.float32) + b128)
        h64 = jnp.dot(h128, w64, preferred_element_type=jnp.float32) + b64
        ho = jnp.sum(h64 * wo, axis=-1, keepdims=True) + bo       # (TB, 1)
        sig = jax.nn.sigmoid(ho)

        # ---- single unmasked lane-dense store: [hidden | attn | sigmoid | pad] ----
        pad = jnp.zeros((TB, PACK_W - H - seq - 1), jnp.float32)
        out_ref[...] = jnp.concatenate([h, attn, sig, pad], axis=1)

    return kernel


# ---------------------------------------------------------------------------
# Wrapper
# ---------------------------------------------------------------------------
@partial(jax.jit, static_argnames=("latentK",))
def hann_forward(intra_outputs, item_index, user_index,
                 packed_params, item_emb, user_emb, *, latentK):
    """Batched HANN forward.

    intra_outputs: (seq, B, H) f32 (seq-first GRU layout; B=1 matches the module)
    item_index / user_index: (B,) int32
    Returns (sigmoid (B,), current_hidden (1, B, H), inter_attn (seq, B, 1)).
    """
    seq, B, H = intra_outputs.shape
    K = latentK
    assert 3 * H <= PACK_W and 2 * K <= PACK_W
    assert H + seq + 1 <= PACK_W

    # Largest batch tile <= 8 sublanes that divides B.
    TB = max(d for d in range(1, min(B, 8) + 1) if B % d == 0)
    n_blocks = B // TB

    off, total_rows = _param_layout(H, K)
    assert packed_params.shape == (total_rows, PACK_W)

    kernel = _make_kernel(H, K, seq, TB, off)

    grid_spec = pltpu.PrefetchScalarGridSpec(
        num_scalar_prefetch=2,
        grid=(n_blocks,),
        in_specs=[
            # Constant index maps -> blocks stay resident across grid steps.
            pl.BlockSpec((total_rows, PACK_W), lambda i, it, us: (0, 0)),
            pl.BlockSpec(item_emb.shape, lambda i, it, us: (0, 0)),
            pl.BlockSpec(user_emb.shape, lambda i, it, us: (0, 0)),
            pl.BlockSpec((seq, TB, H), lambda i, it, us: (0, i, 0)),
        ],
        out_specs=pl.BlockSpec((TB, PACK_W), lambda i, it, us: (i, 0)),
        scratch_shapes=[
            pltpu.VMEM((seq * TB, 3 * H), jnp.float32),   # hoisted gate pre-activations
            pltpu.VMEM((seq * TB, H), jnp.float32),       # GRU outputs
        ],
    )

    packed_out = pl.pallas_call(
        kernel,
        out_shape=jax.ShapeDtypeStruct((B, PACK_W), jnp.float32),
        grid_spec=grid_spec,
        compiler_params=pltpu.CompilerParams(
            dimension_semantics=("parallel",)),   # shards batch blocks on v7x's 2 TCs
    )(item_index.astype(jnp.int32), user_index.astype(jnp.int32),
      packed_params, item_emb, user_emb, intra_outputs)

    hidden = packed_out[:, :H]                      # (B, H) final GRU hidden
    attn = packed_out[:, H:H + seq]                 # (B, seq)
    sig = packed_out[:, H + seq]                    # (B,)
    current_hidden = hidden[None, :, :]             # (n_layers=1, B, H)
    inter_attn_score = jnp.transpose(attn)[:, :, None]   # (seq, B, 1)
    return sig, current_hidden, inter_attn_score


# ---------------------------------------------------------------------------
# Pure-JAX reference (matches the PyTorch forward exactly; per instance)
# ---------------------------------------------------------------------------
@jax.jit
def hann_reference(intra_outputs, item_index, user_index, p):
    seq, _, H = intra_outputs.shape
    x = intra_outputs[:, 0, :]
    elm = p["item_emb"][item_index] * p["user_emb"][user_index]
    h = jnp.zeros((1, H), jnp.float32)
    outs = []
    for t in range(seq):
        gx = x[t:t + 1] @ p["wih_t"] + p["bih"]
        gh = h @ p["whh_t"] + p["bhh"]
        r = jax.nn.sigmoid(gx[:, :H] + gh[:, :H])
        z = jax.nn.sigmoid(gx[:, H:2 * H] + gh[:, H:2 * H])
        n = jnp.tanh(gx[:, 2 * H:] + r * gh[:, 2 * H:])
        h = (1.0 - z) * n + z * h
        outs.append(h)
    outputs = jnp.concatenate(outs, axis=0)
    xact = jax.nn.relu(outputs @ p["w3_t"] + p["b3"] + elm @ p["w4_t"] + p["b4"])
    ws = xact @ p["wb_t"] + p["bb"]
    attn = jax.nn.softmax(ws, axis=0)
    out_sum = jnp.sum(outputs, axis=0, keepdims=True)
    cat = jnp.concatenate([out_sum, elm], axis=1)
    o = cat @ p["w128_t"] + p["b128"]
    o = o @ p["w64_t"] + p["b64"]
    o = o @ p["wo_t"] + p["bo"]
    return jax.nn.sigmoid(o).reshape(1), h.reshape(1, 1, H), attn.reshape(seq, 1, 1)


def init_params(key, H, K, num_items, num_users):
    ks = jax.random.split(key, 20)
    s = 0.1

    def w(k, shape):
        return jax.random.normal(k, shape, jnp.float32) * s

    return {
        "item_emb": w(ks[0], (num_items, H)),
        "user_emb": w(ks[1], (num_users, H)),
        # GRU (PyTorch weight_ih_l0: (3H, H) in (r, z, n) order) -> pre-transposed
        "wih_t": w(ks[2], (3 * H, H)).T,
        "whh_t": w(ks[3], (3 * H, H)).T,
        "bih": w(ks[4], (3 * H,)).reshape(1, 3 * H),
        "bhh": w(ks[5], (3 * H,)).reshape(1, 3 * H),
        "w3_t": w(ks[6], (H, H)).T,
        "b3": w(ks[7], (H,)).reshape(1, H),
        "w4_t": w(ks[8], (H, H)).T,
        "b4": w(ks[9], (H,)).reshape(1, H),
        "wb_t": w(ks[10], (1, H)).T,
        "bb": w(ks[11], (1,)).reshape(1, 1),
        "w128_t": w(ks[12], (2 * K, 2 * H)).T,
        "b128": w(ks[13], (2 * K,)).reshape(1, 2 * K),
        "w64_t": w(ks[14], (K, 2 * K)).T,
        "b64": w(ks[15], (K,)).reshape(1, K),
        "wo_t": w(ks[16], (1, K)).T,
        "bo": w(ks[17], (1,)).reshape(1, 1),
    }


if __name__ == "__main__":
    H = 32          # hidden_size
    K = 64          # latentK
    SEQ = 8         # number of inter reviews (sequence length)
    B = 16          # batched instances per pallas_call (grid = B // 8 = 2, parallel)
    NUM_ITEMS = 10
    NUM_USERS = 10

    key = jax.random.PRNGKey(0)
    k_in, k_par, k_it, k_us = jax.random.split(key, 4)
    params = init_params(k_par, H, K, NUM_ITEMS, NUM_USERS)
    packed_params = pack_params(params, H, K)

    intra_outputs = jax.random.normal(k_in, (SEQ, B, H), jnp.float32)
    item_index = jax.random.randint(k_it, (B,), 0, NUM_ITEMS, dtype=jnp.int32)
    user_index = jax.random.randint(k_us, (B,), 0, NUM_USERS, dtype=jnp.int32)

    sig, hid, attn = hann_forward(intra_outputs, item_index, user_index,
                                  packed_params, params["item_emb"],
                                  params["user_emb"], latentK=K)
    jax.block_until_ready((sig, hid, attn))

    assert sig.shape == (B,)
    assert hid.shape == (1, B, H)
    assert attn.shape == (SEQ, B, 1)

    for b in range(B):
        r_sig, r_hid, r_attn = hann_reference(
            intra_outputs[:, b:b + 1, :], item_index[b:b + 1],
            user_index[b:b + 1], params)
        assert jnp.allclose(sig[b:b + 1], r_sig, rtol=1e-4, atol=1e-5)
        assert jnp.allclose(hid[:, b], r_hid[:, 0], rtol=1e-4, atol=1e-5)
        # attn compared slightly looser: softmax denom uses approx EUP reciprocal
        assert jnp.allclose(attn[:, b, 0], r_attn[:, 0, 0], rtol=2e-3, atol=1e-5)

    print("KERNEL_OK")
</pallas_src>

<mosaic_0001>
module attributes {stable_mosaic.version = 11 : i64} {
  func.func @kernel(%arg0: i32, %arg1: memref<16xi32, #tpu.memory_space<smem>>, %arg2: memref<16xi32, #tpu.memory_space<smem>>, %arg3: memref<336x128xf32, #tpu.memory_space<vmem>>, %arg4: memref<10x32xf32, #tpu.memory_space<vmem>>, %arg5: memref<10x32xf32, #tpu.memory_space<vmem>>, %arg6: memref<8x8x32xf32, #tpu.memory_space<vmem>>, %arg7: memref<8x128xf32, #tpu.memory_space<vmem>>, %arg8: memref<64x96xf32, #tpu.memory_space<vmem>>, %arg9: memref<64x32xf32, #tpu.memory_space<vmem>>) attributes {dimension_semantics = [#tpu.dimension_semantics<parallel>], iteration_bounds = array<i64: 2>, scalar_prefetch = 2 : i64, scratch_operands = 2 : i64, tpu.core_type = #tpu.core_type<tc>, window_params = [{pipeline_mode = #tpu.pipeline_mode<synchronous>, transform_indices = @transform_0, window_bounds = array<i64: 336, 128>}, {pipeline_mode = #tpu.pipeline_mode<synchronous>, transform_indices = @transform_1, window_bounds = array<i64: 10, 32>}, {pipeline_mode = #tpu.pipeline_mode<synchronous>, transform_indices = @transform_2, window_bounds = array<i64: 10, 32>}, {transform_indices = @transform_3, window_bounds = array<i64: 8, 8, 32>}, {transform_indices = @transform_4, window_bounds = array<i64: 8, 128>}]} {
    %c0 = arith.constant 0 : index
    %c0_0 = arith.constant 0 : index
    %0 = vector.load %arg3[%c0, %c0_0] : memref<336x128xf32, #tpu.memory_space<vmem>>, vector<32x96xf32>
    %c32 = arith.constant 32 : index
    %c0_1 = arith.constant 0 : index
    %1 = vector.load %arg3[%c32, %c0_1] : memref<336x128xf32, #tpu.memory_space<vmem>>, vector<32x96xf32>
    %c64 = arith.constant 64 : index
    %c0_2 = arith.constant 0 : index
    %2 = vector.load %arg3[%c64, %c0_2] : memref<336x128xf32, #tpu.memory_space<vmem>>, vector<32x32xf32>
    %c96 = arith.constant 96 : index
    %c0_3 = arith.constant 0 : index
    %3 = vector.load %arg3[%c96, %c0_3] : memref<336x128xf32, #tpu.memory_space<vmem>>, vector<32x32xf32>
    %c128 = arith.constant 128 : index
    %c0_4 = arith.constant 0 : index
    %4 = vector.load %arg3[%c128, %c0_4] : memref<336x128xf32, #tpu.memory_space<vmem>>, vector<32x128xf32>
    %c160 = arith.constant 160 : index
    %c0_5 = arith.constant 0 : index
    %5 = vector.load %arg3[%c160, %c0_5] : memref<336x128xf32, #tpu.memory_space<vmem>>, vector<32x128xf32>
    %c192 = arith.constant 192 : index
    %c0_6 = arith.constant 0 : index
    %6 = vector.load %arg3[%c192, %c0_6] : memref<336x128xf32, #tpu.memory_space<vmem>>, vector<128x64xf32>
    %c320 = arith.constant 320 : index
    %c0_7 = arith.constant 0 : index
    %7 = vector.load %arg3[%c320, %c0_7] : memref<336x128xf32, #tpu.memory_space<vmem>>, vector<1x96xf32>
    %c321 = arith.constant 321 : index
    %c0_8 = arith.constant 0 : index
    %8 = vector.load %arg3[%c321, %c0_8] : memref<336x128xf32, #tpu.memory_space<vmem>>, vector<1x32xf32>
    %c322 = arith.constant 322 : index
    %c0_9 = arith.constant 0 : index
    %9 = vector.load %arg3[%c322, %c0_9] : memref<336x128xf32, #tpu.memory_space<vmem>>, vector<1x32xf32>
    %c323 = arith.constant 323 : index
    %c0_10 = arith.constant 0 : index
    %10 = vector.load %arg3[%c323, %c0_10] : memref<336x128xf32, #tpu.memory_space<vmem>>, vector<1x32xf32>
    %c324 = arith.constant 324 : index
    %c0_11 = arith.constant 0 : index
    %11 = vector.load %arg3[%c324, %c0_11] : memref<336x128xf32, #tpu.memory_space<vmem>>, vector<1x32xf32>
    %c325 = arith.constant 325 : index
    %c0_12 = arith.constant 0 : index
    %12 = vector.load %arg3[%c325, %c0_12] : memref<336x128xf32, #tpu.memory_space<vmem>>, vector<1x128xf32>
    %c326 = arith.constant 326 : index
    %c0_13 = arith.constant 0 : index
    %13 = vector.load %arg3[%c326, %c0_13] : memref<336x128xf32, #tpu.memory_space<vmem>>, vector<1x64xf32>
    %c327 = arith.constant 327 : index
    %c0_14 = arith.constant 0 : index
    %14 = vector.load %arg3[%c327, %c0_14] : memref<336x128xf32, #tpu.memory_space<vmem>>, vector<1x64xf32>
    %c328 = arith.constant 328 : index
    %c0_15 = arith.constant 0 : index
    %15 = vector.load %arg3[%c328, %c0_15] : memref<336x128xf32, #tpu.memory_space<vmem>>, vector<1x2xf32>
    %16 = vector.extract_strided_slice %15 {offsets = [0, 0], sizes = [1, 1], strides = [1, 1]} : vector<1x2xf32> to vector<1x1xf32>
    %17 = vector.extract_strided_slice %15 {offsets = [0, 1], sizes = [1, 1], strides = [1, 1]} : vector<1x2xf32> to vector<1x1xf32>
    %c8_i32 = arith.constant 8 : i32
    %18 = arith.muli %arg0, %c8_i32 : i32
    %c0_i32 = arith.constant 0 : i32
    %19 = arith.addi %18, %c0_i32 : i32
    %20 = arith.index_cast %19 : i32 to index
    %21 = memref.load %arg1[%20] : memref<16xi32, #tpu.memory_space<smem>>
    %22 = arith.index_cast %19 : i32 to index
    %23 = memref.load %arg2[%22] : memref<16xi32, #tpu.memory_space<smem>>
    %24 = arith.index_cast %21 : i32 to index
    %c0_16 = arith.constant 0 : index
    %25 = vector.load %arg4[%24, %c0_16] : memref<10x32xf32, #tpu.memory_space<vmem>>, vector<1x32xf32>
    %26 = arith.index_cast %23 : i32 to index
    %c0_17 = arith.constant 0 : index
    %27 = vector.load %arg5[%26, %c0_17] : memref<10x32xf32, #tpu.memory_space<vmem>>, vector<1x32xf32>
    %28 = arith.mulf %25, %27 : vector<1x32xf32>
    %c8_i32_18 = arith.constant 8 : i32
    %29 = arith.muli %arg0, %c8_i32_18 : i32
    %c1_i32 = arith.constant 1 : i32
    %30 = arith.addi %29, %c1_i32 : i32
    %31 = arith.index_cast %30 : i32 to index
    %32 = memref.load %arg1[%31] : memref<16xi32, #tpu.memory_space<smem>>
    %33 = arith.index_cast %30 : i32 to index
    %34 = memref.load %arg2[%33] : memref<16xi32, #tpu.memory_space<smem>>
    %35 = arith.index_cast %32 : i32 to index
    %c0_19 = arith.constant 0 : index
    %36 = vector.load %arg4[%35, %c0_19] : memref<10x32xf32, #tpu.memory_space<vmem>>, vector<1x32xf32>
    %37 = arith.index_cast %34 : i32 to index
    %c0_20 = arith.constant 0 : index
    %38 = vector.load %arg5[%37, %c0_20] : memref<10x32xf32, #tpu.memory_space<vmem>>, vector<1x32xf32>
    %39 = arith.mulf %36, %38 : vector<1x32xf32>
    %c8_i32_21 = arith.constant 8 : i32
    %40 = arith.muli %arg0, %c8_i32_21 : i32
    %c2_i32 = arith.constant 2 : i32
    %41 = arith.addi %40, %c2_i32 : i32
    %42 = arith.index_cast %41 : i32 to index
    %43 = memref.load %arg1[%42] : memref<16xi32, #tpu.memory_space<smem>>
    %44 = arith.index_cast %41 : i32 to index
    %45 = memref.load %arg2[%44] : memref<16xi32, #tpu.memory_space<smem>>
    %46 = arith.index_cast %43 : i32 to index
    %c0_22 = arith.constant 0 : index
    %47 = vector.load %arg4[%46, %c0_22] : memref<10x32xf32, #tpu.memory_space<vmem>>, vector<1x32xf32>
    %48 = arith.index_cast %45 : i32 to index
    %c0_23 = arith.constant 0 : index
    %49 = vector.load %arg5[%48, %c0_23] : memref<10x32xf32, #tpu.memory_space<vmem>>, vector<1x32xf32>
    %50 = arith.mulf %47, %49 : vector<1x32xf32>
    %c8_i32_24 = arith.constant 8 : i32
    %51 = arith.muli %arg0, %c8_i32_24 : i32
    %c3_i32 = arith.constant 3 : i32
    %52 = arith.addi %51, %c3_i32 : i32
    %53 = arith.index_cast %52 : i32 to index
    %54 = memref.load %arg1[%53] : memref<16xi32, #tpu.memory_space<smem>>
    %55 = arith.index_cast %52 : i32 to index
    %56 = memref.load %arg2[%55] : memref<16xi32, #tpu.memory_space<smem>>
    %57 = arith.index_cast %54 : i32 to index
    %c0_25 = arith.constant 0 : index
    %58 = vector.load %arg4[%57, %c0_25] : memref<10x32xf32, #tpu.memory_space<vmem>>, vector<1x32xf32>
    %59 = arith.index_cast %56 : i32 to index
    %c0_26 = arith.constant 0 : index
    %60 = vector.load %arg5[%59, %c0_26] : memref<10x32xf32, #tpu.memory_space<vmem>>, vector<1x32xf32>
    %61 = arith.mulf %58, %60 : vector<1x32xf32>
    %c8_i32_27 = arith.constant 8 : i32
    %62 = arith.muli %arg0, %c8_i32_27 : i32
    %c4_i32 = arith.constant 4 : i32
    %63 = arith.addi %62, %c4_i32 : i32
    %64 = arith.index_cast %63 : i32 to index
    %65 = memref.load %arg1[%64] : memref<16xi32, #tpu.memory_space<smem>>
    %66 = arith.index_cast %63 : i32 to index
    %67 = memref.load %arg2[%66] : memref<16xi32, #tpu.memory_space<smem>>
    %68 = arith.index_cast %65 : i32 to index
    %c0_28 = arith.constant 0 : index
    %69 = vector.load %arg4[%68, %c0_28] : memref<10x32xf32, #tpu.memory_space<vmem>>, vector<1x32xf32>
    %70 = arith.index_cast %67 : i32 to index
    %c0_29 = arith.constant 0 : index
    %71 = vector.load %arg5[%70, %c0_29] : memref<10x32xf32, #tpu.memory_space<vmem>>, vector<1x32xf32>
    %72 = arith.mulf %69, %71 : vector<1x32xf32>
    %c8_i32_30 = arith.constant 8 : i32
    %73 = arith.muli %arg0, %c8_i32_30 : i32
    %c5_i32 = arith.constant 5 : i32
    %74 = arith.addi %73, %c5_i32 : i32
    %75 = arith.index_cast %74 : i32 to index
    %76 = memref.load %arg1[%75] : memref<16xi32, #tpu.memory_space<smem>>
    %77 = arith.index_cast %74 : i32 to index
    %78 = memref.load %arg2[%77] : memref<16xi32, #tpu.memory_space<smem>>
    %79 = arith.index_cast %76 : i32 to index
    %c0_31 = arith.constant 0 : index
    %80 = vector.load %arg4[%79, %c0_31] : memref<10x32xf32, #tpu.memory_space<vmem>>, vector<1x32xf32>
    %81 = arith.index_cast %78 : i32 to index
    %c0_32 = arith.constant 0 : index
    %82 = vector.load %arg5[%81, %c0_32] : memref<10x32xf32, #tpu.memory_space<vmem>>, vector<1x32xf32>
    %83 = arith.mulf %80, %82 : vector<1x32xf32>
    %c8_i32_33 = arith.constant 8 : i32
    %84 = arith.muli %arg0, %c8_i32_33 : i32
    %c6_i32 = arith.constant 6 : i32
    %85 = arith.addi %84, %c6_i32 : i32
    %86 = arith.index_cast %85 : i32 to index
    %87 = memref.load %arg1[%86] : memref<16xi32, #tpu.memory_space<smem>>
    %88 = arith.index_cast %85 : i32 to index
    %89 = memref.load %arg2[%88] : memref<16xi32, #tpu.memory_space<smem>>
    %90 = arith.index_cast %87 : i32 to index
    %c0_34 = arith.constant 0 : index
    %91 = vector.load %arg4[%90, %c0_34] : memref<10x32xf32, #tpu.memory_space<vmem>>, vector<1x32xf32>
    %92 = arith.index_cast %89 : i32 to index
    %c0_35 = arith.constant 0 : index
    %93 = vector.load %arg5[%92, %c0_35] : memref<10x32xf32, #tpu.memory_space<vmem>>, vector<1x32xf32>
    %94 = arith.mulf %91, %93 : vector<1x32xf32>
    %c8_i32_36 = arith.constant 8 : i32
    %95 = arith.muli %arg0, %c8_i32_36 : i32
    %c7_i32 = arith.constant 7 : i32
    %96 = arith.addi %95, %c7_i32 : i32
    %97 = arith.index_cast %96 : i32 to index
    %98 = memref.load %arg1[%97] : memref<16xi32, #tpu.memory_space<smem>>
    %99 = arith.index_cast %96 : i32 to index
    %100 = memref.load %arg2[%99] : memref<16xi32, #tpu.memory_space<smem>>
    %101 = arith.index_cast %98 : i32 to index
    %c0_37 = arith.constant 0 : index
    %102 = vector.load %arg4[%101, %c0_37] : memref<10x32xf32, #tpu.memory_space<vmem>>, vector<1x32xf32>
    %103 = arith.index_cast %100 : i32 to index
    %c0_38 = arith.constant 0 : index
    %104 = vector.load %arg5[%103, %c0_38] : memref<10x32xf32, #tpu.memory_space<vmem>>, vector<1x32xf32>
    %105 = arith.mulf %102, %104 : vector<1x32xf32>
    %106 = tpu.concatenate %28, %39, %50, %61, %72, %83, %94, %105 in 0 : vector<1x32xf32>, vector<1x32xf32>, vector<1x32xf32>, vector<1x32xf32>, vector<1x32xf32>, vector<1x32xf32>, vector<1x32xf32>, vector<1x32xf32> -> vector<8x32xf32>
    %c0_39 = arith.constant 0 : index
    %c0_40 = arith.constant 0 : index
    %c0_41 = arith.constant 0 : index
    %107 = vector.load %arg6[%c0_39, %c0_40, %c0_41] : memref<8x8x32xf32, #tpu.memory_space<vmem>>, vector<1x8x32xf32>
    %108 = vector.shape_cast %107 : vector<1x8x32xf32> to vector<8x32xf32>
    %c1 = arith.constant 1 : index
    %c0_42 = arith.constant 0 : index
    %c0_43 = arith.constant 0 : index
    %109 = vector.load %arg6[%c1, %c0_42, %c0_43] : memref<8x8x32xf32, #tpu.memory_space<vmem>>, vector<1x8x32xf32>
    %110 = vector.shape_cast %109 : vector<1x8x32xf32> to vector<8x32xf32>
    %c2 = arith.constant 2 : index
    %c0_44 = arith.constant 0 : index
    %c0_45 = arith.constant 0 : index
    %111 = vector.load %arg6[%c2, %c0_44, %c0_45] : memref<8x8x32xf32, #tpu.memory_space<vmem>>, vector<1x8x32xf32>
    %112 = vector.shape_cast %111 : vector<1x8x32xf32> to vector<8x32xf32>
    %c3 = arith.constant 3 : index
    %c0_46 = arith.constant 0 : index
    %c0_47 = arith.constant 0 : index
    %113 = vector.load %arg6[%c3, %c0_46, %c0_47] : memref<8x8x32xf32, #tpu.memory_space<vmem>>, vector<1x8x32xf32>
    %114 = vector.shape_cast %113 : vector<1x8x32xf32> to vector<8x32xf32>
    %c4 = arith.constant 4 : index
    %c0_48 = arith.constant 0 : index
    %c0_49 = arith.constant 0 : index
    %115 = vector.load %arg6[%c4, %c0_48, %c0_49] : memref<8x8x32xf32, #tpu.memory_space<vmem>>, vector<1x8x32xf32>
    %116 = vector.shape_cast %115 : vector<1x8x32xf32> to vector<8x32xf32>
    %c5 = arith.constant 5 : index
    %c0_50 = arith.constant 0 : index
    %c0_51 = arith.constant 0 : index
    %117 = vector.load %arg6[%c5, %c0_50, %c0_51] : memref<8x8x32xf32, #tpu.memory_space<vmem>>, vector<1x8x32xf32>
    %118 = vector.shape_cast %117 : vector<1x8x32xf32> to vector<8x32xf32>
    %c6 = arith.constant 6 : index
    %c0_52 = arith.constant 0 : index
    %c0_53 = arith.constant 0 : index
    %119 = vector.load %arg6[%c6, %c0_52, %c0_53] : memref<8x8x32xf32, #tpu.memory_space<vmem>>, vector<1x8x32xf32>
    %120 = vector.shape_cast %119 : vector<1x8x32xf32> to vector<8x32xf32>
    %c7 = arith.constant 7 : index
    %c0_54 = arith.constant 0 : index
    %c0_55 = arith.constant 0 : index
    %121 = vector.load %arg6[%c7, %c0_54, %c0_55] : memref<8x8x32xf32, #tpu.memory_space<vmem>>, vector<1x8x32xf32>
    %122 = vector.shape_cast %121 : vector<1x8x32xf32> to vector<8x32xf32>
    %123 = tpu.concatenate %108, %110, %112, %114, %116, %118, %120, %122 in 0 : vector<8x32xf32>, vector<8x32xf32>, vector<8x32xf32>, vector<8x32xf32>, vector<8x32xf32>, vector<8x32xf32>, vector<8x32xf32>, vector<8x32xf32> -> vector<64x32xf32>
    %cst = arith.constant dense<0.000000e+00> : vector<64x96xf32>
    %124 = tpu.matmul %123, %0, %cst {dimension_numbers = #tpu.dot_dimension_numbers<[1], [0], [0], [1], [0, 0, 1, 1], [], []>, precision = #tpu.contract_precision<fp32>} : vector<64x32xf32>, vector<32x96xf32>, vector<64x96xf32> -> vector<64x96xf32>
    %125 = vector.broadcast %7 : vector<1x96xf32> to vector<64x96xf32>
    %126 = arith.addf %124, %125 : vector<64x96xf32>
    %c0_56 = arith.constant 0 : index
    %c0_57 = arith.constant 0 : index
    %127 = vector.load %arg8[%c0_56, %c0_57] : memref<64x96xf32, #tpu.memory_space<vmem>>, vector<64x96xf32>
    tpu.vector_store %arg8[%c0_56, %c0_57], %126 {strides = array<i32>} : memref<64x96xf32, #tpu.memory_space<vmem>>, vector<64x96xf32>,
    %128 = vector.shape_cast %8 : vector<1x32xf32> to vector<1x32xf32>
    %129 = vector.broadcast %128 : vector<1x32xf32> to vector<8x32xf32>
    %cst_58 = arith.constant 0.000000e+00 : f32
    %130 = vector.broadcast %cst_58 : f32 to vector<8x32xf32>
    %cst_59 = arith.constant 0.000000e+00 : f32
    %131 = vector.broadcast %cst_59 : f32 to vector<8x32xf32>
    %c0_60 = arith.constant 0 : index
    %c0_61 = arith.constant 0 : index
    %132 = vector.load %arg8[%c0_60, %c0_61] : memref<64x96xf32, #tpu.memory_space<vmem>>, vector<8x96xf32>
    %cst_62 = arith.constant dense<0.000000e+00> : vector<8x96xf32>
    %133 = tpu.matmul %130, %1, %cst_62 {dimension_numbers = #tpu.dot_dimension_numbers<[1], [0], [0], [1], [0, 0, 1, 1], [], []>, precision = #tpu.contract_precision<fp32>} : vector<8x32xf32>, vector<32x96xf32>, vector<8x96xf32> -> vector<8x96xf32>
    %134 = vector.extract_strided_slice %132 {offsets = [0, 0], sizes = [8, 64], strides = [1, 1]} : vector<8x96xf32> to vector<8x64xf32>
    %135 = vector.extract_strided_slice %133 {offsets = [0, 0], sizes = [8, 64], strides = [1, 1]} : vector<8x96xf32> to vector<8x64xf32>
    %136 = arith.addf %134, %135 : vector<8x64xf32>
    %137 = arith.negf %136 : vector<8x64xf32>
    %138 = math.exp %137 : vector<8x64xf32>
    %cst_63 = arith.constant 1.000000e+00 : f32
    %139 = vector.broadcast %cst_63 : f32 to vector<8x64xf32>
    %140 = arith.addf %139, %138 : vector<8x64xf32>
    %141 = arith.divf %139, %140 : vector<8x64xf32>
    %142 = vector.extract_strided_slice %141 {offsets = [0, 0], sizes = [8, 32], strides = [1, 1]} : vector<8x64xf32> to vector<8x32xf32>
    %143 = vector.extract_strided_slice %141 {offsets = [0, 32], sizes = [8, 32], strides = [1, 1]} : vector<8x64xf32> to vector<8x32xf32>
    %144 = vector.extract_strided_slice %132 {offsets = [0, 64], sizes = [8, 32], strides = [1, 1]} : vector<8x96xf32> to vector<8x32xf32>
    %145 = vector.extract_strided_slice %133 {offsets = [0, 64], sizes = [8, 32], strides = [1, 1]} : vector<8x96xf32> to vector<8x32xf32>
    %146 = arith.addf %145, %129 : vector<8x32xf32>
    %147 = arith.mulf %142, %146 : vector<8x32xf32>
    %148 = arith.addf %144, %147 : vector<8x32xf32>
    %149 = math.tanh %148 : vector<8x32xf32>
    %cst_64 = arith.constant 1.000000e+00 : f32
    %150 = vector.broadcast %cst_64 : f32 to vector<8x32xf32>
    %151 = arith.subf %150, %143 : vector<8x32xf32>
    %152 = arith.mulf %151, %149 : vector<8x32xf32>
    %153 = arith.mulf %143, %130 : vector<8x32xf32>
    %154 = arith.addf %152, %153 : vector<8x32xf32>
    %c0_65 = arith.constant 0 : index
    %c0_66 = arith.constant 0 : index
    %155 = vector.load %arg9[%c0_65, %c0_66] : memref<64x32xf32, #tpu.memory_space<vmem>>, vector<8x32xf32>
    tpu.vector_store %arg9[%c0_65, %c0_66], %154 {strides = array<i32>} : memref<64x32xf32, #tpu.memory_space<vmem>>, vector<8x32xf32>,
    %156 = arith.addf %131, %154 : vector<8x32xf32>
    %c8 = arith.constant 8 : index
    %c0_67 = arith.constant 0 : index
    %157 = vector.load %arg8[%c8, %c0_67] : memref<64x96xf32, #tpu.memory_space<vmem>>, vector<8x96xf32>
    %cst_68 = arith.constant dense<0.000000e+00> : vector<8x96xf32>
    %158 = tpu.matmul %154, %1, %cst_68 {dimension_numbers = #tpu.dot_dimension_numbers<[1], [0], [0], [1], [0, 0, 1, 1], [], []>, precision = #tpu.contract_precision<fp32>} : vector<8x32xf32>, vector<32x96xf32>, vector<8x96xf32> -> vector<8x96xf32>
    %159 = vector.extract_strided_slice %157 {offsets = [0, 0], sizes = [8, 64], strides = [1, 1]} : vector<8x96xf32> to vector<8x64xf32>
    %160 = vector.extract_strided_slice %158 {offsets = [0, 0], sizes = [8, 64], strides = [1, 1]} : vector<8x96xf32> to vector<8x64xf32>
    %161 = arith.addf %159, %160 : vector<8x64xf32>
    %162 = arith.negf %161 : vector<8x64xf32>
    %163 = math.exp %162 : vector<8x64xf32>
    %cst_69 = arith.constant 1.000000e+00 : f32
    %164 = vector.broadcast %cst_69 : f32 to vector<8x64xf32>
    %165 = arith.addf %164, %163 : vector<8x64xf32>
    %166 = arith.divf %164, %165 : vector<8x64xf32>
    %167 = vector.extract_strided_slice %166 {offsets = [0, 0], sizes = [8, 32], strides = [1, 1]} : vector<8x64xf32> to vector<8x32xf32>
    %168 = vector.extract_strided_slice %166 {offsets = [0, 32], sizes = [8, 32], strides = [1, 1]} : vector<8x64xf32> to vector<8x32xf32>
    %169 = vector.extract_strided_slice %157 {offsets = [0, 64], sizes = [8, 32], strides = [1, 1]} : vector<8x96xf32> to vector<8x32xf32>
    %170 = vector.extract_strided_slice %158 {offsets = [0, 64], sizes = [8, 32], strides = [1, 1]} : vector<8x96xf32> to vector<8x32xf32>
    %171 = arith.addf %170, %129 : vector<8x32xf32>
    %172 = arith.mulf %167, %171 : vector<8x32xf32>
    %173 = arith.addf %169, %172 : vector<8x32xf32>
    %174 = math.tanh %173 : vector<8x32xf32>
    %cst_70 = arith.constant 1.000000e+00 : f32
    %175 = vector.broadcast %cst_70 : f32 to vector<8x32xf32>
    %176 = arith.subf %175, %168 : vector<8x32xf32>
    %177 = arith.mulf %176, %174 : vector<8x32xf32>
    %178 = arith.mulf %168, %154 : vector<8x32xf32>
    %179 = arith.addf %177, %178 : vector<8x32xf32>
    %c8_71 = arith.constant 8 : index
    %c0_72 = arith.constant 0 : index
    %180 = vector.load %arg9[%c8_71, %c0_72] : memref<64x32xf32, #tpu.memory_space<vmem>>, vector<8x32xf32>
    tpu.vector_store %arg9[%c8_71, %c0_72], %179 {strides = array<i32>} : memref<64x32xf32, #tpu.memory_space<vmem>>, vector<8x32xf32>,
    %181 = arith.addf %156, %179 : vector<8x32xf32>
    %c16 = arith.constant 16 : index
    %c0_73 = arith.constant 0 : index
    %182 = vector.load %arg8[%c16, %c0_73] : memref<64x96xf32, #tpu.memory_space<vmem>>, vector<8x96xf32>
    %cst_74 = arith.constant dense<0.000000e+00> : vector<8x96xf32>
    %183 = tpu.matmul %179, %1, %cst_74 {dimension_numbers = #tpu.dot_dimension_numbers<[1], [0], [0], [1], [0, 0, 1, 1], [], []>, precision = #tpu.contract_precision<fp32>} : vector<8x32xf32>, vector<32x96xf32>, vector<8x96xf32> -> vector<8x96xf32>
    %184 = vector.extract_strided_slice %182 {offsets = [0, 0], sizes = [8, 64], strides = [1, 1]} : vector<8x96xf32> to vector<8x64xf32>
    %185 = vector.extract_strided_slice %183 {offsets = [0, 0], sizes = [8, 64], strides = [1, 1]} : vector<8x96xf32> to vector<8x64xf32>
    %186 = arith.addf %184, %185 : vector<8x64xf32>
    %187 = arith.negf %186 : vector<8x64xf32>
    %188 = math.exp %187 : vector<8x64xf32>
    %cst_75 = arith.constant 1.000000e+00 : f32
    %189 = vector.broadcast %cst_75 : f32 to vector<8x64xf32>
    %190 = arith.addf %189, %188 : vector<8x64xf32>
    %191 = arith.divf %189, %190 : vector<8x64xf32>
    %192 = vector.extract_strided_slice %191 {offsets = [0, 0], sizes = [8, 32], strides = [1, 1]} : vector<8x64xf32> to vector<8x32xf32>
    %193 = vector.extract_strided_slice %191 {offsets = [0, 32], sizes = [8, 32], strides = [1, 1]} : vector<8x64xf32> to vector<8x32xf32>
    %194 = vector.extract_strided_slice %182 {offsets = [0, 64], sizes = [8, 32], strides = [1, 1]} : vector<8x96xf32> to vector<8x32xf32>
    %195 = vector.extract_strided_slice %183 {offsets = [0, 64], sizes = [8, 32], strides = [1, 1]} : vector<8x96xf32> to vector<8x32xf32>
    %196 = arith.addf %195, %129 : vector<8x32xf32>
    %197 = arith.mulf %192, %196 : vector<8x32xf32>
    %198 = arith.addf %194, %197 : vector<8x32xf32>
    %199 = math.tanh %198 : vector<8x32xf32>
    %cst_76 = arith.constant 1.000000e+00 : f32
    %200 = vector.broadcast %cst_76 : f32 to vector<8x32xf32>
    %201 = arith.subf %200, %193 : vector<8x32xf32>
    %202 = arith.mulf %201, %199 : vector<8x32xf32>
    %203 = arith.mulf %193, %179 : vector<8x32xf32>
    %204 = arith.addf %202, %203 : vector<8x32xf32>
    %c16_77 = arith.constant 16 : index
    %c0_78 = arith.constant 0 : index
    %205 = vector.load %arg9[%c16_77, %c0_78] : memref<64x32xf32, #tpu.memory_space<vmem>>, vector<8x32xf32>
    tpu.vector_store %arg9[%c16_77, %c0_78], %204 {strides = array<i32>} : memref<64x32xf32, #tpu.memory_space<vmem>>, vector<8x32xf32>,
    %206 = arith.addf %181, %204 : vector<8x32xf32>
    %c24 = arith.constant 24 : index
    %c0_79 = arith.constant 0 : index
    %207 = vector.load %arg8[%c24, %c0_79] : memref<64x96xf32, #tpu.memory_space<vmem>>, vector<8x96xf32>
    %cst_80 = arith.constant dense<0.000000e+00> : vector<8x96xf32>
    %208 = tpu.matmul %204, %1, %cst_80 {dimension_numbers = #tpu.dot_dimension_numbers<[1], [0], [0], [1], [0, 0, 1, 1], [], []>, precision = #tpu.contract_precision<fp32>} : vector<8x32xf32>, vector<32x96xf32>, vector<8x96xf32> -> vector<8x96xf32>
    %209 = vector.extract_strided_slice %207 {offsets = [0, 0], sizes = [8, 64], strides = [1, 1]} : vector<8x96xf32> to vector<8x64xf32>
    %210 = vector.extract_strided_slice %208 {offsets = [0, 0], sizes = [8, 64], strides = [1, 1]} : vector<8x96xf32> to vector<8x64xf32>
    %211 = arith.addf %209, %210 : vector<8x64xf32>
    %212 = arith.negf %211 : vector<8x64xf32>
    %213 = math.exp %212 : vector<8x64xf32>
    %cst_81 = arith.constant 1.000000e+00 : f32
    %214 = vector.broadcast %cst_81 : f32 to vector<8x64xf32>
    %215 = arith.addf %214, %213 : vector<8x64xf32>
    %216 = arith.divf %214, %215 : vector<8x64xf32>
    %217 = vector.extract_strided_slice %216 {offsets = [0, 0], sizes = [8, 32], strides = [1, 1]} : vector<8x64xf32> to vector<8x32xf32>
    %218 = vector.extract_strided_slice %216 {offsets = [0, 32], sizes = [8, 32], strides = [1, 1]} : vector<8x64xf32> to vector<8x32xf32>
    %219 = vector.extract_strided_slice %207 {offsets = [0, 64], sizes = [8, 32], strides = [1, 1]} : vector<8x96xf32> to vector<8x32xf32>
    %220 = vector.extract_strided_slice %208 {offsets = [0, 64], sizes = [8, 32], strides = [1, 1]} : vector<8x96xf32> to vector<8x32xf32>
    %221 = arith.addf %220, %129 : vector<8x32xf32>
    %222 = arith.mulf %217, %221 : vector<8x32xf32>
    %223 = arith.addf %219, %222 : vector<8x32xf32>
    %224 = math.tanh %223 : vector<8x32xf32>
    %cst_82 = arith.constant 1.000000e+00 : f32
    %225 = vector.broadcast %cst_82 : f32 to vector<8x32xf32>
    %226 = arith.subf %225, %218 : vector<8x32xf32>
    %227 = arith.mulf %226, %224 : vector<8x32xf32>
    %228 = arith.mulf %218, %204 : vector<8x32xf32>
    %229 = arith.addf %227, %228 : vector<8x32xf32>
    %c24_83 = arith.constant 24 : index
    %c0_84 = arith.constant 0 : index
    %230 = vector.load %arg9[%c24_83, %c0_84] : memref<64x32xf32, #tpu.memory_space<vmem>>, vector<8x32xf32>
    tpu.vector_store %arg9[%c24_83, %c0_84], %229 {strides = array<i32>} : memref<64x32xf32, #tpu.memory_space<vmem>>, vector<8x32xf32>,
    %231 = arith.addf %206, %229 : vector<8x32xf32>
    %c32_85 = arith.constant 32 : index
    %c0_86 = arith.constant 0 : index
    %232 = vector.load %arg8[%c32_85, %c0_86] : memref<64x96xf32, #tpu.memory_space<vmem>>, vector<8x96xf32>
    %cst_87 = arith.constant dense<0.000000e+00> : vector<8x96xf32>
    %233 = tpu.matmul %229, %1, %cst_87 {dimension_numbers = #tpu.dot_dimension_numbers<[1], [0], [0], [1], [0, 0, 1, 1], [], []>, precision = #tpu.contract_precision<fp32>} : vector<8x32xf32>, vector<32x96xf32>, vector<8x96xf32> -> vector<8x96xf32>
    %234 = vector.extract_strided_slice %232 {offsets = [0, 0], sizes = [8, 64], strides = [1, 1]} : vector<8x96xf32> to vector<8x64xf32>
    %235 = vector.extract_strided_slice %233 {offsets = [0, 0], sizes = [8, 64], strides = [1, 1]} : vector<8x96xf32> to vector<8x64xf32>
    %236 = arith.addf %234, %235 : vector<8x64xf32>
    %237 = arith.negf %236 : vector<8x64xf32>
    %238 = math.exp %237 : vector<8x64xf32>
    %cst_88 = arith.constant 1.000000e+00 : f32
    %239 = vector.broadcast %cst_88 : f32 to vector<8x64xf32>
    %240 = arith.addf %239, %238 : vector<8x64xf32>
    %241 = arith.divf %239, %240 : vector<8x64xf32>
    %242 = vector.extract_strided_slice %241 {offsets = [0, 0], sizes = [8, 32], strides = [1, 1]} : vector<8x64xf32> to vector<8x32xf32>
    %243 = vector.extract_strided_slice %241 {offsets = [0, 32], sizes = [8, 32], strides = [1, 1]} : vector<8x64xf32> to vector<8x32xf32>
    %244 = vector.extract_strided_slice %232 {offsets = [0, 64], sizes = [8, 32], strides = [1, 1]} : vector<8x96xf32> to vector<8x32xf32>
    %245 = vector.extract_strided_slice %233 {offsets = [0, 64], sizes = [8, 32], strides = [1, 1]} : vector<8x96xf32> to vector<8x32xf32>
    %246 = arith.addf %245, %129 : vector<8x32xf32>
    %247 = arith.mulf %242, %246 : vector<8x32xf32>
    %248 = arith.addf %244, %247 : vector<8x32xf32>
    %249 = math.tanh %248 : vector<8x32xf32>
    %cst_89 = arith.constant 1.000000e+00 : f32
    %250 = vector.broadcast %cst_89 : f32 to vector<8x32xf32>
    %251 = arith.subf %250, %243 : vector<8x32xf32>
    %252 = arith.mulf %251, %249 : vector<8x32xf32>
    %253 = arith.mulf %243, %229 : vector<8x32xf32>
    %254 = arith.addf %252, %253 : vector<8x32xf32>
    %c32_90 = arith.constant 32 : index
    %c0_91 = arith.constant 0 : index
    %255 = vector.load %arg9[%c32_90, %c0_91] : memref<64x32xf32, #tpu.memory_space<vmem>>, vector<8x32xf32>
    tpu.vector_store %arg9[%c32_90, %c0_91], %254 {strides = array<i32>} : memref<64x32xf32, #tpu.memory_space<vmem>>, vector<8x32xf32>,
    %256 = arith.addf %231, %254 : vector<8x32xf32>
    %c40 = arith.constant 40 : index
    %c0_92 = arith.constant 0 : index
    %257 = vector.load %arg8[%c40, %c0_92] : memref<64x96xf32, #tpu.memory_space<vmem>>, vector<8x96xf32>
    %cst_93 = arith.constant dense<0.000000e+00> : vector<8x96xf32>
    %258 = tpu.matmul %254, %1, %cst_93 {dimension_numbers = #tpu.dot_dimension_numbers<[1], [0], [0], [1], [0, 0, 1, 1], [], []>, precision = #tpu.contract_precision<fp32>} : vector<8x32xf32>, vector<32x96xf32>, vector<8x96xf32> -> vector<8x96xf32>
    %259 = vector.extract_strided_slice %257 {offsets = [0, 0], sizes = [8, 64], strides = [1, 1]} : vector<8x96xf32> to vector<8x64xf32>
    %260 = vector.extract_strided_slice %258 {offsets = [0, 0], sizes = [8, 64], strides = [1, 1]} : vector<8x96xf32> to vector<8x64xf32>
    %261 = arith.addf %259, %260 : vector<8x64xf32>
    %262 = arith.negf %261 : vector<8x64xf32>
    %263 = math.exp %262 : vector<8x64xf32>
    %cst_94 = arith.constant 1.000000e+00 : f32
    %264 = vector.broadcast %cst_94 : f32 to vector<8x64xf32>
    %265 = arith.addf %264, %263 : vector<8x64xf32>
    %266 = arith.divf %264, %265 : vector<8x64xf32>
    %267 = vector.extract_strided_slice %266 {offsets = [0, 0], sizes = [8, 32], strides = [1, 1]} : vector<8x64xf32> to vector<8x32xf32>
    %268 = vector.extract_strided_slice %266 {offsets = [0, 32], sizes = [8, 32], strides = [1, 1]} : vector<8x64xf32> to vector<8x32xf32>
    %269 = vector.extract_strided_slice %257 {offsets = [0, 64], sizes = [8, 32], strides = [1, 1]} : vector<8x96xf32> to vector<8x32xf32>
    %270 = vector.extract_strided_slice %258 {offsets = [0, 64], sizes = [8, 32], strides = [1, 1]} : vector<8x96xf32> to vector<8x32xf32>
    %271 = arith.addf %270, %129 : vector<8x32xf32>
    %272 = arith.mulf %267, %271 : vector<8x32xf32>
    %273 = arith.addf %269, %272 : vector<8x32xf32>
    %274 = math.tanh %273 : vector<8x32xf32>
    %cst_95 = arith.constant 1.000000e+00 : f32
    %275 = vector.broadcast %cst_95 : f32 to vector<8x32xf32>
    %276 = arith.subf %275, %268 : vector<8x32xf32>
    %277 = arith.mulf %276, %274 : vector<8x32xf32>
    %278 = arith.mulf %268, %254 : vector<8x32xf32>
    %279 = arith.addf %277, %278 : vector<8x32xf32>
    %c40_96 = arith.constant 40 : index
    %c0_97 = arith.constant 0 : index
    %280 = vector.load %arg9[%c40_96, %c0_97] : memref<64x32xf32, #tpu.memory_space<vmem>>, vector<8x32xf32>
    tpu.vector_store %arg9[%c40_96, %c0_97], %279 {strides = array<i32>} : memref<64x32xf32, #tpu.memory_space<vmem>>, vector<8x32xf32>,
    %281 = arith.addf %256, %279 : vector<8x32xf32>
    %c48 = arith.constant 48 : index
    %c0_98 = arith.constant 0 : index
    %282 = vector.load %arg8[%c48, %c0_98] : memref<64x96xf32, #tpu.memory_space<vmem>>, vector<8x96xf32>
    %cst_99 = arith.constant dense<0.000000e+00> : vector<8x96xf32>
    %283 = tpu.matmul %279, %1, %cst_99 {dimension_numbers = #tpu.dot_dimension_numbers<[1], [0], [0], [1], [0, 0, 1, 1], [], []>, precision = #tpu.contract_precision<fp32>} : vector<8x32xf32>, vector<32x96xf32>, vector<8x96xf32> -> vector<8x96xf32>
    %284 = vector.extract_strided_slice %282 {offsets = [0, 0], sizes = [8, 64], strides = [1, 1]} : vector<8x96xf32> to vector<8x64xf32>
    %285 = vector.extract_strided_slice %283 {offsets = [0, 0], sizes = [8, 64], strides = [1, 1]} : vector<8x96xf32> to vector<8x64xf32>
    %286 = arith.addf %284, %285 : vector<8x64xf32>
    %287 = arith.negf %286 : vector<8x64xf32>
    %288 = math.exp %287 : vector<8x64xf32>
    %cst_100 = arith.constant 1.000000e+00 : f32
    %289 = vector.broadcast %cst_100 : f32 to vector<8x64xf32>
    %290 = arith.addf %289, %288 : vector<8x64xf32>
    %291 = arith.divf %289, %290 : vector<8x64xf32>
    %292 = vector.extract_strided_slice %291 {offsets = [0, 0], sizes = [8, 32], strides = [1, 1]} : vector<8x64xf32> to vector<8x32xf32>
    %293 = vector.extract_strided_slice %291 {offsets = [0, 32], sizes = [8, 32], strides = [1, 1]} : vector<8x64xf32> to vector<8x32xf32>
    %294 = vector.extract_strided_slice %282 {offsets = [0, 64], sizes = [8, 32], strides = [1, 1]} : vector<8x96xf32> to vector<8x32xf32>
    %295 = vector.extract_strided_slice %283 {offsets = [0, 64], sizes = [8, 32], strides = [1, 1]} : vector<8x96xf32> to vector<8x32xf32>
    %296 = arith.addf %295, %129 : vector<8x32xf32>
    %297 = arith.mulf %292, %296 : vector<8x32xf32>
    %298 = arith.addf %294, %297 : vector<8x32xf32>
    %299 = math.tanh %298 : vector<8x32xf32>
    %cst_101 = arith.constant 1.000000e+00 : f32
    %300 = vector.broadcast %cst_101 : f32 to vector<8x32xf32>
    %301 = arith.subf %300, %293 : vector<8x32xf32>
    %302 = arith.mulf %301, %299 : vector<8x32xf32>
    %303 = arith.mulf %293, %279 : vector<8x32xf32>
    %304 = arith.addf %302, %303 : vector<8x32xf32>
    %c48_102 = arith.constant 48 : index
    %c0_103 = arith.constant 0 : index
    %305 = vector.load %arg9[%c48_102, %c0_103] : memref<64x32xf32, #tpu.memory_space<vmem>>, vector<8x32xf32>
    tpu.vector_store %arg9[%c48_102, %c0_103], %304 {strides = array<i32>} : memref<64x32xf32, #tpu.memory_space<vmem>>, vector<8x32xf32>,
    %306 = arith.addf %281, %304 : vector<8x32xf32>
    %c56 = arith.constant 56 : index
    %c0_104 = arith.constant 0 : index
    %307 = vector.load %arg8[%c56, %c0_104] : memref<64x96xf32, #tpu.memory_space<vmem>>, vector<8x96xf32>
    %cst_105 = arith.constant dense<0.000000e+00> : vector<8x96xf32>
    %308 = tpu.matmul %304, %1, %cst_105 {dimension_numbers = #tpu.dot_dimension_numbers<[1], [0], [0], [1], [0, 0, 1, 1], [], []>, precision = #tpu.contract_precision<fp32>} : vector<8x32xf32>, vector<32x96xf32>, vector<8x96xf32> -> vector<8x96xf32>
    %309 = vector.extract_strided_slice %307 {offsets = [0, 0], sizes = [8, 64], strides = [1, 1]} : vector<8x96xf32> to vector<8x64xf32>
    %310 = vector.extract_strided_slice %308 {offsets = [0, 0], sizes = [8, 64], strides = [1, 1]} : vector<8x96xf32> to vector<8x64xf32>
    %311 = arith.addf %309, %310 : vector<8x64xf32>
    %312 = arith.negf %311 : vector<8x64xf32>
    %313 = math.exp %312 : vector<8x64xf32>
    %cst_106 = arith.constant 1.000000e+00 : f32
    %314 = vector.broadcast %cst_106 : f32 to vector<8x64xf32>
    %315 = arith.addf %314, %313 : vector<8x64xf32>
    %316 = arith.divf %314, %315 : vector<8x64xf32>
    %317 = vector.extract_strided_slice %316 {offsets = [0, 0], sizes = [8, 32], strides = [1, 1]} : vector<8x64xf32> to vector<8x32xf32>
    %318 = vector.extract_strided_slice %316 {offsets = [0, 32], sizes = [8, 32], strides = [1, 1]} : vector<8x64xf32> to vector<8x32xf32>
    %319 = vector.extract_strided_slice %307 {offsets = [0, 64], sizes = [8, 32], strides = [1, 1]} : vector<8x96xf32> to vector<8x32xf32>
    %320 = vector.extract_strided_slice %308 {offsets = [0, 64], sizes = [8, 32], strides = [1, 1]} : vector<8x96xf32> to vector<8x32xf32>
    %321 = arith.addf %320, %129 : vector<8x32xf32>
    %322 = arith.mulf %317, %321 : vector<8x32xf32>
    %323 = arith.addf %319, %322 : vector<8x32xf32>
    %324 = math.tanh %323 : vector<8x32xf32>
    %cst_107 = arith.constant 1.000000e+00 : f32
    %325 = vector.broadcast %cst_107 : f32 to vector<8x32xf32>
    %326 = arith.subf %325, %318 : vector<8x32xf32>
    %327 = arith.mulf %326, %324 : vector<8x32xf32>
    %328 = arith.mulf %318, %304 : vector<8x32xf32>
    %329 = arith.addf %327, %328 : vector<8x32xf32>
    %c56_108 = arith.constant 56 : index
    %c0_109 = arith.constant 0 : index
    %330 = vector.load %arg9[%c56_108, %c0_109] : memref<64x32xf32, #tpu.memory_space<vmem>>, vector<8x32xf32>
    tpu.vector_store %arg9[%c56_108, %c0_109], %329 {strides = array<i32>} : memref<64x32xf32, #tpu.memory_space<vmem>>, vector<8x32xf32>,
    %331 = arith.addf %306, %329 : vector<8x32xf32>
    %c0_110 = arith.constant 0 : index
    %c0_111 = arith.constant 0 : index
    %332 = vector.load %arg9[%c0_110, %c0_111] : memref<64x32xf32, #tpu.memory_space<vmem>>, vector<64x32xf32>
    %cst_112 = arith.constant dense<0.000000e+00> : vector<64x32xf32>
    %333 = tpu.matmul %332, %2, %cst_112 {dimension_numbers = #tpu.dot_dimension_numbers<[1], [0], [0], [1], [0, 0, 1, 1], [], []>, precision = #tpu.contract_precision<fp32>} : vector<64x32xf32>, vector<32x32xf32>, vector<64x32xf32> -> vector<64x32xf32>
    %334 = vector.broadcast %9 : vector<1x32xf32> to vector<64x32xf32>
    %335 = arith.addf %333, %334 : vector<64x32xf32>
    %cst_113 = arith.constant dense<0.000000e+00> : vector<8x32xf32>
    %336 = tpu.matmul %106, %3, %cst_113 {dimension_numbers = #tpu.dot_dimension_numbers<[1], [0], [0], [1], [0, 0, 1, 1], [], []>, precision = #tpu.contract_precision<fp32>} : vector<8x32xf32>, vector<32x32xf32>, vector<8x32xf32> -> vector<8x32xf32>
    %337 = vector.broadcast %10 : vector<1x32xf32> to vector<8x32xf32>
    %338 = arith.addf %336, %337 : vector<8x32xf32>
    %339 = tpu.concatenate %338, %338, %338, %338, %338, %338, %338, %338 in 0 : vector<8x32xf32>, vector<8x32xf32>, vector<8x32xf32>, vector<8x32xf32>, vector<8x32xf32>, vector<8x32xf32>, vector<8x32xf32>, vector<8x32xf32> -> vector<64x32xf32>
    %340 = arith.addf %335, %339 : vector<64x32xf32>
    %cst_114 = arith.constant 0.000000e+00 : f32
    %341 = vector.broadcast %cst_114 : f32 to vector<64x32xf32>
    %342 = arith.maximumf %340, %341 : vector<64x32xf32>
    %343 = vector.broadcast %11 : vector<1x32xf32> to vector<64x32xf32>
    %344 = arith.mulf %342, %343 : vector<64x32xf32>
    %cst_115 = arith.constant dense<0.000000e+00> : vector<64xf32>
    %345 = vector.multi_reduction <add>, %344, %cst_115 [1] : vector<64x32xf32> to vector<64xf32>
    %346 = vector.shape_cast %345 : vector<64xf32> to vector<64x1xf32>
    %347 = vector.broadcast %16 : vector<1x1xf32> to vector<64x1xf32>
    %348 = arith.addf %346, %347 : vector<64x1xf32>
    %349 = vector.extract_strided_slice %348 {offsets = [0, 0], sizes = [8, 1], strides = [1, 1]} : vector<64x1xf32> to vector<8x1xf32>
    %350 = vector.extract_strided_slice %348 {offsets = [8, 0], sizes = [8, 1], strides = [1, 1]} : vector<64x1xf32> to vector<8x1xf32>
    %351 = vector.extract_strided_slice %348 {offsets = [16, 0], sizes = [8, 1], strides = [1, 1]} : vector<64x1xf32> to vector<8x1xf32>
    %352 = vector.extract_strided_slice %348 {offsets = [24, 0], sizes = [8, 1], strides = [1, 1]} : vector<64x1xf32> to vector<8x1xf32>
    %353 = vector.extract_strided_slice %348 {offsets = [32, 0], sizes = [8, 1], strides = [1, 1]} : vector<64x1xf32> to vector<8x1xf32>
    %354 = vector.extract_strided_slice %348 {offsets = [40, 0], sizes = [8, 1], strides = [1, 1]} : vector<64x1xf32> to vector<8x1xf32>
    %355 = vector.extract_strided_slice %348 {offsets = [48, 0], sizes = [8, 1], strides = [1, 1]} : vector<64x1xf32> to vector<8x1xf32>
    %356 = vector.extract_strided_slice %348 {offsets = [56, 0], sizes = [8, 1], strides = [1, 1]} : vector<64x1xf32> to vector<8x1xf32>
    %357 = tpu.concatenate %349, %350, %351, %352, %353, %354, %355, %356 in 1 : vector<8x1xf32>, vector<8x1xf32>, vector<8x1xf32>, vector<8x1xf32>, vector<8x1xf32>, vector<8x1xf32>, vector<8x1xf32>, vector<8x1xf32> -> vector<8x8xf32>
    %cst_116 = arith.constant dense<0xFF800000> : vector<8xf32>
    %358 = vector.multi_reduction <maximumf>, %357, %cst_116 [1] : vector<8x8xf32> to vector<8xf32>
    %359 = vector.shape_cast %358 : vector<8xf32> to vector<8x1xf32>
    %360 = vector.broadcast %359 : vector<8x1xf32> to vector<8x8xf32>
    %361 = arith.subf %357, %360 : vector<8x8xf32>
    %362 = math.exp %361 : vector<8x8xf32>
    %cst_117 = arith.constant dense<0.000000e+00> : vector<8xf32>
    %363 = vector.multi_reduction <add>, %362, %cst_117 [1] : vector<8x8xf32> to vector<8xf32>
    %364 = vector.shape_cast %363 : vector<8xf32> to vector<8x1xf32>
    %365 = tpu.reciprocal %364 {approx = true} : vector<8x1xf32> -> vector<8x1xf32>
    %366 = vector.broadcast %365 : vector<8x1xf32> to vector<8x8xf32>
    %367 = arith.mulf %362, %366 : vector<8x8xf32>
    %cst_118 = arith.constant dense<0.000000e+00> : vector<8x128xf32>
    %368 = tpu.matmul %331, %4, %cst_118 {dimension_numbers = #tpu.dot_dimension_numbers<[1], [0], [0], [1], [0, 0, 1, 1], [], []>, precision = #tpu.contract_precision<fp32>} : vector<8x32xf32>, vector<32x128xf32>, vector<8x128xf32> -> vector<8x128xf32>
    %cst_119 = arith.constant dense<0.000000e+00> : vector<8x128xf32>
    %369 = tpu.matmul %106, %5, %cst_119 {dimension_numbers = #tpu.dot_dimension_numbers<[1], [0], [0], [1], [0, 0, 1, 1], [], []>, precision = #tpu.contract_precision<fp32>} : vector<8x32xf32>, vector<32x128xf32>, vector<8x128xf32> -> vector<8x128xf32>
    %370 = arith.addf %368, %369 : vector<8x128xf32>
    %371 = vector.broadcast %12 : vector<1x128xf32> to vector<8x128xf32>
    %372 = arith.addf %370, %371 : vector<8x128xf32>
    %cst_120 = arith.constant dense<0.000000e+00> : vector<8x64xf32>
    %373 = tpu.matmul %372, %6, %cst_120 {dimension_numbers = #tpu.dot_dimension_numbers<[1], [0], [0], [1], [0, 0, 1, 1], [], []>, precision = #tpu.contract_precision<fp32>} : vector<8x128xf32>, vector<128x64xf32>, vector<8x64xf32> -> vector<8x64xf32>
    %374 = vector.broadcast %13 : vector<1x64xf32> to vector<8x64xf32>
    %375 = arith.addf %373, %374 : vector<8x64xf32>
    %376 = vector.broadcast %14 : vector<1x64xf32> to vector<8x64xf32>
    %377 = arith.mulf %375, %376 : vector<8x64xf32>
    %cst_121 = arith.constant dense<0.000000e+00> : vector<8xf32>
    %378 = vector.multi_reduction <add>, %377, %cst_121 [1] : vector<8x64xf32> to vector<8xf32>
    %379 = vector.shape_cast %378 : vector<8xf32> to vector<8x1xf32>
    %380 = vector.broadcast %17 : vector<1x1xf32> to vector<8x1xf32>
    %381 = arith.addf %379, %380 : vector<8x1xf32>
    %382 = arith.negf %381 : vector<8x1xf32>
    %383 = math.exp %382 : vector<8x1xf32>
    %cst_122 = arith.constant 1.000000e+00 : f32
    %384 = vector.broadcast %cst_122 : f32 to vector<8x1xf32>
    %385 = arith.addf %384, %383 : vector<8x1xf32>
    %386 = arith.divf %384, %385 : vector<8x1xf32>
    %cst_123 = arith.constant 0.000000e+00 : f32
    %387 = vector.broadcast %cst_123 : f32 to vector<8x87xf32>
    %388 = tpu.concatenate %329, %367, %386, %387 in 1 : vector<8x32xf32>, vector<8x8xf32>, vector<8x1xf32>, vector<8x87xf32> -> vector<8x128xf32>
    %c0_124 = arith.constant 0 : index
    %c0_125 = arith.constant 0 : index
    %389 = vector.load %arg7[%c0_124, %c0_125] : memref<8x128xf32, #tpu.memory_space<vmem>>, vector<8x128xf32>
    tpu.vector_store %arg7[%c0_124, %c0_125], %388 {strides = array<i32>} : memref<8x128xf32, #tpu.memory_space<vmem>>, vector<8x128xf32>,
    return
  }
  func.func @transform_0(%arg0: i32, %arg1: memref<16xi32, #tpu.memory_space<smem>>, %arg2: memref<16xi32, #tpu.memory_space<smem>>) -> (i32, i32) {
    %c0_i32 = arith.constant 0 : i32
    %c0_i32_0 = arith.constant 0 : i32
    %c0_i32_1 = arith.constant 0 : i32
    return %c0_i32, %c0_i32_0 : i32, i32
  }
  func.func @transform_1(%arg0: i32, %arg1: memref<16xi32, #tpu.memory_space<smem>>, %arg2: memref<16xi32, #tpu.memory_space<smem>>) -> (i32, i32) {
    %c0_i32 = arith.constant 0 : i32
    %c0_i32_0 = arith.constant 0 : i32
    %c0_i32_1 = arith.constant 0 : i32
    return %c0_i32, %c0_i32_0 : i32, i32
  }
  func.func @transform_2(%arg0: i32, %arg1: memref<16xi32, #tpu.memory_space<smem>>, %arg2: memref<16xi32, #tpu.memory_space<smem>>) -> (i32, i32) {
    %c0_i32 = arith.constant 0 : i32
    %c0_i32_0 = arith.constant 0 : i32
    %c0_i32_1 = arith.constant 0 : i32
    return %c0_i32, %c0_i32_0 : i32, i32
  }
  func.func @transform_3(%arg0: i32, %arg1: memref<16xi32, #tpu.memory_space<smem>>, %arg2: memref<16xi32, #tpu.memory_space<smem>>) -> (i32, i32, i32) {
    %c0_i32 = arith.constant 0 : i32
    %c0_i32_0 = arith.constant 0 : i32
    %c0_i32_1 = arith.constant 0 : i32
    return %c0_i32, %arg0, %c0_i32_0 : i32, i32, i32
  }
  func.func @transform_4(%arg0: i32, %arg1: memref<16xi32, #tpu.memory_space<smem>>, %arg2: memref<16xi32, #tpu.memory_space<smem>>) -> (i32, i32) {
    %c0_i32 = arith.constant 0 : i32
    %c0_i32_0 = arith.constant 0 : i32
    return %arg0, %c0_i32 : i32, i32
  }
}

</mosaic_0001>

<bundles_post_ra>
// kernel: hann_forward.1
= control target key start
LH: loop header
LB: loop body
LE: loop exit
PB: predicated region body
PF: predicated region fallthrough
CT: control target
= control target key end

     0   :  { %s12861_s0 = inlined_call_operand.vmem [shape: s32[16], index: 0, kind: input, shape index: {}]   ;;  %s12862_s2 = inlined_call_operand.hbm [shape: f32[336,128], index: 2, kind: input, shape index: {}]   ;;  %s12863_s3 = inlined_call_operand.hbm [shape: f32[10,32], index: 3, kind: input, shape index: {}]   ;;  %s12864_s4 = inlined_call_operand.hbm [shape: f32[10,32], index: 4, kind: input, shape index: {}]   ;;  %s12865_s5 = inlined_call_operand.hbm [shape: f32[8,16,32], index: 5, kind: input, shape index: {}]   ;;  %s12866_s6 = inlined_call_operand.vmem [shape: f32[16,128], index: 6, kind: output, shape index: {}]   ;;  %s12867_s1 = inlined_call_operand.vmem [shape: s32[16], index: 1, kind: input, shape index: {}]  }
   0x1   :  { %12959 = sst [smem:[#allocation52_spill]] %s12862_s2  ;;  %s11_s23 = sshll.u32 %s12861_s0, 4  ;;  %s12_s23 = int_to_ptr.vmem [resolvable:$true] %s11_s23 }
   0x2   :  { %12960 = sst [smem:[#allocation53_spill]] %s12863_s3  ;;  %s15_s26 = sshll.u32 %s12867_s1, 4  ;;  %s16_s26 = int_to_ptr.vmem [resolvable:$true] %s15_s26 }
   0x3   :  { %s10573_s27 = scalar_lea.vmem %s12_s23, 16  ;;  %p10578_p1 = scmp.lt.s32.totalorder %s12_s23, %s12_s23 }
   0x4   :  { %p10574_p0 = scmp.ne.s32.totalorder %s12_s23, %s10573_s27  ;;  %p10579_p2 = scmp.lt.s32.totalorder %s10573_s27, %s10573_s27 }
   0x6   :  { %p10580_p3 = por %p10579_p2, %p10578_p1 }
   0x8   :  { %p10581_p4 = pnand %p10580_p3, %p10574_p0 }
   0xa   :  { %10584 = shalt.err (!%p10581_p4)  }
   0xb   :  { %s10749_s28 = smov [#allocation5]   ;;  %s10585_s29 = scalar_lea.vmem %s16_s26, 16 }
   0xc   :  { %14 = dma.vmem_to_smem %s12_s23, 16, %s10749_s28, [#allocation4] }
   0xd   :  { %p10586_p5 = scmp.ne.s32.totalorder %s16_s26, %s10585_s29  ;;  %p10590_p6 = scmp.lt.s32.totalorder %s16_s26, %s16_s26 }
   0xe   :  { %p10591_p7 = scmp.lt.s32.totalorder %s10585_s29, %s10585_s29 }
  0x10   :  { %p10592_p8 = por %p10591_p7, %p10590_p6 }
  0x12   :  { %p10593_p9 = pnand %p10592_p8, %p10586_p5 }
  0x14   :  { %10596 = shalt.err (!%p10593_p9)  }
  0x15   :  { %s10750_s0 = smov [#allocation6]  }
  0x16   :  { %18 = dma.vmem_to_smem %s16_s26, 16, %s10750_s0, [#allocation4] }
  0x17   :  { %10719 = dma.done.wait [#allocation4], 32 }
  0x18   :  { %10720 = vsyncadd [#allocation4], 4294967264 }
  0x19   :  { %20 = sfence }
  0x1a   :  { %21 = vsyncpa [#allocation8], 0 }
  0x1b   :  { %22 = vsyncpa [#allocation10], 0 }
  0x1c   :  { %23 = vsyncpa [#allocation13], 0 }
  0x1d   :  { %25 = vsyncpa [#allocation13 + $0x1], 0  ;;  %s10812_s1 = smov 0   ;;  %s10814_s30 = smov 0  }
  0x1e   :  { %s10816_s7 = smov 0   ;;  %s10818_s8 = smov 0  }
  0x1f LB: > { %s10831_s9 = sadd.s32 4294967295, %s10747_s8   ;;  %s10834_s10 = sadd.s32 1, %s10747_s8   ;;  %s10747_s8 = sphi %s10818_s8, %s13066_s8   ;;  %s10743_s7 = sphi %s10816_s7, %s13065_s7   ;;  %s10739_s30 = sphi %s10814_s30, %s13064_s30   ;;  %s10735_s1 = sphi %s10812_s1, %s13063_s1  }
  0x20   : > { %s98_s11 = ssub.s32 %s10747_s8, %s10834_s10  ;;  %s101_s12 = sadd.s32 1, %s10743_s7 }
  0x21   : > { %p99_p10 = scmp.eq.s32.totalorder %s98_s11, 0  ;;  %p108_p11 = scmp.ne.s32.totalorder %s10743_s7, %s10739_s30 }
  0x22   : > { %p109_p12 = scmp.eq.s32.totalorder %s10747_s8, 0  ;;  %p114_p13 = scmp.ne.s32.totalorder %s10739_s30, %s10735_s1 }
  0x23   : > { %s10844_s13 = scalar_select %p99_p10, %s10743_s7, %s101_s12  }
  0x24   : > { %p110_p0 = por %p109_p12, %p108_p11  ;;  %p12868_p1 = scmp.eq.s32.totalorder %s10831_s9, 0 }
  0x25   : > { %p8635_p2 = scmp.ge.s32.totalorder %s10747_s8, 1  ;;  %p151_p3 = scmp.lt.s32.totalorder %s10747_s8, 3 }
  0x26   : > { %p10851_p4 = por %p12868_p1, %p114_p13  ;;  %s10751_s16 = smov [#allocation9]  }
  0x27   : > { %p10855_p5 = pnand %p8635_p2, %p151_p3  ;;  %s176_s17 = sshll.u32 %s10751_s16, 4  ;;  %s177_s17 = int_to_ptr.vmem [resolvable:$true] %s176_s17 }
  0x28   : > { %s12961_s14 = scalar_select %p10851_p4, 1, 0 }
  0x29   : > { %s12962_s15 = scalar_select %p10855_p5, 1, 0 }
  0x2a   : > { %p10442_p6 = pneg %p10855_p5  ;;  %p10459_p8 = scmp.lt.s32.totalorder %s10747_s8, 2 }
  0x2b   : > { %s10608_s20 = scalar_lea.vmem %s177_s17, 256  ;;  %p10616_p2 = scmp.lt.s32.totalorder %s177_s17, %s177_s17 }
  0x2c   : > { %p10863_p7 = pnand %p10442_p6, %p12868_p1  ;;  %p10868_p9 = pnand %p10459_p8, %p110_p0 }
  0x2d   : > { %p10609_p11 = scmp.ne.s32.totalorder %s177_s17, %s10608_s20  ;;  %p10617_p3 = scmp.lt.s32.totalorder %s10608_s20, %s10608_s20 }
  0x2e   : > { %p10599_p10 = pneg %p10863_p7 }
  0x2f   : > { %p10618_p6 = por %p10617_p3, %p10616_p2 }
  0x30   : > { %p10611_p12 = pnand %p10609_p11, %p10599_p10 }
  0x32   : > { %p10612_p13 = pneg %p10611_p12 }
  0x34   : > { %p10619_p1 = pnand %p10618_p6, %p10612_p13 }
  0x36   : > { %10622 = shalt.err (!%p10619_p1)
}
  0x37   : > { %s10752_s21 = smov 128   ;;  %s10753_s22 = smov 8  }
  0x38   : > { %s12965_s3 = sld [smem:[#allocation53_spill]]  ;;  %s10754_s25 = smov [#allocation7]  }
  0x39   : > { %s163_s26 = sshll.u32 %s10754_s25, 4  ;;  %s10755_s27 = smov [#allocation11]   ;;  %s164_s26 = int_to_ptr.vmem [resolvable:$true] %s163_s26 }
  0x3a   : > { %s189_s28 = sshll.u32 %s10755_s27, 4  ;;  %s10634_s29 = scalar_lea.vmem %s164_s26, 5376  ;;  %s190_s28 = int_to_ptr.vmem [resolvable:$true] %s189_s28 }
  0x3b   : > { %p10635_p0 = scmp.ne.s32.totalorder %s164_s26, %s10634_s29  ;;  %p10642_p11 = scmp.lt.s32.totalorder %s164_s26, %s164_s26 }
  0x3c   : > { %p10643_p12 = scmp.lt.s32.totalorder %s10634_s29, %s10634_s29 }
  0x3d   : > { %p10637_p1 = pnand %p10635_p0, %p10599_p10 }
  0x3e   : > { %10448 = dma.hbm_to_vmem [thread:$0]  (!%p10863_p7), %s12965_s3, 256, %s177_s17, [#allocation10], %s10752_s21, %s10752_s21, %s10753_s22  }
  0x3f   : > { %p10638_p8 = pneg %p10637_p1  ;;  %p10644_p13 = por %p10643_p12, %p10642_p11 }
  0x41   : > { %p10645_p2 = pnand %p10644_p13, %p10638_p8 }
  0x43   : > { %10648 = shalt.err (!%p10645_p2)
}
  0x44   : > { %s12966_s2 = sld [smem:[#allocation52_spill]]  ;;  %s203_s11 = sand.u32 1, %s10743_s7  }
  0x45   : > { %s10660_s12 = scalar_lea.vmem %s190_s28, 256  ;;  %p10668_p1 = scmp.lt.s32.totalorder %s190_s28, %s190_s28 }
  0x46   : > { %p10661_p3 = scmp.ne.s32.totalorder %s190_s28, %s10660_s12  ;;  %p10669_p8 = scmp.lt.s32.totalorder %s10660_s12, %s10660_s12 }
  0x48   : > { %p10663_p6 = pnand %p10661_p3, %p10599_p10  ;;  %p10670_p11 = por %p10669_p8, %p10668_p1 }
  0x4a   : > { %10445 = dma.hbm_to_vmem [thread:$0]  (!%p10863_p7), %s12966_s2, 5376, %s164_s26, [#allocation8], %s10752_s21, %s10752_s21, %s10753_s22  }
  0x4b   : > { %p10664_p0 = pneg %p10663_p6 }
  0x4d   : > { %p10671_p12 = pnand %p10670_p11, %p10664_p0 }
  0x4f   : > { %10674 = shalt.err (!%p10671_p12)
}
  0x50   : > { %10451 = dma.hbm_to_vmem [thread:$0]  (!%p10863_p7), %s12864_s4, 256, %s190_s28, [#allocation10], %s10752_s21, %s10752_s21, %s10753_s22  }
  0x51   : > { %s8640_s20 = sshll.u32 %s203_s11, 6  ;;  %s8641_s23 = sshll.u32 %s10747_s8, 7 }
  0x52   : > { %s10912_s26 = scalar_lea.hbm %s12865_s5, %s8641_s23  ;;  %s207_s18 = scalar_lea.vmem [#allocation12], %s8640_s20 }
  0x53   : > { %s213_s27 = sshll.u32 %s207_s18, 4  ;;  %s10916_s29 = scalar_lea.sflag [#allocation13], %s203_s11  ;;  %s10914_s27 = int_to_ptr.vmem [resolvable:$true] %s213_s27 }
  0x54   : > { %s10675_s0 = scalar_lea.hbm %s10912_s26, 1024  ;;  %p10677_p7 = pneg %p10868_p9 }
  0x55   : > { %p10676_p10 = scmp.ne.s32.totalorder %s10912_s26, %s10675_s0  ;;  %s10680_s1 = scalar_lea.hbm %s12865_s5, 2048 }
  0x56   : > { %p10681_p3 = scmp.lt.s32.totalorder %s10912_s26, %s12865_s5  ;;  %p10682_p6 = scmp.lt.s32.totalorder %s10680_s1, %s10675_s0 }
  0x57   : > { %p10678_p13 = pnand %p10677_p7, %p10676_p10 }
  0x58   : > { %p10683_p0 = por %p10682_p6, %p10681_p3 }
  0x59   : > { %p10679_p2 = pneg %p10678_p13 }
  0x5b   : > { %p10684_p1 = pnand %p10683_p0, %p10679_p2 }
  0x5d   : > { %10687 = shalt.err (!%p10684_p1)
}
  0x5e   : > { %s10688_s11 = scalar_lea.vmem %s10914_s27, 1024  ;;  %s10756_s17 = smov [#allocation12]  }
  0x5f   : > { %p10689_p8 = scmp.ne.s32.totalorder %s10914_s27, %s10688_s11  ;;  %s10693_s20 = sshll.u32 %s10756_s17, 4  ;;  %s10694_s20 = int_to_ptr.vmem [resolvable:$false] %s10693_s20 }
  0x60   : > { %s10695_s23 = scalar_lea.vmem %s10694_s20, 2048  ;;  %p10696_p10 = scmp.lt.s32.totalorder %s10914_s27, %s10694_s20 }
  0x61   : > { %p10691_p11 = pnand %p10689_p8, %p10677_p7  ;;  %p10697_p13 = scmp.lt.s32.totalorder %s10695_s23, %s10688_s11 }
  0x63   : > { %p10692_p12 = pneg %p10691_p11  ;;  %p10698_p4 = por %p10697_p13, %p10696_p10 }
  0x65   : > { %p10699_p5 = pnand %p10698_p4, %p10692_p12 }
  0x67   : > { %10702 = shalt.err (!%p10699_p5)
}
  0x68   : > { %s10757_s24 = smov 256   ;;  %p12967_p7 = scmp.ne.s32.totalorder %s12962_s15, 0 }
  0x69   : > { %10455 = dma.hbm_to_vmem [thread:$0]  (!%p10868_p9), %s10912_s26, 1024, %s10914_s27, %s10916_s29, %s10757_s24, %s10752_s21, %s10753_s22  }
  0x6a   : > { %225 = sbr.rel (%p12967_p7) target bundleno = 6836 (0x1ab4), region = 36 }
  0x6f   : > { %p12968_p2 = scmp.eq.s32.totalorder %s10831_s9, 0 }
  0x71   : > { %10722 = dma.done.wait (%p12968_p2), [#allocation8], 5376   ;;  %p12969_p3 = pmov %p12968_p2 }
  0x72   : > { %p12970_p4 = pmov %p12968_p2 }
  0x73   : > { %10724 = vsyncadd (%p12969_p3), [#allocation8], 4294961920 }
  0x74   : > { %10726 = dma.done.wait (%p12970_p4), [#allocation10], 512   ;;  %p12971_p5 = pmov %p12968_p2 }
  0x75   : > { %s239_s19 = sand.u32 1, %s10739_s30   ;;  %p12972_p9 = scmp.ne.s32.totalorder %s12961_s14, 0 }
  0x76   : > { %10728 = vsyncadd (%p12971_p5), [#allocation10], 4294966784  ;;  %s8646_s25 = sshll.u32 %s239_s19, 6  ;;  %s240_s21 = scalar_lea.sflag [#allocation13], %s239_s19 }
  0x77   : > { %s10950_s22 = scalar_lea.vmem [#allocation12], %s8646_s25 }
  0x78   : > { %10730 = dma.done.wait (%p12972_p9), %s240_s21, 1024  }
  0x79   : > { %10732 = vsyncadd (%p12972_p9), %s240_s21, 4294966272  ;;  %vm438_vm0 = vcmask 261120   ;;  %v274_v0 = vld [vmem:[#allocation7 + $0x18] sm:$0xff]  ;;  %v273_v1 = vld [vmem:[#allocation7 + $0x10] sm:$0xff]  ;;  %s10758_s14 = smov 64   ;;  %vm10760_vm1 = vmmov 0  }
  0x7a   : > { %v272_v2 = vld [vmem:[#allocation7 + $0x8] sm:$0xff]  ;;  %v10956_v3 = vand.u32 4294901760, %v274_v0  ;;  %v10958_v4 = vand.u32 4294901760, %v273_v1  ;;  %v271_v6 = vld [vmem:[#allocation7] sm:$0xff]  ;;  %v419_v7 = vld [vmem:[%s10950_s22] sm:$0xff]  ;;  %vm1249_vm2 = vcmask 785408  }
  0x7b   : > { %v10960_v5 = vand.u32 4294901760, %v272_v2  ;;  %v8649_v8 = vld [vmem:[%s10950_s22 + $0x8] sm:$0xff]  ;;  %v10964_v9 = vand.u32 4294901760, %v271_v6  ;;  %v440_v10 = vsel %vm438_vm0, %v419_v7, 0  ;;  %v8650_v12 = vld [vmem:[%s10950_s22 + $0x10] sm:$0xff]  ;;  %v8651_v13 = vld [vmem:[%s10950_s22 + $0x18] sm:$0xff] }
  0x7c   : > { %v443_v11 = vsel %vm438_vm0, %v8649_v8, 0  ;;  %9252 = vmatprep.subr.mxu0 %v10956_v3  ;;  %v10972_v14 = vsub.f32 %v274_v0, %v10956_v3  ;;  %v10974_v15 = vand.u32 4294901760, %v440_v10  ;;  %v10979_v17 = vsub.f32 %v273_v1, %v10958_v4  ;;  %v8657_v26 = vld [vmem:[#allocation7 + $0x141] ss:$0 sm:$0xff]  ;;  %v8652_v39 = vld [vmem:[%s10950_s22 + $0x20] sm:$0xff]  ;;  %v8653_v40 = vld [vmem:[%s10950_s22 + $0x28] sm:$0xff] }
  0x7d   : > { %v10976_v16 = vand.u32 4294901760, %v443_v11  ;;  %9253 = vmatpush3.msra.mxu0 %v10956_v3  ;;  %v10983_v18 = vsub.f32 %v272_v2, %v10960_v5  ;;  %v446_v19 = vsel %vm438_vm0, %v8650_v12, 0  ;;  %v449_v20 = vsel %vm438_vm0, %v8651_v13, 0  ;;  %1759 = vrot.lane.b32.xlu0 %v8657_v26, %s10758_s14  ;;  %v8654_v48 = vld [vmem:[%s10950_s22 + $0x30] sm:$0xff]  ;;  %v8655_v49 = vld [vmem:[%s10950_s22 + $0x38] sm:$0xff]  ;;  %s10761_s15 = smov 96  }
  0x7e   : > { %v10988_v21 = vsub.f32 %v271_v6, %v10964_v9  ;;  %9254 = vmatprep.subr.mxu0 %v10958_v4  ;;  %v10992_v22 = vand.u32 4294901760, %v10972_v14  ;;  %v10995_v23 = vsub.f32 %v440_v10, %v10974_v15  ;;  %v11001_v25 = vand.u32 4294901760, %v10979_v17  ;;  %9280 = vmatprep.mubr.f32.mxu1 %v10974_v15  ;;  %s11963_s26 = sshll.u32 %s10831_s9, 3  ;;  %p267_p6 = scmp.lt.s32.totalorder %s10831_s9, 1 }
  0x7f   : > { %v10998_v24 = vsub.f32 %v443_v11, %v10976_v16  ;;  %9255 = vmatpush3.msra.mxu0 %v10958_v4  ;;  %v11006_v27 = vand.u32 4294901760, %v10983_v18  ;;  %v11008_v28 = vand.u32 4294901760, %v446_v19  ;;  %v11010_v29 = vand.u32 4294901760, %v449_v20  ;;  %s328_s18 = sadd.s32 1, %s11963_s26  ;;  %s336_s29 = sadd.s32 2, %s11963_s26 }
  0x80   : > { %v11013_v30 = vand.u32 4294901760, %v10988_v21  ;;  %9256 = vmatprep.subr.mxu0 %v10960_v5  ;;  %v640_v31 = vsub.f32 %v10972_v14, %v10992_v22  ;;  %v534_v32 = vand.u32 4294901760, %v10995_v23  ;;  %v647_v34 = vsub.f32 %v10979_v17, %v11001_v25  ;;  %s329_s27 = sld [smem:[#allocation5 + %s328_s18]]  ;;  %s344_s1 = sadd.s32 3, %s11963_s26 }
  0x81   : > { %v544_v33 = vand.u32 4294901760, %v10998_v24  ;;  %9257 = vmatpush3.msra.mxu0 %v10960_v5  ;;  %v654_v35 = vsub.f32 %v10983_v18, %v11006_v27  ;;  %v11027_v36 = vsub.f32 %v446_v19, %v11008_v28  ;;  %v11030_v37 = vsub.f32 %v449_v20, %v11010_v29  ;;  %s330_s0 = sld [smem:[#allocation6 + %s328_s18]]  ;;  %s352_s17 = sadd.s32 4, %s11963_s26 }
  0x82   : > { %v661_v38 = vsub.f32 %v10988_v21, %v11013_v30  ;;  %9258 = vmatprep.subr.mxu0 %v10964_v9  ;;  %v641_v41 = vand.u32 4294901760, %v640_v31  ;;  %v535_v42 = vsub.f32 %v10995_v23, %v534_v32  ;;  %v648_v44 = vand.u32 4294901760, %v647_v34  ;;  %s321_s8 = sld [smem:[#allocation5 + %s11963_s26]]  ;;  %s360_s23 = sadd.s32 5, %s11963_s26 }
  0x83   : > { %v545_v43 = vsub.f32 %v10998_v24, %v544_v33  ;;  %9259 = vmatpush3.msra.mxu0 %v10964_v9  ;;  %v655_v45 = vand.u32 4294901760, %v654_v35  ;;  %v554_v46 = vand.u32 4294901760, %v11027_v36  ;;  %v564_v47 = vand.u32 4294901760, %v11030_v37  ;;  %s337_s28 = sld [smem:[#allocation5 + %s336_s29]]  ;;  %s368_s25 = sadd.s32 6, %s11963_s26 }
  0x84   : > { %9272 = vmatprep.subr.mxu1 %v641_v41  ;;  %v536_v50 = vand.u32 4294901760, %v535_v42  ;;  %9292 = vmatprep.subr.mxu0 %v10972_v14  ;;  %v452_v52 = vsel %vm438_vm0, %v8652_v39, 0  ;;  %v455_v53 = vsel %vm438_vm0, %v8653_v40, 0  ;;  %v662_v58 = vand.u32 4294901760, %v661_v38  ;;  %s338_s12 = sld [smem:[#allocation6 + %s336_s29]]  ;;  %s376_s18 = sadd.s32 7, %s11963_s26 }
  0x85   : > { %v546_v51 = vand.u32 4294901760, %v545_v43  ;;  %9273 = vmatpush3.msra.mxu1 %v641_v41  ;;  %v555_v54 = vsub.f32 %v11027_v36, %v554_v46  ;;  %v565_v55 = vsub.f32 %v11030_v37, %v564_v47  ;;  %v11057_v56 = vand.u32 4294901760, %v452_v52  ;;  %s322_s16 = sld [smem:[#allocation6 + %s11963_s26]]  ;;  %s13068_s9 = smov (!%p267_p6, %s10831_s9), 1 }
  0x86   : > { %v11059_v57 = vand.u32 4294901760, %v455_v53  ;;  %9260 = vmatprep.mubr.f32.mxu0 %v536_v50  ;;  %9274 = vmatprep.subr.mxu1 %v648_v44  ;;  %v458_v59 = vsel %vm438_vm0, %v8654_v48, 0  ;;  %v461_v60 = vsel %vm438_vm0, %v8655_v49, 0  ;;  %s345_s11 = sld [smem:[#allocation5 + %s344_s1]]  ;;  %s331_s21 = scalar_lea.vmem [#allocation9], %s329_s27  ;;  %vm405_vm3 = vcmask 1040384  }
  0x87   : > { %9261 = vmatmul.mubr.f32.vlgmr.msra.gmra.mxu0 %v546_v51  ;;  %9275 = vmatpush3.msra.mxu1 %v648_v44  ;;  %v556_v61 = vand.u32 4294901760, %v555_v54  ;;  %v566_v62 = vand.u32 4294901760, %v565_v55  ;;  %v11064_v63 = vsub.f32 %v452_v52, %v11057_v56  ;;  %v11070_v1 = vand.u32 4294901760, %v458_v59  ;;  %s11971_s20 = sld [smem:[#allocation6 + %s344_s1]]  ;;  %s333_s22 = scalar_lea.vmem [#allocation11], %s330_s0 }
  0x88   : > { %v11067_v0 = vsub.f32 %v455_v53, %v11059_v57  ;;  %9276 = vmatprep.subr.mxu1 %v655_v45  ;;  %9293 = vmatpush3.msra.mxu0 %v10972_v14  ;;  %v11072_v2 = vand.u32 4294901760, %v461_v60  ;;  %s11974_s24 = sld [smem:[#allocation5 + %s352_s17]]  ;;  %s323_s2 = scalar_lea.vmem [#allocation9], %s321_s8  ;;  %vm407_vm4 = vcmask 1041408   ;;  %vm409_vm5 = vcmask 1042432  }
  0x89   : > { %9263 = vmatprep.mubr.f32.mxu0 %v556_v61  ;;  %9277 = vmatpush3.msra.mxu1 %v655_v45  ;;  %v574_v6 = vand.u32 4294901760, %v11064_v63  ;;  %v11078_v8 = vsub.f32 %v458_v59, %v11070_v1  ;;  %s11978_s19 = sld [smem:[#allocation6 + %s352_s17]]  ;;  %s339_s29 = scalar_lea.vmem [#allocation9], %s337_s28  ;;  %vm411_vm6 = vcmask 1043456   ;;  %vm413_vm7 = vcmask 1044480  }
  0x8a   : > { %v584_v7 = vand.u32 4294901760, %v11067_v0  ;;  %9278 = vmatprep.subr.mxu1 %v662_v58  ;;  %9294 = vmatprep.subr.mxu0 %v10979_v17  ;;  %v11081_v10 = vsub.f32 %v461_v60, %v11072_v2  ;;  %s341_s1 = scalar_lea.vmem [#allocation11], %s338_s12  ;;  %s11988_s17 = sld [smem:[#allocation5 + %s368_s25]]  ;;  %vm415_vm8 = vcmask 1045504   ;;  %vm417_vm9 = vcmask 1046528  }
  0x8b   : > { %9264 = vmatmul.mubr.f32.gmra.mxu0 %v566_v62  ;;  %9279 = vmatpush3.msra.mxu1 %v662_v58  ;;  %v575_v11 = vsub.f32 %v11064_v63, %v574_v6  ;;  %v594_v13 = vand.u32 4294901760, %v11078_v8  ;;  %v8656_v62 = vld [vmem:[#allocation7 + $0x140] ss:$0 sm:$0xff]  ;;  %s325_s3 = scalar_lea.vmem [#allocation11], %s322_s16  ;;  %s11990_s27 = sld [smem:[#allocation6 + %s368_s25]]  ;;  %vm6841_vm10 = vcmask 7168  }
  0x8c   : > { %v585_v12 = vsub.f32 %v11067_v0, %v584_v7  ;;  %9281 = vmatmul.mubr.f32.vlgmr.msra.gmra.mxu1 %v10976_v16  ;;  %9312 = vmatprep.subr.mxu1 %v10956_v3  ;;  %v604_v14 = vand.u32 4294901760, %v11081_v10  ;;  %s347_s0 = scalar_lea.vmem [#allocation9], %s345_s11  ;;  %s11993_s28 = sld [smem:[#allocation5 + %s376_s18]]  ;;  %vm6843_vm11 = vcmask 15360   ;;  %vm6845_vm12 = vcmask 23552  }
  0x8d   : > { %v576_v19 = vand.u32 4294901760, %v575_v11  ;;  %9313 = vmatpush3.msra.mxu1 %v10956_v3  ;;  %9283 = vmatprep.mubr.f32.mxu1 %v11008_v28  ;;  %v595_v26 = vsub.f32 %v11078_v8, %v594_v13  ;;  %s349_s26 = scalar_lea.vmem [#allocation11], %s11971_s20  ;;  %s11996_s8 = sld [smem:[#allocation6 + %s376_s18]]  ;;  %vm6847_vm13 = vcmask 31744   ;;  %vm6849_vm14 = vcmask 39936  }
  0x8e   : > { %v586_v20 = vand.u32 4294901760, %v585_v12  ;;  %9295 = vmatpush3.msra.mxu0 %v10979_v17  ;;  %9314 = vmatprep.subr.mxu1 %v10958_v4  ;;  %v605_v31 = vsub.f32 %v11081_v10, %v604_v14  ;;  %v278_v17 = vld [vmem:[#allocation7 + $0x38] sm:$0xff]  ;;  %s10763_s25 = smov 2   ;;  %s10768_s18 = smov 6   ;;  %vm6851_vm15 = vcmask 48128  }
  0x8f   : > { %9266 = vmatprep.mubr.f32.mxu0 %v576_v19  ;;  %9315 = vmatpush3.msra.mxu1 %v10958_v4  ;;  %v596_v34 = vand.u32 4294901760, %v595_v26 }
  0x90   : > { %9267 = vmatmul.mubr.f32.gmra.mxu0 %v586_v20  ;;  %9284 = vmatmul.mubr.f32.gmra.mxu1 %v11010_v29  ;;  %v606_v35 = vand.u32 4294901760, %v605_v31  ;;  %s371_s11 = scalar_lea.vmem [#allocation9], %s11988_s17  ;;  %s8647_s17 = sshll.u32 %s13068_s9, 3 }
  0x91   : > { %9296 = vmatprep.subr.mxu0 %v10983_v18  ;;  %9286 = vmatprep.mubr.f32.mxu1 %v11057_v56  ;;  %s373_s20 = scalar_lea.vmem [#allocation11], %s11990_s27 }
  0x92   : > { %9269 = vmatprep.mubr.f32.mxu0 %v596_v34  ;;  %9297 = vmatpush3.msra.mxu0 %v10983_v18  ;;  %v11121_v18 = vand.u32 4294901760, %v278_v17 }
  0x93   : > { %9298 = vmatprep.subr.mxu0 %v10988_v21  ;;  %9316 = vmatprep.subr.mxu1 %v10960_v5 }
  0x94   : > { %9270 = vmatmul.mubr.f32.gmra.mxu0 %v606_v35  ;;  %9287 = vmatmul.mubr.f32.gmra.mxu1 %v11059_v57  ;;  %v11134_v38 = vsub.f32 %v278_v17, %v11121_v18 }
  0x95   : > { %9299 = vmatpush3.msra.mxu0 %v10988_v21  ;;  %9300 = vmatprep.mubr.f32.mxu0 %v10995_v23  ;;  %v277_v21 = vld [vmem:[#allocation7 + $0x30] sm:$0xff] }
  0x96   : > { %9317 = vmatpush3.msra.mxu1 %v10960_v5  ;;  %9289 = vmatprep.mubr.f32.mxu1 %v11070_v1  ;;  %v11136_v23 = vand.u32 4294901760, %v277_v21 }
  0x97   : > { %9318 = vmatprep.subr.mxu1 %v10964_v9  ;;  %9332 = vmatprep.subr.mxu0 %v10992_v22 }
  0x98   : > { %9301 = vmatmul.mubr.f32.vlgmr.msra.gmra.mxu0 %v10998_v24  ;;  %9290 = vmatmul.mubr.f32.gmra.mxu1 %v11072_v2  ;;  %v11152_v24 = vsub.f32 %v277_v21, %v11136_v23 }
  0x99   : > { %9303 = vmatprep.mubr.f32.mxu0 %v11027_v36  ;;  %9319 = vmatpush3.msra.mxu1 %v10964_v9 }
  0x9a   : > { %9320 = vmatprep.mubr.f32.mxu1 %v534_v32  ;;  %9333 = vmatpush3.msra.mxu0 %v10992_v22  ;;  %v276_v22 = vld [vmem:[#allocation7 + $0x28] sm:$0xff]  ;;  %v275_v32 = vld [vmem:[#allocation7 + $0x20] sm:$0xff] }
  0x9b   : > { %9352 = vmatprep.subr.mxu1 %v10956_v3  ;;  %9334 = vmatprep.subr.mxu0 %v11001_v25 }
  0x9c   : > { %9304 = vmatmul.mubr.f32.gmra.mxu0 %v11030_v37  ;;  %9321 = vmatmul.mubr.f32.vlgmr.msra.gmra.mxu1 %v544_v33  ;;  %v11171_v33 = vand.u32 4294901760, %v275_v32 }
  0x9d   : > { %9306 = vmatprep.mubr.f32.mxu0 %v11064_v63  ;;  %9353 = vmatpush3.msra.mxu1 %v10956_v3  ;;  %v11149_v3 = vand.u32 4294901760, %v11134_v38 }
  0x9e   : > { %9323 = vmatprep.mubr.f32.mxu1 %v554_v46  ;;  %9335 = vmatpush3.msra.mxu0 %v11001_v25  ;;  %v11157_v25 = vand.u32 4294901760, %v276_v22  ;;  %v11191_v39 = vsub.f32 %v275_v32, %v11171_v33 }
  0x9f   : > { %9354 = vmatprep.subr.mxu1 %v10958_v4  ;;  %9336 = vmatprep.subr.mxu0 %v11006_v27 }
  0xa0   : > { %9307 = vmatmul.mubr.f32.gmra.mxu0 %v11067_v0  ;;  %9324 = vmatmul.mubr.f32.gmra.mxu1 %v564_v47  ;;  %v11177_v36 = vsub.f32 %v276_v22, %v11157_v25 }
  0xa1   : > { %9309 = vmatprep.mubr.f32.mxu0 %v11078_v8  ;;  %9355 = vmatpush3.msra.mxu1 %v10958_v4  ;;  %v1373_v4 = vsub.f32 %v11134_v38, %v11149_v3 }
  0xa2   : > { %9326 = vmatprep.mubr.f32.mxu1 %v574_v6  ;;  %9337 = vmatpush3.msra.mxu0 %v11006_v27  ;;  %v11169_v27 = vand.u32 4294901760, %v11152_v24  ;;  %v11196_v40 = vand.u32 4294901760, %v11177_v36 }
  0xa3   : > { %9338 = vmatprep.subr.mxu0 %v11013_v30  ;;  %9356 = vmatprep.subr.mxu1 %v10960_v5 }
  0xa4   : > { %9310 = vmatmul.mubr.f32.gmra.mxu0 %v11081_v10  ;;  %9327 = vmatmul.mubr.f32.gmra.mxu1 %v584_v7  ;;  %v1380_v37 = vsub.f32 %v11152_v24, %v11169_v27  ;;  %v1387_v41 = vsub.f32 %v11177_v36, %v11196_v40 }
  0xa5   : > { %9339 = vmatpush3.msra.mxu0 %v11013_v30  ;;  %9340 = vmatprep.mubr.f32.mxu0 %v10974_v15  ;;  %v12871_v30 = vmov 0.0  }
  0xa6   : > { %9357 = vmatpush3.msra.mxu1 %v10960_v5  ;;  %9329 = vmatprep.mubr.f32.mxu1 %v594_v13  ;;  %v11186_v5 = vand.u32 4294901760, %v1373_v4 }
  0xa7   : > { %9358 = vmatprep.subr.mxu1 %v10964_v9  ;;  %9372 = vmatprep.subr.mxu0 %v12871_v30 }
  0xa8   : > { %9341 = vmatmul.mubr.f32.vlgmr.msra.gmra.mxu0 %v10976_v16  ;;  %9330 = vmatmul.mubr.f32.gmra.mxu1 %v604_v14 }
  0xa9   : > { %9343 = vmatprep.mubr.f32.mxu0 %v11008_v28  ;;  %9359 = vmatpush3.msra.mxu1 %v10964_v9  ;;  %v11204_v9 = vand.u32 4294901760, %v1380_v37 }
  0xaa   : > { %9360 = vmatprep.mubr.f32.mxu1 %v10974_v15  ;;  %9373 = vmatpush3.msra.mxu0 %v11121_v18  ;;  %v11207_v15 = vand.u32 4294901760, %v11191_v39 }
  0xab   : > { %9383 = vmatprep.subr.mxu1 %v12871_v30  ;;  %9374 = vmatprep.subr.mxu0 %v12871_v30 }
  0xac   : > { %9344 = vmatmul.mubr.f32.gmra.mxu0 %v11010_v29  ;;  %9361 = vmatmul.mubr.f32.vlgmr.msra.gmra.mxu1 %v10976_v16  ;;  %v1394_v16 = vsub.f32 %v11191_v39, %v11207_v15 }
  0xad   : > { %9346 = vmatprep.mubr.f32.mxu0 %v11057_v56  ;;  %9384 = vmatpush3.msra.mxu1 %v11186_v5 }
  0xae   : > { %9363 = vmatprep.mubr.f32.mxu1 %v11008_v28  ;;  %9375 = vmatpush3.msra.mxu0 %v11136_v23  ;;  %v11223_v28 = vand.u32 4294901760, %v1387_v41 }
  0xaf   : > { %9385 = vmatprep.subr.mxu1 %v12871_v30  ;;  %9376 = vmatprep.subr.mxu0 %v12871_v30 }
  0xb0   : > { %9347 = vmatmul.mubr.f32.gmra.mxu0 %v11059_v57  ;;  %9364 = vmatmul.mubr.f32.gmra.mxu1 %v11010_v29  ;;  %12973 = vst [vmem:[#allocation18_spill] sm:$0xff] %v11223_v28  ;;  %v11232_v29 = vand.u32 4294901760, %v1394_v16 }
  0xb1   : > { %9349 = vmatprep.mubr.f32.mxu0 %v11070_v1  ;;  %9386 = vmatpush3.msra.mxu1 %v11204_v9 }
  0xb2   : > { %9377 = vmatpush3.msra.mxu0 %v11157_v25  ;;  %9366 = vmatprep.mubr.f32.mxu1 %v11057_v56  ;;  %12974 = vst [vmem:[#allocation19_spill] sm:$0xff] %v11232_v29 }
  0xb3   : > { %9378 = vmatprep.subr.mxu0 %v12871_v30  ;;  %9387 = vmatprep.subr.mxu1 %v12871_v30 }
  0xb4   : > { %9350 = vmatmul.mubr.f32.gmra.mxu0 %v11072_v2  ;;  %9367 = vmatmul.mubr.f32.gmra.mxu1 %v11059_v57 }
  0xb5   : > { %9379 = vmatpush3.msra.mxu0 %v11171_v33  ;;  %9380 = vmatprep.mubr.msk.f32.mxu0 %vm10760_vm1, %v12871_v30 }
  0xb6   : > { %9388 = vmatpush3.msra.mxu1 %v11223_v28  ;;  %9394 = vmatprep.subr.mxu0 %v12871_v30 }
  0xb7   : > { %9369 = vmatprep.mubr.f32.mxu1 %v11070_v1  ;;  %9389 = vmatprep.subr.mxu1 %v12871_v30 }
  0xb8   : > { %9381 = vmatmul.mubr.f32.vlgmr.msra.gmra.mxu0 %v12871_v30  ;;  %9370 = vmatmul.mubr.f32.gmra.mxu1 %v11072_v2 }
  0xb9   : > { %9395 = vmatpush3.msra.mxu0 %v11134_v38  ;;  %9390 = vmatpush3.msra.mxu1 %v11232_v29 }
  0xba   : > { %9396 = vmatprep.subr.mxu0 %v12871_v30  ;;  %9391 = vmatprep.mubr.msk.f32.mxu1 %vm10760_vm1, %v12871_v30 }
  0xbb   : > { %9397 = vmatpush3.msra.mxu0 %v11152_v24  ;;  %9405 = vmatprep.subr.mxu1 %v12871_v30 }
  0xbc   : > { %9398 = vmatprep.subr.mxu0 %v12871_v30  ;;  %9392 = vmatmul.mubr.f32.vlgmr.msra.gmra.mxu1 %v12871_v30 }
  0xbd   : > { %9399 = vmatpush3.msra.mxu0 %v11177_v36  ;;  %9406 = vmatpush3.msra.mxu1 %v11121_v18 }
  0xbe   : > { %9400 = vmatprep.subr.mxu0 %v12871_v30  ;;  %9402 = vmatprep.mubr.msk.f32.mxu0 %vm10760_vm1, %v12871_v30 }
  0xbf   : > { %9401 = vmatpush3.msra.mxu0 %v11191_v39  ;;  %9407 = vmatprep.subr.mxu1 %v12871_v30 }
  0xc0   : > { %9416 = vmatprep.subr.mxu0 %v12871_v30  ;;  %9403 = vmatmul.mubr.f32.vlgmr.msra.gmra.mxu0 %v12871_v30 }
  0xc1   : > { %9408 = vmatpush3.msra.mxu1 %v11136_v23  ;;  %9417 = vmatpush3.msra.mxu0 %v11149_v3 }
  0xc2   : > { %9409 = vmatprep.subr.mxu1 %v12871_v30  ;;  %9418 = vmatprep.subr.mxu0 %v12871_v30 }
  0xc3   : > { %9410 = vmatpush3.msra.mxu1 %v11157_v25  ;;  %9419 = vmatpush3.msra.mxu0 %v11169_v27 }
  0xc4   : > { %9411 = vmatprep.subr.mxu1 %v12871_v30  ;;  %9420 = vmatprep.subr.mxu0 %v12871_v30 }
  0xc5   : > { %9412 = vmatpush3.msra.mxu1 %v11171_v33  ;;  %9413 = vmatprep.mubr.msk.f32.mxu1 %vm10760_vm1, %v12871_v30 }
  0xc6   : > { %9421 = vmatpush3.msra.mxu0 %v11196_v40  ;;  %9414 = vmatmul.mubr.f32.vlgmr.msra.gmra.mxu1 %v12871_v30 }
  0xc7   : > { %9422 = vmatprep.subr.mxu0 %v12871_v30  ;;  %9427 = vmatprep.subr.mxu1 %v12871_v30 }
  0xc8   : > { %9423 = vmatpush3.msra.mxu0 %v11207_v15  ;;  %9424 = vmatprep.mubr.msk.f32.mxu0 %vm10760_vm1, %v12871_v30 }
  0xc9   : > { %9428 = vmatpush3.msra.mxu1 %v11121_v18  ;;  %9425 = vmatmul.mubr.f32.vlgmr.msra.gmra.mxu0 %v12871_v30 }
  0xca   : > { %9429 = vmatprep.subr.mxu1 %v12871_v30  ;;  %9435 = vmatprep.mubr.msk.f32.mxu1 %vm10760_vm1, %v12871_v30 }
  0xcb   : > { %9430 = vmatpush3.msra.mxu1 %v11136_v23  ;;  %9438 = vmatprep.subr.mxu0 %v12871_v30 }
  0xcc   : > { %9431 = vmatprep.subr.mxu1 %v12871_v30  ;;  %9439 = vmatpush3.msra.mxu0 %v11121_v18 }
  0xcd   : > { %9432 = vmatpush3.msra.mxu1 %v11157_v25  ;;  %9440 = vmatprep.subr.mxu0 %v12871_v30 }
  0xce   : > { %9433 = vmatprep.subr.mxu1 %v12871_v30  ;;  %9441 = vmatpush3.msra.mxu0 %v11136_v23 }
  0xcf   : > { %9434 = vmatpush3.msra.mxu1 %v11171_v33  ;;  %9442 = vmatprep.subr.mxu0 %v12871_v30 }
  0xd0   : > { %9436 = vmatmul.mubr.f32.vlgmr.msra.gmra.mxu1 %v12871_v30  ;;  %9449 = vmatprep.subr.mxu1 %v12871_v30 }
  0xd1   : > { %9450 = vmatpush3.msra.mxu1 %v11186_v5  ;;  %9457 = vmatprep.mubr.msk.f32.mxu1 %vm10760_vm1, %v12871_v30 }
  0xd2   : > { %9451 = vmatprep.subr.mxu1 %v12871_v30  ;;  %9443 = vmatpush3.msra.mxu0 %v11157_v25 }
  0xd3   : > { %9452 = vmatpush3.msra.mxu1 %v11204_v9  ;;  %9444 = vmatprep.subr.mxu0 %v12871_v30 }
  0xd4   : > { %9453 = vmatprep.subr.mxu1 %v12871_v30  ;;  %9445 = vmatpush3.msra.mxu0 %v11171_v33 }
  0xd5   : > { %9454 = vmatpush3.msra.mxu1 %v11223_v28  ;;  %9446 = vmatprep.mubr.msk.f32.mxu0 %vm10760_vm1, %v12871_v30 }
  0xd6   : > { %9455 = vmatprep.subr.mxu1 %v12871_v30  ;;  %9460 = vmatprep.subr.mxu0 %v12871_v30 }
  0xd7   : > { %9456 = vmatpush3.msra.mxu1 %v11232_v29 }
  0xd8   : > { %9471 = vmatprep.subr.mxu1 %v12871_v30 }
 0x147   : > { %v9262_v42 = vpop.f32.mrf.mxu0 }
 0x148   : > { %v549_v6 = vadd.f32 %v9262_v42, %v8656_v62 }
 0x149   : > { %v538_v43 = vpop.f32.mrf.mxu0 }
 0x14a   : > { %v539_v12 = vadd.f32 %v8656_v62, %v538_v43 }
 0x14b   : > { %v9265_v44 = vpop.f32.mrf.mxu0 }
 0x14c   : > { %v9282_v45 = vpop.f32.mrf.mxu1  ;;  %v569_v13 = vadd.f32 %v9265_v44, %v8656_v62 }
 0x14d   : > { %v558_v46 = vpop.f32.mrf.mxu0  ;;  %v706_v14 = vadd.f32 %v9282_v45, %v549_v6 }
 0x14e   : > { %v699_v47 = vpop.f32.mrf.mxu1  ;;  %v559_v21 = vadd.f32 %v8656_v62, %v558_v46 }
 0x14f   : > { %v700_v26 = vadd.f32 %v699_v47, %v539_v12 }
 0x150   : > { %v9268_v48 = vpop.f32.mrf.mxu0  ;;  %v9285_v49 = vpop.f32.mrf.mxu1 }
 0x151   : > { %v589_v34 = vadd.f32 %v9268_v48, %v8656_v62  ;;  %v718_v22 = vadd.f32 %v9285_v49, %v569_v13 }
 0x152   : > { %v578_v50 = vpop.f32.mrf.mxu0  ;;  %v711_v51 = vpop.f32.mrf.mxu1 }
 0x153   : > { %v712_v16 = vadd.f32 %v711_v51, %v559_v21  ;;  %v579_v43 = vadd.f32 %v8656_v62, %v578_v50 }
 0x154   : > { %v9271_v52 = vpop.f32.mrf.mxu0  ;;  %v9288_v53 = vpop.f32.mrf.mxu1 }
 0x155   : > { %v609_v44 = vadd.f32 %v9271_v52, %v8656_v62  ;;  %v730_v45 = vadd.f32 %v9288_v53, %v589_v34 }
 0x156   : > { %v598_v54 = vpop.f32.mrf.mxu0  ;;  %v723_v55 = vpop.f32.mrf.mxu1 }
 0x157   : > { %v724_v46 = vadd.f32 %v723_v55, %v579_v43 }
 0x158   : > { %v9302_v56 = vpop.f32.mrf.mxu0  ;;  %v9291_v57 = vpop.f32.mrf.mxu1 }
 0x159   : > { %v829_v31 = vadd.f32 %v9302_v56, %v706_v14  ;;  %v742_v50 = vadd.f32 %v9291_v57, %v609_v44 }
 0x15a   : > { %v821_v58 = vpop.f32.mrf.mxu0  ;;  %v735_v59 = vpop.f32.mrf.mxu1 }
 0x15b   : > { %v822_v32 = vadd.f32 %v821_v58, %v700_v26 }
 0x15c   : > { %v9305_v60 = vpop.f32.mrf.mxu0  ;;  %v9322_v61 = vpop.f32.mrf.mxu1 }
 0x15d   : > { %v956_v4 = vadd.f32 %v9322_v61, %v829_v31  ;;  %v843_v42 = vadd.f32 %v9305_v60, %v718_v22  ;;  %v599_v60 = vadd.f32 %v8656_v62, %v598_v54 }
 0x15e   : > { %v835_v63 = vpop.f32.mrf.mxu0  ;;  %v947_v0 = vpop.f32.mrf.mxu1 }
 0x15f   : > { %v948_v30 = vadd.f32 %v947_v0, %v822_v32  ;;  %v836_v47 = vadd.f32 %v835_v63, %v712_v16 }
 0x160   : > { %v9308_v1 = vpop.f32.mrf.mxu0  ;;  %v9325_v2 = vpop.f32.mrf.mxu1 }
 0x161   : > { %v972_v48 = vadd.f32 %v9325_v2, %v843_v42  ;;  %v857_v61 = vadd.f32 %v9308_v1, %v730_v45 }
 0x162   : > { %v849_v7 = vpop.f32.mrf.mxu0  ;;  %v963_v8 = vpop.f32.mrf.mxu1 }
 0x163   : > { %v964_v13 = vadd.f32 %v963_v8, %v836_v47  ;;  %v850_v0 = vadd.f32 %v849_v7, %v724_v46 }
 0x164   : > { %v9311_v10 = vpop.f32.mrf.mxu0  ;;  %v9328_v11 = vpop.f32.mrf.mxu1 }
 0x165   : > { %v988_v26 = vadd.f32 %v9328_v11, %v857_v61  ;;  %v871_v63 = vadd.f32 %v9311_v10, %v742_v50  ;;  %v11317_v61 = vpop.permute.xlu0 %1759 }
 0x166   : > { %v863_v19 = vpop.f32.mrf.mxu0  ;;  %v979_v20 = vpop.f32.mrf.mxu1 }
 0x167   : > { %v980_v1 = vadd.f32 %v979_v20, %v850_v0 }
 0x168   : > { %v9342_v35 = vpop.f32.mrf.mxu0  ;;  %v9331_v17 = vpop.f32.mrf.mxu1 }
 0x169   : > { %v1093_v29 = vadd.f32 %v9342_v35, %v956_v4  ;;  %v1004_v62 = vadd.f32 %v9331_v17, %v871_v63 }
 0x16a   : > { %v1086_v37 = vpop.f32.mrf.mxu0  ;;  %v995_v41 = vpop.f32.mrf.mxu1 }
 0x16b   : > { %v1087_v56 = vadd.f32 %v1086_v37, %v948_v30 }
 0x16c   : > { %v9345_v6 = vpop.f32.mrf.mxu0  ;;  %v9362_v28 = vpop.f32.mrf.mxu1 }
 0x16d   : > { %v1210_v12 = vadd.f32 %v9362_v28, %v1093_v29  ;;  %v1105_v14 = vadd.f32 %v9345_v6, %v972_v48  ;;  %v736_v28 = vadd.f32 %v735_v59, %v599_v60 }
 0x16e   : > { %v1098_v49 = vpop.f32.mrf.mxu0  ;;  %v1203_v58 = vpop.f32.mrf.mxu1 }
 0x16f   : > { %1251 = vst.msk [vmem:[#allocation2 + $0x8] sm:$0xff] %vm1249_vm2, %v1210_v12  ;;  %v1204_v51 = vadd.f32 %v1203_v58, %v1087_v56  ;;  %v1099_v31 = vadd.f32 %v1098_v49, %v964_v13  ;;  %v864_v57 = vadd.f32 %v863_v19, %v736_v28 }
 0x170   : > { %v9348_v52 = vpop.f32.mrf.mxu0  ;;  %v9365_v53 = vpop.f32.mrf.mxu1 }
 0x171   : > { %1250 = vst.msk [vmem:[#allocation2] sm:$0xff] %vm1249_vm2, %v1204_v51  ;;  %v1222_v30 = vadd.f32 %v9365_v53, %v1105_v14  ;;  %v1117_v2 = vadd.f32 %v9348_v52, %v988_v26  ;;  %v996_v22 = vadd.f32 %v995_v41, %v864_v57 }
 0x172   : > { %v1110_v29 = vpop.f32.mrf.mxu0  ;;  %v1215_v55 = vpop.f32.mrf.mxu1 }
 0x173   : > { %1253 = vst.msk [vmem:[#allocation2 + $0x18] sm:$0xff] %vm1249_vm2, %v1222_v30  ;;  %v1216_v8 = vadd.f32 %v1215_v55, %v1099_v31  ;;  %v1111_v35 = vadd.f32 %v1110_v29, %v980_v1 }
 0x174   : > { %v9351_v34 = vpop.f32.mrf.mxu0  ;;  %v9368_v54 = vpop.f32.mrf.mxu1 }
 0x175   : > { %1252 = vst.msk [vmem:[#allocation2 + $0x10] sm:$0xff] %vm1249_vm2, %v1216_v8  ;;  %v1234_v7 = vadd.f32 %v9368_v54, %v1117_v2  ;;  %v1129_v59 = vadd.f32 %v9351_v34, %v1004_v62 }
 0x176   : > { %v1122_v11 = vpop.f32.mrf.mxu0  ;;  %v1227_v21 = vpop.f32.mrf.mxu1 }
 0x177   : > { %1255 = vst.msk [vmem:[#allocation2 + $0x28] sm:$0xff] %vm1249_vm2, %v1234_v7  ;;  %v1228_v10 = vadd.f32 %v1227_v21, %v1111_v35  ;;  %v1123_v4 = vadd.f32 %v1122_v11, %v996_v22  ;;  %v12975_v7 = vmov 0.0  }
 0x178   : > { %v9371_v20 = vpop.f32.mrf.mxu1  ;;  %v1341_v32 = vpop.f32.mrf.mxu0  ;;  %v1262_v60 = vld [vmem:[#allocation2] sm:$0xff] }
 0x179   : > { %1254 = vst.msk [vmem:[#allocation2 + $0x20] sm:$0xff] %vm1249_vm2, %v1228_v10  ;;  %v1246_v37 = vadd.f32 %v9371_v20, %v1129_v59  ;;  %v12976_v59 = vld [vmem:[#allocation18_spill] sm:$0xff]  ;;  %v12977_v10 = vld [vmem:[#allocation19_spill] sm:$0xff] }
 0x17a   : > { %v1239_v16 = vpop.f32.mrf.mxu1  ;;  %v9382_v19 = vpop.f32.mrf.mxu0 }
 0x17b   : > { %1257 = vst.msk [vmem:[#allocation2 + $0x38] sm:$0xff] %vm1249_vm2, %v1246_v37  ;;  %v1240_v17 = vadd.f32 %v1239_v16, %v1123_v4 }
 0x17c   : > { %v1432_v42 = vpop.f32.mrf.mxu1 }
 0x17d   : > { %1256 = vst.msk [vmem:[#allocation2 + $0x30] sm:$0xff] %vm1249_vm2, %v1240_v17  ;;  %v1433_v45 = vadd.f32 %v1432_v42, %v1341_v32  ;;  %vm6855_vm2 = vcmask 64512  }
 0x17e   : > { %v9393_v43 = vpop.f32.mrf.mxu1 }
 0x180   : > { %v1512_v41 = vpop.f32.mrf.mxu0 }
 0x181   : > { %v1513_v48 = vadd.f32 %v1512_v41, %v1433_v45 }
 0x182   : > { %v9404_v44 = vpop.f32.mrf.mxu0 }
 0x186   : > { %v1589_v6 = vpop.f32.mrf.mxu1 }
 0x187   : > { %v1590_v12 = vadd.f32 %v1589_v6, %v1513_v48 }
 0x188   : > { %v9415_v47 = vpop.f32.mrf.mxu1 }
 0x189   : > { %v1672_v56 = vpop.f32.mrf.mxu0 }
 0x18a   : > { %v1673_v49 = vadd.f32 %v1672_v56, %v1590_v12 }
 0x18b   : > { %v9426_v46 = vpop.f32.mrf.mxu0 }
 0x190   : > { %v1747_v58 = vpop.f32.mrf.mxu1 }
 0x191   : > { %v1748_v13 = vadd.f32 %v1747_v58, %v1673_v49  ;;  %v1788_v49 = vld [vmem:[#allocation2 + $0x8] sm:$0xff] }
 0x192   : > { %v9437_v14 = vpop.f32.mrf.mxu1 }
 0x193   : > { %v1762_v51 = vadd.f32 %v11317_v61, %v1748_v13  ;;  %v1751_v50 = vadd.f32 %v1748_v13, %v1262_v60 }
 0x195   : > { %1764 = vrot.lane.b32.xlu0 %v1762_v51, %s10758_s14  ;;  %v8658_v52 = vmul.f32 -1.442695, %v1751_v50 }
 0x197   : > { %10516 = vpow2.f32 %v8658_v52 }
 0x1a4   : > { %v10517_v53 = vpop.eup %10516 }
 0x1a5   : > { %v1755_v0 = vadd.f32 1.0, %v10517_v53 }
 0x1a7   : > { %10518 = vrcp.f32 %v1755_v0 }
 0x1b4   : > { %v10519_v26 = vpop.eup %10518 }
 0x1b5   : > { %v1774_v63 = vsub.f32 1.0, %v10519_v26  ;;  %v1780_v2 = vmul.f32 0.0, %v10519_v26 }
 0x207   : > { %v1765_v31 = vpop.permute.xlu0 %1764 }
 0x208   : > { %v1767_v30 = vmul.f32 %v10519_v26, %v1765_v31 }
 0x20a   : > { %1769 = vrot.lane.b32.xlu1 %v1767_v30, %s10758_s14 }
 0x27c   : > { %v1770_v28 = vpop.permute.xlu1 %1769 }
 0x27d   : > { %v1772_v29 = vadd.f32 %v1770_v28, %v1262_v60 }
 0x27f   : > { %10520 = vtanh.f32 %v1772_v29 }
 0x28c   : > { %v10521_v55 = vpop.eup %10520 }
 0x28d   : > { %1776 = vrot.lane.b32.xlu1 %v10521_v55, %s10761_s15 }
 0x2ff   : > { %v1777_v1 = vpop.permute.xlu1 %1776 }
 0x300   : > { %v1779_v8 = vmul.f32 %v1777_v1, %v1774_v63 }
 0x302   : > { %v11323_v34 = vadd.f32 %v1780_v2, %v1779_v8 }
 0x304   : > { %1783 = vrot.lane.b32.xlu0 %v11323_v34, %s10761_s15 }
 0x376   : > { %v1784_v54 = vpop.permute.xlu0 %1783 }
 0x377   : > { %1786 = vst.msk [vmem:[#allocation3] sm:$0xff] %vm438_vm0, %v1784_v54  ;;  %v1789_v57 = vsel %vm438_vm0, %v1784_v54, 0 }
 0x378   : > { %v1860_v62 = vand.u32 4294901760, %v1789_v57 }
 0x37a   : > { %v1861_v35 = vsub.f32 %v1789_v57, %v1860_v62  ;;  %9458 = vmatmul.mubr.f32.vlgmr.msra.gmra.mxu1 %v1860_v62 }
 0x37b   : > { %9472 = vmatpush3.msra.mxu1 %v11121_v18  ;;  %9479 = vmatprep.mubr.msk.f32.mxu1 %vm10760_vm1, %v12975_v7 }
 0x37c   : > { %v1862_v11 = vand.u32 4294901760, %v1861_v35  ;;  %9473 = vmatprep.subr.mxu1 %v12975_v7 }
 0x37d   : > { %9474 = vmatpush3.msra.mxu1 %v11136_v23 }
 0x37e   : > { %v1863_v21 = vsub.f32 %v1861_v35, %v1862_v11  ;;  %9475 = vmatprep.subr.mxu1 %v12975_v7 }
 0x37f   : > { %9476 = vmatpush3.msra.mxu1 %v11157_v25 }
 0x380   : > { %9477 = vmatprep.subr.mxu1 %v12975_v7  ;;  %v1864_v22 = vand.u32 4294901760, %v1863_v21 }
 0x381   : > { %9478 = vmatpush3.msra.mxu1 %v11171_v33 }
 0x382   : > { %9480 = vmatmul.mubr.f32.vlgmr.msra.gmra.mxu1 %v1862_v11  ;;  %9493 = vmatprep.subr.mxu1 %v12975_v7 }
 0x383   : > { %9447 = vmatmul.mubr.f32.vlgmr.msra.gmra.mxu0 %v1864_v22  ;;  %9494 = vmatpush3.msra.mxu1 %v11121_v18 }
 0x384   : > { %9461 = vmatpush3.msra.mxu0 %v11134_v38  ;;  %9495 = vmatprep.subr.mxu1 %v12975_v7 }
 0x385   : > { %9462 = vmatprep.subr.mxu0 %v12975_v7  ;;  %9496 = vmatpush3.msra.mxu1 %v11136_v23 }
 0x386   : > { %9463 = vmatpush3.msra.mxu0 %v11152_v24  ;;  %9497 = vmatprep.subr.mxu1 %v12975_v7 }
 0x387   : > { %9464 = vmatprep.subr.mxu0 %v12975_v7  ;;  %9498 = vmatpush3.msra.mxu1 %v11157_v25 }
 0x388   : > { %9465 = vmatpush3.msra.mxu0 %v11177_v36  ;;  %9499 = vmatprep.subr.mxu1 %v12975_v7 }
 0x389   : > { %9466 = vmatprep.subr.mxu0 %v12975_v7  ;;  %9468 = vmatprep.mubr.msk.f32.mxu0 %vm10760_vm1, %v12975_v7 }
 0x38a   : > { %9467 = vmatpush3.msra.mxu0 %v11191_v39  ;;  %9500 = vmatpush3.msra.mxu1 %v11171_v33 }
 0x38b   : > { %9501 = vmatprep.mubr.msk.f32.mxu1 %vm10760_vm1, %v12975_v7  ;;  %9469 = vmatmul.mubr.f32.vlgmr.msra.gmra.mxu0 %v1861_v35 }
 0x38c   : > { %9482 = vmatprep.subr.mxu0 %v12975_v7  ;;  %9502 = vmatmul.mubr.f32.vlgmr.msra.gmra.mxu1 %v1860_v62 }
 0x38d   : > { %9483 = vmatpush3.msra.mxu0 %v11149_v3  ;;  %9490 = vmatprep.mubr.msk.f32.mxu0 %vm10760_vm1, %v12975_v7 }
 0x38e   : > { %9484 = vmatprep.subr.mxu0 %v12975_v7  ;;  %9515 = vmatprep.subr.mxu1 %v12975_v7 }
 0x38f   : > { %9485 = vmatpush3.msra.mxu0 %v11169_v27  ;;  %9516 = vmatpush3.msra.mxu1 %v11186_v5 }
 0x390   : > { %9486 = vmatprep.subr.mxu0 %v12975_v7  ;;  %9517 = vmatprep.subr.mxu1 %v12975_v7 }
 0x391   : > { %9487 = vmatpush3.msra.mxu0 %v11196_v40  ;;  %9518 = vmatpush3.msra.mxu1 %v11204_v9 }
 0x392   : > { %9488 = vmatprep.subr.mxu0 %v12975_v7  ;;  %9519 = vmatprep.subr.mxu1 %v12975_v7 }
 0x393   : > { %9489 = vmatpush3.msra.mxu0 %v11207_v15  ;;  %9520 = vmatpush3.msra.mxu1 %v12976_v59 }
 0x394   : > { %9491 = vmatmul.mubr.f32.vlgmr.msra.gmra.mxu0 %v1860_v62  ;;  %9521 = vmatprep.subr.mxu1 %v12975_v7 }
 0x395   : > { %9522 = vmatpush3.msra.mxu1 %v12977_v10  ;;  %9504 = vmatprep.subr.mxu0 %v12975_v7 }
 0x396   : > { %9523 = vmatprep.mubr.msk.f32.mxu1 %vm10760_vm1, %v12975_v7  ;;  %9537 = vmatprep.subr.mxu1 %v12975_v7 }
 0x397   : > { %9505 = vmatpush3.msra.mxu0 %v11121_v18  ;;  %9512 = vmatprep.mubr.msk.f32.mxu0 %vm10760_vm1, %v12975_v7 }
 0x398   : > { %9506 = vmatprep.subr.mxu0 %v12975_v7 }
 0x399   : > { %9507 = vmatpush3.msra.mxu0 %v11136_v23 }
 0x39a   : > { %9508 = vmatprep.subr.mxu0 %v12975_v7 }
 0x39b   : > { %9509 = vmatpush3.msra.mxu0 %v11157_v25 }
 0x39c   : > { %9510 = vmatprep.subr.mxu0 %v12975_v7 }
 0x39d   : > { %9511 = vmatpush3.msra.mxu0 %v11171_v33 }
 0x39e   : > { %9526 = vmatprep.subr.mxu0 %v12975_v7 }
 0x43a   : > { %v1957_v20 = vpop.f32.mrf.mxu1 }
 0x43c   : > { %v9459_v32 = vpop.f32.mrf.mxu1 }
 0x442   : > { %v2114_v4 = vpop.f32.mrf.mxu1 }
 0x443   : > { %v1866_v37 = vpop.f32.mrf.mxu0 }
 0x444   : > { %v9481_v16 = vpop.f32.mrf.mxu1  ;;  %v1958_v43 = vadd.f32 %v1957_v20, %v1866_v37 }
 0x445   : > { %v9448_v19 = vpop.f32.mrf.mxu0 }
 0x44b   : > { %v2037_v17 = vpop.f32.mrf.mxu0 }
 0x44c   : > { %v2272_v42 = vpop.f32.mrf.mxu1  ;;  %v2038_v45 = vadd.f32 %v2037_v17, %v1958_v43 }
 0x44d   : > { %v9470_v41 = vpop.f32.mrf.mxu0 }
 0x44e   : > { %v9503_v44 = vpop.f32.mrf.mxu1  ;;  %v2115_v6 = vadd.f32 %v2114_v4, %v2038_v45 }
 0x454   : > { %v2197_v47 = vpop.f32.mrf.mxu0 }
 0x455   : > { %v2198_v48 = vadd.f32 %v2197_v47, %v2115_v6 }
 0x456   : > { %v9492_v56 = vpop.f32.mrf.mxu0 }
 0x457   : > { %v2273_v12 = vadd.f32 %v2272_v42, %v2198_v48  ;;  %v2309_v48 = vld [vmem:[#allocation2 + $0x10] sm:$0xff] }
 0x459   : > { %v2283_v46 = vadd.f32 %v2273_v12, %v11317_v61  ;;  %v2276_v58 = vadd.f32 %v2273_v12, %v1788_v49 }
 0x45b   : > { %2285 = vrot.lane.b32.xlu1 %v2283_v46, %s10758_s14  ;;  %v8659_v13 = vmul.f32 -1.442695, %v2276_v58 }
 0x45d   : > { %10522 = vpow2.f32 %v8659_v13 }
 0x46a   : > { %v10523_v14 = vpop.eup %10522 }
 0x46b   : > { %v2280_v51 = vadd.f32 1.0, %v10523_v14 }
 0x46d   : > { %10524 = vrcp.f32 %v2280_v51 }
 0x47a   : > { %v10525_v60 = vpop.eup %10524 }
 0x47b   : > { %v2295_v31 = vsub.f32 1.0, %v10525_v60  ;;  %v2301_v28 = vmul.f32 %v10525_v60, %v11323_v34 }
 0x4cd   : > { %v2286_v50 = vpop.permute.xlu1 %2285 }
 0x4ce   : > { %v2288_v52 = vmul.f32 %v10525_v60, %v2286_v50 }
 0x4d0   : > { %2290 = vrot.lane.b32.xlu0 %v2288_v52, %s10758_s14 }
 0x542   : > { %v2291_v53 = vpop.permute.xlu0 %2290 }
 0x543   : > { %v2293_v0 = vadd.f32 %v2291_v53, %v1788_v49 }
 0x545   : > { %10526 = vtanh.f32 %v2293_v0 }
 0x552   : > { %v10527_v26 = vpop.eup %10526 }
 0x553   : > { %2297 = vrot.lane.b32.xlu1 %v10527_v26, %s10761_s15 }
 0x5c5   : > { %v2298_v30 = vpop.permute.xlu1 %2297 }
 0x5c6   : > { %v2300_v29 = vmul.f32 %v2298_v30, %v2295_v31 }
 0x5c8   : > { %v11394_v55 = vadd.f32 %v2301_v28, %v2300_v29 }
 0x5ca   : > { %2304 = vrot.lane.b32.xlu0 %v11394_v55, %s10761_s15 }
 0x63c   : > { %v2305_v63 = vpop.permute.xlu0 %2304 }
 0x63d   : > { %2307 = vst.msk [vmem:[#allocation3 + $0x8] sm:$0xff] %vm438_vm0, %v2305_v63  ;;  %v2310_v1 = vsel %vm438_vm0, %v2305_v63, 0 }
 0x63e   : > { %v2381_v2 = vand.u32 4294901760, %v2310_v1 }
 0x640   : > { %v2382_v8 = vsub.f32 %v2310_v1, %v2381_v2  ;;  %9524 = vmatmul.mubr.f32.vlgmr.msra.gmra.mxu1 %v2381_v2 }
 0x641   : > { %9538 = vmatpush3.msra.mxu1 %v11121_v18  ;;  %9545 = vmatprep.mubr.msk.f32.mxu1 %vm10760_vm1, %v12975_v7 }
 0x642   : > { %v2383_v54 = vand.u32 4294901760, %v2382_v8  ;;  %9539 = vmatprep.subr.mxu1 %v12975_v7 }
 0x643   : > { %9540 = vmatpush3.msra.mxu1 %v11136_v23 }
 0x644   : > { %v2384_v57 = vsub.f32 %v2382_v8, %v2383_v54  ;;  %9541 = vmatprep.subr.mxu1 %v12975_v7 }
 0x645   : > { %9542 = vmatpush3.msra.mxu1 %v11157_v25 }
 0x646   : > { %9543 = vmatprep.subr.mxu1 %v12975_v7  ;;  %v2385_v62 = vand.u32 4294901760, %v2384_v57 }
 0x647   : > { %9544 = vmatpush3.msra.mxu1 %v11171_v33 }
 0x648   : > { %9546 = vmatmul.mubr.f32.vlgmr.msra.gmra.mxu1 %v2383_v54  ;;  %9559 = vmatprep.subr.mxu1 %v12975_v7 }
 0x649   : > { %9513 = vmatmul.mubr.f32.vlgmr.msra.gmra.mxu0 %v2385_v62  ;;  %9560 = vmatpush3.msra.mxu1 %v11121_v18 }
 0x64a   : > { %9527 = vmatpush3.msra.mxu0 %v11134_v38  ;;  %9561 = vmatprep.subr.mxu1 %v12975_v7 }
 0x64b   : > { %9528 = vmatprep.subr.mxu0 %v12975_v7  ;;  %9562 = vmatpush3.msra.mxu1 %v11136_v23 }
 0x64c   : > { %9529 = vmatpush3.msra.mxu0 %v11152_v24  ;;  %9563 = vmatprep.subr.mxu1 %v12975_v7 }
 0x64d   : > { %9530 = vmatprep.subr.mxu0 %v12975_v7  ;;  %9564 = vmatpush3.msra.mxu1 %v11157_v25 }
 0x64e   : > { %9531 = vmatpush3.msra.mxu0 %v11177_v36  ;;  %9565 = vmatprep.subr.mxu1 %v12975_v7 }
 0x64f   : > { %9532 = vmatprep.subr.mxu0 %v12975_v7  ;;  %9534 = vmatprep.mubr.msk.f32.mxu0 %vm10760_vm1, %v12975_v7 }
 0x650   : > { %9533 = vmatpush3.msra.mxu0 %v11191_v39  ;;  %9566 = vmatpush3.msra.mxu1 %v11171_v33 }
 0x651   : > { %9567 = vmatprep.mubr.msk.f32.mxu1 %vm10760_vm1, %v12975_v7  ;;  %9535 = vmatmul.mubr.f32.vlgmr.msra.gmra.mxu0 %v2382_v8 }
 0x652   : > { %9548 = vmatprep.subr.mxu0 %v12975_v7  ;;  %9568 = vmatmul.mubr.f32.vlgmr.msra.gmra.mxu1 %v2381_v2 }
 0x653   : > { %9549 = vmatpush3.msra.mxu0 %v11149_v3  ;;  %9556 = vmatprep.mubr.msk.f32.mxu0 %vm10760_vm1, %v12975_v7 }
 0x654   : > { %9550 = vmatprep.subr.mxu0 %v12975_v7  ;;  %9581 = vmatprep.subr.mxu1 %v12975_v7 }
 0x655   : > { %9551 = vmatpush3.msra.mxu0 %v11169_v27  ;;  %9582 = vmatpush3.msra.mxu1 %v11186_v5 }
 0x656   : > { %9552 = vmatprep.subr.mxu0 %v12975_v7  ;;  %9583 = vmatprep.subr.mxu1 %v12975_v7 }
 0x657   : > { %9553 = vmatpush3.msra.mxu0 %v11196_v40  ;;  %9584 = vmatpush3.msra.mxu1 %v11204_v9 }
 0x658   : > { %9554 = vmatprep.subr.mxu0 %v12975_v7  ;;  %9585 = vmatprep.subr.mxu1 %v12975_v7 }
 0x659   : > { %9555 = vmatpush3.msra.mxu0 %v11207_v15  ;;  %9586 = vmatpush3.msra.mxu1 %v12976_v59 }
 0x65a   : > { %9557 = vmatmul.mubr.f32.vlgmr.msra.gmra.mxu0 %v2381_v2  ;;  %9587 = vmatprep.subr.mxu1 %v12975_v7 }
 0x65b   : > { %9588 = vmatpush3.msra.mxu1 %v12977_v10  ;;  %9570 = vmatprep.subr.mxu0 %v12975_v7 }
 0x65c   : > { %9589 = vmatprep.mubr.msk.f32.mxu1 %vm10760_vm1, %v12975_v7  ;;  %9603 = vmatprep.subr.mxu1 %v12975_v7 }
 0x65d   : > { %9571 = vmatpush3.msra.mxu0 %v11121_v18  ;;  %9578 = vmatprep.mubr.msk.f32.mxu0 %vm10760_vm1, %v12975_v7 }
 0x65e   : > { %9572 = vmatprep.subr.mxu0 %v12975_v7 }
 0x65f   : > { %9573 = vmatpush3.msra.mxu0 %v11136_v23 }
 0x660   : > { %9574 = vmatprep.subr.mxu0 %v12975_v7 }
 0x661   : > { %9575 = vmatpush3.msra.mxu0 %v11157_v25 }
 0x662   : > { %9576 = vmatprep.subr.mxu0 %v12975_v7 }
 0x663   : > { %9577 = vmatpush3.msra.mxu0 %v11171_v33 }
 0x664   : > { %9592 = vmatprep.subr.mxu0 %v12975_v7 }
 0x700   : > { %v2478_v35 = vpop.f32.mrf.mxu1 }
 0x702   : > { %v9525_v11 = vpop.f32.mrf.mxu1 }
 0x708   : > { %v2635_v21 = vpop.f32.mrf.mxu1 }
 0x709   : > { %v2387_v22 = vpop.f32.mrf.mxu0 }
 0x70a   : > { %v9547_v20 = vpop.f32.mrf.mxu1  ;;  %v2479_v16 = vadd.f32 %v2478_v35, %v2387_v22 }
 0x70b   : > { %v9514_v32 = vpop.f32.mrf.mxu0 }
 0x711   : > { %v2558_v4 = vpop.f32.mrf.mxu0 }
 0x712   : > { %v2793_v37 = vpop.f32.mrf.mxu1  ;;  %v2559_v42 = vadd.f32 %v2558_v4, %v2479_v16 }
 0x713   : > { %v9536_v19 = vpop.f32.mrf.mxu0 }
 0x714   : > { %v9569_v17 = vpop.f32.mrf.mxu1  ;;  %v2636_v43 = vadd.f32 %v2635_v21, %v2559_v42 }
 0x71a   : > { %v2718_v41 = vpop.f32.mrf.mxu0 }
 0x71b   : > { %v2719_v44 = vadd.f32 %v2718_v41, %v2636_v43 }
 0x71c   : > { %v9558_v45 = vpop.f32.mrf.mxu0 }
 0x71d   : > { %v2794_v6 = vadd.f32 %v2793_v37, %v2719_v44  ;;  %v2830_v45 = vld [vmem:[#allocation2 + $0x18] sm:$0xff] }
 0x71f   : > { %v2804_v47 = vadd.f32 %v2794_v6, %v11317_v61  ;;  %v2797_v56 = vadd.f32 %v2794_v6, %v2309_v48 }
 0x721   : > { %2806 = vrot.lane.b32.xlu1 %v2804_v47, %s10758_s14  ;;  %v8660_v12 = vmul.f32 -1.442695, %v2797_v56 }
 0x723   : > { %10528 = vpow2.f32 %v8660_v12 }
 0x730   : > { %v10529_v46 = vpop.eup %10528 }
 0x731   : > { %v2801_v49 = vadd.f32 1.0, %v10529_v46 }
 0x733   : > { %10530 = vrcp.f32 %v2801_v49 }
 0x740   : > { %v10531_v58 = vpop.eup %10530 }
 0x741   : > { %v2816_v52 = vsub.f32 1.0, %v10531_v58  ;;  %v2822_v0 = vmul.f32 %v10531_v58, %v11394_v55 }
 0x793   : > { %v2807_v13 = vpop.permute.xlu1 %2806 }
 0x794   : > { %v2809_v14 = vmul.f32 %v10531_v58, %v2807_v13 }
 0x796   : > { %2811 = vrot.lane.b32.xlu0 %v2809_v14, %s10758_s14 }
 0x808   : > { %v2812_v51 = vpop.permute.xlu0 %2811 }
 0x809   : > { %v2814_v60 = vadd.f32 %v2812_v51, %v2309_v48 }
 0x80b   : > { %10532 = vtanh.f32 %v2814_v60 }
 0x818   : > { %v10533_v50 = vpop.eup %10532 }
 0x819   : > { %2818 = vrot.lane.b32.xlu1 %v10533_v50, %s10761_s15 }
 0x88b   : > { %v2819_v53 = vpop.permute.xlu1 %2818 }
 0x88c   : > { %v2821_v26 = vmul.f32 %v2819_v53, %v2816_v52 }
 0x88e   : > { %v11465_v31 = vadd.f32 %v2822_v0, %v2821_v26 }
 0x890   : > { %2825 = vrot.lane.b32.xlu0 %v11465_v31, %s10761_s15 }
 0x902   : > { %v2826_v30 = vpop.permute.xlu0 %2825 }
 0x903   : > { %2828 = vst.msk [vmem:[#allocation3 + $0x10] sm:$0xff] %vm438_vm0, %v2826_v30  ;;  %v2831_v28 = vsel %vm438_vm0, %v2826_v30, 0 }
 0x904   : > { %v2902_v29 = vand.u32 4294901760, %v2831_v28 }
 0x906   : > { %v2903_v63 = vsub.f32 %v2831_v28, %v2902_v29  ;;  %9590 = vmatmul.mubr.f32.vlgmr.msra.gmra.mxu1 %v2902_v29 }
 0x907   : > { %9604 = vmatpush3.msra.mxu1 %v11121_v18  ;;  %9611 = vmatprep.mubr.msk.f32.mxu1 %vm10760_vm1, %v12975_v7 }
 0x908   : > { %v2904_v1 = vand.u32 4294901760, %v2903_v63  ;;  %9605 = vmatprep.subr.mxu1 %v12975_v7 }
 0x909   : > { %9606 = vmatpush3.msra.mxu1 %v11136_v23 }
 0x90a   : > { %v2905_v2 = vsub.f32 %v2903_v63, %v2904_v1  ;;  %9607 = vmatprep.subr.mxu1 %v12975_v7 }
 0x90b   : > { %9608 = vmatpush3.msra.mxu1 %v11157_v25 }
 0x90c   : > { %9609 = vmatprep.subr.mxu1 %v12975_v7  ;;  %v2906_v8 = vand.u32 4294901760, %v2905_v2 }
 0x90d   : > { %9610 = vmatpush3.msra.mxu1 %v11171_v33 }
 0x90e   : > { %9612 = vmatmul.mubr.f32.vlgmr.msra.gmra.mxu1 %v2904_v1  ;;  %9625 = vmatprep.subr.mxu1 %v12975_v7 }
 0x90f   : > { %9579 = vmatmul.mubr.f32.vlgmr.msra.gmra.mxu0 %v2906_v8  ;;  %9626 = vmatpush3.msra.mxu1 %v11121_v18 }
 0x910   : > { %9593 = vmatpush3.msra.mxu0 %v11134_v38  ;;  %9627 = vmatprep.subr.mxu1 %v12975_v7 }
 0x911   : > { %9594 = vmatprep.subr.mxu0 %v12975_v7  ;;  %9628 = vmatpush3.msra.mxu1 %v11136_v23 }
 0x912   : > { %9595 = vmatpush3.msra.mxu0 %v11152_v24  ;;  %9629 = vmatprep.subr.mxu1 %v12975_v7 }
 0x913   : > { %9596 = vmatprep.subr.mxu0 %v12975_v7  ;;  %9630 = vmatpush3.msra.mxu1 %v11157_v25 }
 0x914   : > { %9597 = vmatpush3.msra.mxu0 %v11177_v36  ;;  %9631 = vmatprep.subr.mxu1 %v12975_v7 }
 0x915   : > { %9598 = vmatprep.subr.mxu0 %v12975_v7  ;;  %9600 = vmatprep.mubr.msk.f32.mxu0 %vm10760_vm1, %v12975_v7 }
 0x916   : > { %9599 = vmatpush3.msra.mxu0 %v11191_v39  ;;  %9632 = vmatpush3.msra.mxu1 %v11171_v33 }
 0x917   : > { %9633 = vmatprep.mubr.msk.f32.mxu1 %vm10760_vm1, %v12975_v7  ;;  %9601 = vmatmul.mubr.f32.vlgmr.msra.gmra.mxu0 %v2903_v63 }
 0x918   : > { %9614 = vmatprep.subr.mxu0 %v12975_v7  ;;  %9634 = vmatmul.mubr.f32.vlgmr.msra.gmra.mxu1 %v2902_v29 }
 0x919   : > { %9615 = vmatpush3.msra.mxu0 %v11149_v3  ;;  %9622 = vmatprep.mubr.msk.f32.mxu0 %vm10760_vm1, %v12975_v7 }
 0x91a   : > { %9616 = vmatprep.subr.mxu0 %v12975_v7  ;;  %9647 = vmatprep.subr.mxu1 %v12975_v7 }
 0x91b   : > { %9617 = vmatpush3.msra.mxu0 %v11169_v27  ;;  %9648 = vmatpush3.msra.mxu1 %v11186_v5 }
 0x91c   : > { %9618 = vmatprep.subr.mxu0 %v12975_v7  ;;  %9649 = vmatprep.subr.mxu1 %v12975_v7 }
 0x91d   : > { %9619 = vmatpush3.msra.mxu0 %v11196_v40  ;;  %9650 = vmatpush3.msra.mxu1 %v11204_v9 }
 0x91e   : > { %9620 = vmatprep.subr.mxu0 %v12975_v7  ;;  %9651 = vmatprep.subr.mxu1 %v12975_v7 }
 0x91f   : > { %9621 = vmatpush3.msra.mxu0 %v11207_v15  ;;  %9652 = vmatpush3.msra.mxu1 %v12976_v59 }
 0x920   : > { %9623 = vmatmul.mubr.f32.vlgmr.msra.gmra.mxu0 %v2902_v29  ;;  %9653 = vmatprep.subr.mxu1 %v12975_v7 }
 0x921   : > { %9654 = vmatpush3.msra.mxu1 %v12977_v10  ;;  %9636 = vmatprep.subr.mxu0 %v12975_v7 }
 0x922   : > { %9655 = vmatprep.mubr.msk.f32.mxu1 %vm10760_vm1, %v12975_v7  ;;  %9669 = vmatprep.subr.mxu1 %v12975_v7 }
 0x923   : > { %9637 = vmatpush3.msra.mxu0 %v11121_v18  ;;  %9644 = vmatprep.mubr.msk.f32.mxu0 %vm10760_vm1, %v12975_v7 }
 0x924   : > { %9638 = vmatprep.subr.mxu0 %v12975_v7 }
 0x925   : > { %9639 = vmatpush3.msra.mxu0 %v11136_v23 }
 0x926   : > { %9640 = vmatprep.subr.mxu0 %v12975_v7 }
 0x927   : > { %9641 = vmatpush3.msra.mxu0 %v11157_v25 }
 0x928   : > { %9642 = vmatprep.subr.mxu0 %v12975_v7 }
 0x929   : > { %9643 = vmatpush3.msra.mxu0 %v11171_v33 }
 0x92a   : > { %9658 = vmatprep.subr.mxu0 %v12975_v7 }
 0x9c6   : > { %v2999_v54 = vpop.f32.mrf.mxu1 }
 0x9c8   : > { %v9591_v57 = vpop.f32.mrf.mxu1 }
 0x9ce   : > { %v3156_v62 = vpop.f32.mrf.mxu1 }
 0x9cf   : > { %v2908_v35 = vpop.f32.mrf.mxu0 }
 0x9d0   : > { %v9613_v11 = vpop.f32.mrf.mxu1  ;;  %v3000_v32 = vadd.f32 %v2999_v54, %v2908_v35 }
 0x9d1   : > { %v9580_v21 = vpop.f32.mrf.mxu0 }
 0x9d7   : > { %v3079_v22 = vpop.f32.mrf.mxu0 }
 0x9d8   : > { %v3314_v20 = vpop.f32.mrf.mxu1  ;;  %v3080_v16 = vadd.f32 %v3079_v22, %v3000_v32 }
 0x9d9   : > { %v9602_v4 = vpop.f32.mrf.mxu0 }
 0x9da   : > { %v9635_v37 = vpop.f32.mrf.mxu1  ;;  %v3157_v19 = vadd.f32 %v3156_v62, %v3080_v16 }
 0x9e0   : > { %v3239_v17 = vpop.f32.mrf.mxu0 }
 0x9e1   : > { %v3240_v42 = vadd.f32 %v3239_v17, %v3157_v19 }
 0x9e2   : > { %v9624_v43 = vpop.f32.mrf.mxu0 }
 0x9e3   : > { %v3315_v41 = vadd.f32 %v3314_v20, %v3240_v42 }
 0x9e5   : > { %v3325_v44 = vadd.f32 %v3315_v41, %v11317_v61  ;;  %v3318_v6 = vadd.f32 %v3315_v41, %v2830_v45  ;;  %v3351_v41 = vld [vmem:[#allocation2 + $0x20] sm:$0xff] }
 0x9e7   : > { %3327 = vrot.lane.b32.xlu1 %v3325_v44, %s10758_s14  ;;  %v8661_v47 = vmul.f32 -1.442695, %v3318_v6 }
 0x9e9   : > { %10534 = vpow2.f32 %v8661_v47 }
 0x9f6   : > { %v10535_v48 = vpop.eup %10534 }
 0x9f7   : > { %v3322_v56 = vadd.f32 1.0, %v10535_v48 }
 0x9f9   : > { %10536 = vrcp.f32 %v3322_v56 }
 0xa06   : > { %v10537_v12 = vpop.eup %10536 }
 0xa07   : > { %v3337_v51 = vsub.f32 1.0, %v10537_v12  ;;  %v3343_v50 = vmul.f32 %v10537_v12, %v11465_v31 }
 0xa59   : > { %v3328_v46 = vpop.permute.xlu1 %3327 }
 0xa5a   : > { %v3330_v49 = vmul.f32 %v10537_v12, %v3328_v46 }
 0xa5c   : > { %3332 = vrot.lane.b32.xlu0 %v3330_v49, %s10758_s14 }
 0xace   : > { %v3333_v58 = vpop.permute.xlu0 %3332 }
 0xacf   : > { %v3335_v13 = vadd.f32 %v3333_v58, %v2830_v45 }
 0xad1   : > { %10538 = vtanh.f32 %v3335_v13 }
 0xade   : > { %v10539_v14 = vpop.eup %10538 }
 0xadf   : > { %3339 = vrot.lane.b32.xlu1 %v10539_v14, %s10761_s15 }
 0xb51   : > { %v3340_v60 = vpop.permute.xlu1 %3339 }
 0xb52   : > { %v3342_v52 = vmul.f32 %v3340_v60, %v3337_v51 }
 0xb54   : > { %v11536_v53 = vadd.f32 %v3343_v50, %v3342_v52 }
 0xb56   : > { %3346 = vrot.lane.b32.xlu0 %v11536_v53, %s10761_s15 }
 0xbc8   : > { %v3347_v0 = vpop.permute.xlu0 %3346 }
 0xbc9   : > { %3349 = vst.msk [vmem:[#allocation3 + $0x18] sm:$0xff] %vm438_vm0, %v3347_v0  ;;  %v3352_v26 = vsel %vm438_vm0, %v3347_v0, 0 }
 0xbca   : > { %v3423_v30 = vand.u32 4294901760, %v3352_v26 }
 0xbcc   : > { %v3424_v28 = vsub.f32 %v3352_v26, %v3423_v30  ;;  %9656 = vmatmul.mubr.f32.vlgmr.msra.gmra.mxu1 %v3423_v30 }
 0xbcd   : > { %9670 = vmatpush3.msra.mxu1 %v11121_v18  ;;  %9677 = vmatprep.mubr.msk.f32.mxu1 %vm10760_vm1, %v12975_v7 }
 0xbce   : > { %v3425_v29 = vand.u32 4294901760, %v3424_v28  ;;  %9671 = vmatprep.subr.mxu1 %v12975_v7 }
 0xbcf   : > { %9672 = vmatpush3.msra.mxu1 %v11136_v23 }
 0xbd0   : > { %v3426_v63 = vsub.f32 %v3424_v28, %v3425_v29  ;;  %9673 = vmatprep.subr.mxu1 %v12975_v7 }
 0xbd1   : > { %9674 = vmatpush3.msra.mxu1 %v11157_v25 }
 0xbd2   : > { %9675 = vmatprep.subr.mxu1 %v12975_v7  ;;  %v3427_v1 = vand.u32 4294901760, %v3426_v63 }
 0xbd3   : > { %9676 = vmatpush3.msra.mxu1 %v11171_v33 }
 0xbd4   : > { %9678 = vmatmul.mubr.f32.vlgmr.msra.gmra.mxu1 %v3425_v29  ;;  %9691 = vmatprep.subr.mxu1 %v12975_v7 }
 0xbd5   : > { %9645 = vmatmul.mubr.f32.vlgmr.msra.gmra.mxu0 %v3427_v1  ;;  %9692 = vmatpush3.msra.mxu1 %v11121_v18 }
 0xbd6   : > { %9659 = vmatpush3.msra.mxu0 %v11134_v38  ;;  %9693 = vmatprep.subr.mxu1 %v12975_v7 }
 0xbd7   : > { %9660 = vmatprep.subr.mxu0 %v12975_v7  ;;  %9694 = vmatpush3.msra.mxu1 %v11136_v23 }
 0xbd8   : > { %9661 = vmatpush3.msra.mxu0 %v11152_v24  ;;  %9695 = vmatprep.subr.mxu1 %v12975_v7 }
 0xbd9   : > { %9662 = vmatprep.subr.mxu0 %v12975_v7  ;;  %9696 = vmatpush3.msra.mxu1 %v11157_v25 }
 0xbda   : > { %9663 = vmatpush3.msra.mxu0 %v11177_v36  ;;  %9697 = vmatprep.subr.mxu1 %v12975_v7 }
 0xbdb   : > { %9664 = vmatprep.subr.mxu0 %v12975_v7  ;;  %9666 = vmatprep.mubr.msk.f32.mxu0 %vm10760_vm1, %v12975_v7 }
 0xbdc   : > { %9665 = vmatpush3.msra.mxu0 %v11191_v39  ;;  %9698 = vmatpush3.msra.mxu1 %v11171_v33 }
 0xbdd   : > { %9699 = vmatprep.mubr.msk.f32.mxu1 %vm10760_vm1, %v12975_v7  ;;  %9667 = vmatmul.mubr.f32.vlgmr.msra.gmra.mxu0 %v3424_v28 }
 0xbde   : > { %9680 = vmatprep.subr.mxu0 %v12975_v7  ;;  %9700 = vmatmul.mubr.f32.vlgmr.msra.gmra.mxu1 %v3423_v30 }
 0xbdf   : > { %9681 = vmatpush3.msra.mxu0 %v11149_v3  ;;  %9688 = vmatprep.mubr.msk.f32.mxu0 %vm10760_vm1, %v12975_v7 }
 0xbe0   : > { %9682 = vmatprep.subr.mxu0 %v12975_v7  ;;  %9713 = vmatprep.subr.mxu1 %v12975_v7 }
 0xbe1   : > { %9683 = vmatpush3.msra.mxu0 %v11169_v27  ;;  %9714 = vmatpush3.msra.mxu1 %v11186_v5 }
 0xbe2   : > { %9684 = vmatprep.subr.mxu0 %v12975_v7  ;;  %9715 = vmatprep.subr.mxu1 %v12975_v7 }
 0xbe3   : > { %9685 = vmatpush3.msra.mxu0 %v11196_v40  ;;  %9716 = vmatpush3.msra.mxu1 %v11204_v9 }
 0xbe4   : > { %9686 = vmatprep.subr.mxu0 %v12975_v7  ;;  %9717 = vmatprep.subr.mxu1 %v12975_v7 }
 0xbe5   : > { %9687 = vmatpush3.msra.mxu0 %v11207_v15  ;;  %9718 = vmatpush3.msra.mxu1 %v12976_v59 }
 0xbe6   : > { %9689 = vmatmul.mubr.f32.vlgmr.msra.gmra.mxu0 %v3423_v30  ;;  %9719 = vmatprep.subr.mxu1 %v12975_v7 }
 0xbe7   : > { %9720 = vmatpush3.msra.mxu1 %v12977_v10  ;;  %9702 = vmatprep.subr.mxu0 %v12975_v7 }
 0xbe8   : > { %9721 = vmatprep.mubr.msk.f32.mxu1 %vm10760_vm1, %v12975_v7  ;;  %9735 = vmatprep.subr.mxu1 %v12975_v7 }
 0xbe9   : > { %9703 = vmatpush3.msra.mxu0 %v11121_v18  ;;  %9710 = vmatprep.mubr.msk.f32.mxu0 %vm10760_vm1, %v12975_v7 }
 0xbea   : > { %9704 = vmatprep.subr.mxu0 %v12975_v7 }
 0xbeb   : > { %9705 = vmatpush3.msra.mxu0 %v11136_v23 }
 0xbec   : > { %9706 = vmatprep.subr.mxu0 %v12975_v7 }
 0xbed   : > { %9707 = vmatpush3.msra.mxu0 %v11157_v25 }
 0xbee   : > { %9708 = vmatprep.subr.mxu0 %v12975_v7 }
 0xbef   : > { %9709 = vmatpush3.msra.mxu0 %v11171_v33 }
 0xbf0   : > { %9724 = vmatprep.subr.mxu0 %v12975_v7 }
 0xc8c   : > { %v3520_v2 = vpop.f32.mrf.mxu1 }
 0xc8e   : > { %v9657_v8 = vpop.f32.mrf.mxu1 }
 0xc94   : > { %v3677_v54 = vpop.f32.mrf.mxu1 }
 0xc95   : > { %v3429_v57 = vpop.f32.mrf.mxu0 }
 0xc96   : > { %v9679_v62 = vpop.f32.mrf.mxu1  ;;  %v3521_v22 = vadd.f32 %v3520_v2, %v3429_v57 }
 0xc97   : > { %v9646_v35 = vpop.f32.mrf.mxu0 }
 0xc9d   : > { %v3600_v11 = vpop.f32.mrf.mxu0 }
 0xc9e   : > { %v3835_v21 = vpop.f32.mrf.mxu1  ;;  %v3601_v4 = vadd.f32 %v3600_v11, %v3521_v22 }
 0xc9f   : > { %v9668_v20 = vpop.f32.mrf.mxu0 }
 0xca0   : > { %v9701_v32 = vpop.f32.mrf.mxu1  ;;  %v3678_v37 = vadd.f32 %v3677_v54, %v3601_v4 }
 0xca6   : > { %v3760_v16 = vpop.f32.mrf.mxu0 }
 0xca7   : > { %v3761_v19 = vadd.f32 %v3760_v16, %v3678_v37 }
 0xca8   : > { %v9690_v17 = vpop.f32.mrf.mxu0 }
 0xca9   : > { %v3836_v42 = vadd.f32 %v3835_v21, %v3761_v19 }
 0xcab   : > { %v3846_v43 = vadd.f32 %v3836_v42, %v11317_v61  ;;  %v3839_v44 = vadd.f32 %v3836_v42, %v3351_v41 }
 0xcad   : > { %3848 = vrot.lane.b32.xlu1 %v3846_v43, %s10758_s14  ;;  %v8662_v45 = vmul.f32 -1.442695, %v3839_v44  ;;  %v3872_v43 = vld [vmem:[#allocation2 + $0x28] sm:$0xff] }
 0xcaf   : > { %10540 = vpow2.f32 %v8662_v45 }
 0xcbc   : > { %v10541_v6 = vpop.eup %10540 }
 0xcbd   : > { %v3843_v47 = vadd.f32 1.0, %v10541_v6 }
 0xcbf   : > { %10542 = vrcp.f32 %v3843_v47 }
 0xccc   : > { %v10543_v48 = vpop.eup %10542 }
 0xccd   : > { %v3858_v13 = vsub.f32 1.0, %v10543_v48  ;;  %v3864_v51 = vmul.f32 %v10543_v48, %v11536_v53 }
 0xd1f   : > { %v3849_v56 = vpop.permute.xlu1 %3848 }
 0xd20   : > { %v3851_v12 = vmul.f32 %v10543_v48, %v3849_v56 }
 0xd22   : > { %3853 = vrot.lane.b32.xlu0 %v3851_v12, %s10758_s14 }
 0xd94   : > { %v3854_v46 = vpop.permute.xlu0 %3853 }
 0xd95   : > { %v3856_v49 = vadd.f32 %v3854_v46, %v3351_v41 }
 0xd97   : > { %10544 = vtanh.f32 %v3856_v49 }
 0xda4   : > { %v10545_v58 = vpop.eup %10544 }
 0xda5   : > { %3860 = vrot.lane.b32.xlu1 %v10545_v58, %s10761_s15 }
 0xe17   : > { %v3861_v14 = vpop.permute.xlu1 %3860 }
 0xe18   : > { %v3863_v60 = vmul.f32 %v3861_v14, %v3858_v13 }
 0xe1a   : > { %v11607_v50 = vadd.f32 %v3864_v51, %v3863_v60 }
 0xe1c   : > { %3867 = vrot.lane.b32.xlu0 %v11607_v50, %s10761_s15 }
 0xe8e   : > { %v3868_v52 = vpop.permute.xlu0 %3867 }
 0xe8f   : > { %3870 = vst.msk [vmem:[#allocation3 + $0x20] sm:$0xff] %vm438_vm0, %v3868_v52  ;;  %v3873_v0 = vsel %vm438_vm0, %v3868_v52, 0 }
 0xe90   : > { %v3944_v26 = vand.u32 4294901760, %v3873_v0 }
 0xe92   : > { %v3945_v30 = vsub.f32 %v3873_v0, %v3944_v26  ;;  %9722 = vmatmul.mubr.f32.vlgmr.msra.gmra.mxu1 %v3944_v26 }
 0xe93   : > { %9736 = vmatpush3.msra.mxu1 %v11121_v18  ;;  %9743 = vmatprep.mubr.msk.f32.mxu1 %vm10760_vm1, %v12975_v7 }
 0xe94   : > { %v3946_v28 = vand.u32 4294901760, %v3945_v30  ;;  %9737 = vmatprep.subr.mxu1 %v12975_v7 }
 0xe95   : > { %9738 = vmatpush3.msra.mxu1 %v11136_v23 }
 0xe96   : > { %v3947_v29 = vsub.f32 %v3945_v30, %v3946_v28  ;;  %9739 = vmatprep.subr.mxu1 %v12975_v7 }
 0xe97   : > { %9740 = vmatpush3.msra.mxu1 %v11157_v25 }
 0xe98   : > { %9741 = vmatprep.subr.mxu1 %v12975_v7  ;;  %v3948_v63 = vand.u32 4294901760, %v3947_v29 }
 0xe99   : > { %9742 = vmatpush3.msra.mxu1 %v11171_v33 }
 0xe9a   : > { %9744 = vmatmul.mubr.f32.vlgmr.msra.gmra.mxu1 %v3946_v28  ;;  %9757 = vmatprep.subr.mxu1 %v12975_v7 }
 0xe9b   : > { %9711 = vmatmul.mubr.f32.vlgmr.msra.gmra.mxu0 %v3948_v63  ;;  %9758 = vmatpush3.msra.mxu1 %v11121_v18 }
 0xe9c   : > { %9725 = vmatpush3.msra.mxu0 %v11134_v38  ;;  %9759 = vmatprep.subr.mxu1 %v12975_v7 }
 0xe9d   : > { %9726 = vmatprep.subr.mxu0 %v12975_v7  ;;  %9760 = vmatpush3.msra.mxu1 %v11136_v23 }
 0xe9e   : > { %9727 = vmatpush3.msra.mxu0 %v11152_v24  ;;  %9761 = vmatprep.subr.mxu1 %v12975_v7 }
 0xe9f   : > { %9728 = vmatprep.subr.mxu0 %v12975_v7  ;;  %9762 = vmatpush3.msra.mxu1 %v11157_v25 }
 0xea0   : > { %9729 = vmatpush3.msra.mxu0 %v11177_v36  ;;  %9763 = vmatprep.subr.mxu1 %v12975_v7 }
 0xea1   : > { %9730 = vmatprep.subr.mxu0 %v12975_v7  ;;  %9732 = vmatprep.mubr.msk.f32.mxu0 %vm10760_vm1, %v12975_v7 }
 0xea2   : > { %9731 = vmatpush3.msra.mxu0 %v11191_v39  ;;  %9764 = vmatpush3.msra.mxu1 %v11171_v33 }
 0xea3   : > { %9765 = vmatprep.mubr.msk.f32.mxu1 %vm10760_vm1, %v12975_v7  ;;  %9733 = vmatmul.mubr.f32.vlgmr.msra.gmra.mxu0 %v3945_v30 }
 0xea4   : > { %9746 = vmatprep.subr.mxu0 %v12975_v7  ;;  %9766 = vmatmul.mubr.f32.vlgmr.msra.gmra.mxu1 %v3944_v26 }
 0xea5   : > { %9747 = vmatpush3.msra.mxu0 %v11149_v3  ;;  %9754 = vmatprep.mubr.msk.f32.mxu0 %vm10760_vm1, %v12975_v7 }
 0xea6   : > { %9748 = vmatprep.subr.mxu0 %v12975_v7  ;;  %9779 = vmatprep.subr.mxu1 %v12975_v7 }
 0xea7   : > { %9749 = vmatpush3.msra.mxu0 %v11169_v27  ;;  %9780 = vmatpush3.msra.mxu1 %v11186_v5 }
 0xea8   : > { %9750 = vmatprep.subr.mxu0 %v12975_v7  ;;  %9781 = vmatprep.subr.mxu1 %v12975_v7 }
 0xea9   : > { %9751 = vmatpush3.msra.mxu0 %v11196_v40  ;;  %9782 = vmatpush3.msra.mxu1 %v11204_v9 }
 0xeaa   : > { %9752 = vmatprep.subr.mxu0 %v12975_v7  ;;  %9783 = vmatprep.subr.mxu1 %v12975_v7 }
 0xeab   : > { %9753 = vmatpush3.msra.mxu0 %v11207_v15  ;;  %9784 = vmatpush3.msra.mxu1 %v12976_v59 }
 0xeac   : > { %9755 = vmatmul.mubr.f32.vlgmr.msra.gmra.mxu0 %v3944_v26  ;;  %9785 = vmatprep.subr.mxu1 %v12975_v7 }
 0xead   : > { %9786 = vmatpush3.msra.mxu1 %v12977_v10  ;;  %9768 = vmatprep.subr.mxu0 %v12975_v7 }
 0xeae   : > { %9787 = vmatprep.mubr.msk.f32.mxu1 %vm10760_vm1, %v12975_v7  ;;  %9801 = vmatprep.subr.mxu1 %v12975_v7 }
 0xeaf   : > { %9769 = vmatpush3.msra.mxu0 %v11121_v18  ;;  %9776 = vmatprep.mubr.msk.f32.mxu0 %vm10760_vm1, %v12975_v7 }
 0xeb0   : > { %9770 = vmatprep.subr.mxu0 %v12975_v7 }
 0xeb1   : > { %9771 = vmatpush3.msra.mxu0 %v11136_v23 }
 0xeb2   : > { %9772 = vmatprep.subr.mxu0 %v12975_v7 }
 0xeb3   : > { %9773 = vmatpush3.msra.mxu0 %v11157_v25 }
 0xeb4   : > { %9774 = vmatprep.subr.mxu0 %v12975_v7 }
 0xeb5   : > { %9775 = vmatpush3.msra.mxu0 %v11171_v33 }
 0xeb6   : > { %9790 = vmatprep.subr.mxu0 %v12975_v7 }
 0xf52   : > { %v4041_v1 = vpop.f32.mrf.mxu1 }
 0xf54   : > { %v9723_v2 = vpop.f32.mrf.mxu1 }
 0xf5a   : > { %v4198_v8 = vpop.f32.mrf.mxu1 }
 0xf5b   : > { %v3950_v54 = vpop.f32.mrf.mxu0 }
 0xf5c   : > { %v9745_v57 = vpop.f32.mrf.mxu1  ;;  %v4042_v21 = vadd.f32 %v4041_v1, %v3950_v54 }
 0xf5d   : > { %v9712_v62 = vpop.f32.mrf.mxu0 }
 0xf63   : > { %v4121_v35 = vpop.f32.mrf.mxu0 }
 0xf64   : > { %v4356_v11 = vpop.f32.mrf.mxu1  ;;  %v4122_v32 = vadd.f32 %v4121_v35, %v4042_v21 }
 0xf65   : > { %v9734_v22 = vpop.f32.mrf.mxu0 }
 0xf66   : > { %v9767_v20 = vpop.f32.mrf.mxu1  ;;  %v4199_v4 = vadd.f32 %v4198_v8, %v4122_v32 }
 0xf6c   : > { %v4281_v37 = vpop.f32.mrf.mxu0 }
 0xf6d   : > { %v4282_v16 = vadd.f32 %v4281_v37, %v4199_v4 }
 0xf6e   : > { %v9756_v19 = vpop.f32.mrf.mxu0 }
 0xf6f   : > { %v4357_v17 = vadd.f32 %v4356_v11, %v4282_v16  ;;  %v4393_v16 = vld [vmem:[#allocation2 + $0x30] sm:$0xff] }
 0xf71   : > { %v4367_v42 = vadd.f32 %v4357_v17, %v11317_v61  ;;  %v4360_v41 = vadd.f32 %v4357_v17, %v3872_v43 }
 0xf73   : > { %4369 = vrot.lane.b32.xlu1 %v4367_v42, %s10758_s14  ;;  %v8663_v44 = vmul.f32 -1.442695, %v4360_v41 }
 0xf75   : > { %10546 = vpow2.f32 %v8663_v44 }
 0xf82   : > { %v10547_v45 = vpop.eup %10546 }
 0xf83   : > { %v4364_v6 = vadd.f32 1.0, %v10547_v45 }
 0xf85   : > { %10548 = vrcp.f32 %v4364_v6 }
 0xf92   : > { %v10549_v47 = vpop.eup %10548 }
 0xf93   : > { %v4379_v58 = vsub.f32 1.0, %v10549_v47  ;;  %v4385_v14 = vmul.f32 %v10549_v47, %v11607_v50 }
 0xfe5   : > { %v4370_v48 = vpop.permute.xlu1 %4369 }
 0xfe6   : > { %v4372_v56 = vmul.f32 %v10549_v47, %v4370_v48 }
 0xfe8   : > { %4374 = vrot.lane.b32.xlu0 %v4372_v56, %s10758_s14 }
0x105a   : > { %v4375_v12 = vpop.permute.xlu0 %4374 }
0x105b   : > { %v4377_v46 = vadd.f32 %v4375_v12, %v3872_v43 }
0x105d   : > { %10550 = vtanh.f32 %v4377_v46 }
0x106a   : > { %v10551_v49 = vpop.eup %10550 }
0x106b   : > { %4381 = vrot.lane.b32.xlu1 %v10551_v49, %s10761_s15 }
0x10dd   : > { %v4382_v13 = vpop.permute.xlu1 %4381 }
0x10de   : > { %v4384_v51 = vmul.f32 %v4382_v13, %v4379_v58 }
0x10e0   : > { %v11678_v60 = vadd.f32 %v4385_v14, %v4384_v51  ;;  %v282_v14 = vld [vmem:[#allocation7 + $0x58] sm:$0xff] }
0x10e2   : > { %4388 = vrot.lane.b32.xlu0 %v11678_v60, %s10761_s15 }
0x1154   : > { %v4389_v52 = vpop.permute.xlu0 %4388 }
0x1155   : > { %4391 = vst.msk [vmem:[#allocation3 + $0x28] sm:$0xff] %vm438_vm0, %v4389_v52  ;;  %v4394_v0 = vsel %vm438_vm0, %v4389_v52, 0 }
0x1156   : > { %v4465_v26 = vand.u32 4294901760, %v4394_v0 }
0x1158   : > { %v4466_v30 = vsub.f32 %v4394_v0, %v4465_v26  ;;  %9788 = vmatmul.mubr.f32.vlgmr.msra.gmra.mxu1 %v4465_v26  ;;  %v281_v0 = vld [vmem:[#allocation7 + $0x50] sm:$0xff] }
0x1159   : > { %9802 = vmatpush3.msra.mxu1 %v11121_v18  ;;  %9809 = vmatprep.mubr.msk.f32.mxu1 %vm10760_vm1, %v12975_v7 }
0x115a   : > { %v4467_v28 = vand.u32 4294901760, %v4466_v30  ;;  %9803 = vmatprep.subr.mxu1 %v12975_v7 }
0x115b   : > { %9804 = vmatpush3.msra.mxu1 %v11136_v23 }
0x115c   : > { %v4468_v29 = vsub.f32 %v4466_v30, %v4467_v28  ;;  %9805 = vmatprep.subr.mxu1 %v12975_v7 }
0x115d   : > { %9806 = vmatpush3.msra.mxu1 %v11157_v25 }
0x115e   : > { %9807 = vmatprep.subr.mxu1 %v12975_v7  ;;  %v4469_v63 = vand.u32 4294901760, %v4468_v29  ;;  %v11764_v29 = vand.u32 4294901760, %v281_v0 }
0x115f   : > { %9808 = vmatpush3.msra.mxu1 %v11171_v33 }
0x1160   : > { %9810 = vmatmul.mubr.f32.vlgmr.msra.gmra.mxu1 %v4467_v28  ;;  %9823 = vmatprep.subr.mxu1 %v12975_v7  ;;  %v280_v28 = vld [vmem:[#allocation7 + $0x48] sm:$0xff] }
0x1161   : > { %9777 = vmatmul.mubr.f32.vlgmr.msra.gmra.mxu0 %v4469_v63  ;;  %9824 = vmatpush3.msra.mxu1 %v11121_v18 }
0x1162   : > { %9791 = vmatpush3.msra.mxu0 %v11134_v38  ;;  %9825 = vmatprep.subr.mxu1 %v12975_v7 }
0x1163   : > { %9792 = vmatprep.subr.mxu0 %v12975_v7  ;;  %9826 = vmatpush3.msra.mxu1 %v11136_v23 }
0x1164   : > { %9793 = vmatpush3.msra.mxu0 %v11152_v24  ;;  %9827 = vmatprep.subr.mxu1 %v12975_v7 }
0x1165   : > { %9794 = vmatprep.subr.mxu0 %v12975_v7  ;;  %9828 = vmatpush3.msra.mxu1 %v11157_v25 }
0x1166   : > { %9795 = vmatpush3.msra.mxu0 %v11177_v36  ;;  %9829 = vmatprep.subr.mxu1 %v12975_v7 }
0x1167   : > { %9796 = vmatprep.subr.mxu0 %v12975_v7  ;;  %9798 = vmatprep.mubr.msk.f32.mxu0 %vm10760_vm1, %v12975_v7 }
0x1168   : > { %9797 = vmatpush3.msra.mxu0 %v11191_v39  ;;  %9830 = vmatpush3.msra.mxu1 %v11171_v33 }
0x1169   : > { %9831 = vmatprep.mubr.msk.f32.mxu1 %vm10760_vm1, %v12975_v7  ;;  %9799 = vmatmul.mubr.f32.vlgmr.msra.gmra.mxu0 %v4466_v30 }
0x116a   : > { %9812 = vmatprep.subr.mxu0 %v12975_v7  ;;  %9832 = vmatmul.mubr.f32.vlgmr.msra.gmra.mxu1 %v4465_v26 }
0x116b   : > { %9813 = vmatpush3.msra.mxu0 %v11149_v3  ;;  %9820 = vmatprep.mubr.msk.f32.mxu0 %vm10760_vm1, %v12975_v7 }
0x116c   : > { %9814 = vmatprep.subr.mxu0 %v12975_v7  ;;  %9845 = vmatprep.subr.mxu1 %v12975_v7 }
0x116d   : > { %9815 = vmatpush3.msra.mxu0 %v11169_v27  ;;  %9846 = vmatpush3.msra.mxu1 %v11186_v5 }
0x116e   : > { %9816 = vmatprep.subr.mxu0 %v12975_v7  ;;  %9847 = vmatprep.subr.mxu1 %v12975_v7 }
0x116f   : > { %9817 = vmatpush3.msra.mxu0 %v11196_v40  ;;  %9848 = vmatpush3.msra.mxu1 %v11204_v9 }
0x1170   : > { %9818 = vmatprep.subr.mxu0 %v12975_v7  ;;  %9849 = vmatprep.subr.mxu1 %v12975_v7 }
0x1171   : > { %9819 = vmatpush3.msra.mxu0 %v11207_v15  ;;  %9850 = vmatpush3.msra.mxu1 %v12976_v59 }
0x1172   : > { %9821 = vmatmul.mubr.f32.vlgmr.msra.gmra.mxu0 %v4465_v26  ;;  %9851 = vmatprep.subr.mxu1 %v12975_v7  ;;  %v11757_v26 = vand.u32 4294901760, %v282_v14 }
0x1173   : > { %9852 = vmatpush3.msra.mxu1 %v12977_v10  ;;  %9834 = vmatprep.subr.mxu0 %v12975_v7 }
0x1174   : > { %9853 = vmatprep.mubr.msk.f32.mxu1 %vm10760_vm1, %v12975_v7  ;;  %9867 = vmatprep.subr.mxu1 %v12975_v7 }
0x1175   : > { %9835 = vmatpush3.msra.mxu0 %v11121_v18  ;;  %9842 = vmatprep.mubr.msk.f32.mxu0 %vm10760_vm1, %v12975_v7 }
0x1176   : > { %9836 = vmatprep.subr.mxu0 %v12975_v7 }
0x1177   : > { %9837 = vmatpush3.msra.mxu0 %v11136_v23 }
0x1178   : > { %9838 = vmatprep.subr.mxu0 %v12975_v7 }
0x1179   : > { %9839 = vmatpush3.msra.mxu0 %v11157_v25 }
0x117a   : > { %9840 = vmatprep.subr.mxu0 %v12975_v7 }
0x117b   : > { %9841 = vmatpush3.msra.mxu0 %v11171_v33 }
0x117c   : > { %9856 = vmatprep.subr.mxu0 %v12975_v7 }
0x1218   : > { %v4562_v5 = vpop.f32.mrf.mxu1 }
0x121a   : > { %v9789_v9 = vpop.f32.mrf.mxu1 }
0x121b   : > { %v11769_v9 = vsub.f32 %v282_v14, %v11757_v26 }
0x1220   : > { %v4719_v59 = vpop.f32.mrf.mxu1 }
0x1221   : > { %v4471_v10 = vpop.f32.mrf.mxu0 }
0x1222   : > { %v9811_v1 = vpop.f32.mrf.mxu1  ;;  %v4563_v57 = vadd.f32 %v4562_v5, %v4471_v10  ;;  %v279_v5 = vld [vmem:[#allocation7 + $0x40] sm:$0xff] }
0x1223   : > { %v9778_v2 = vpop.f32.mrf.mxu0  ;;  %v5435_v1 = vld [vmem:[#allocation3] sm:$0xff] }
0x1224   : > { %v11776_v2 = vsub.f32 %v281_v0, %v11764_v29 }
0x1229   : > { %v4642_v8 = vpop.f32.mrf.mxu0 }
0x122a   : > { %v4877_v54 = vpop.f32.mrf.mxu1  ;;  %v4643_v11 = vadd.f32 %v4642_v8, %v4563_v57  ;;  %v11778_v8 = vand.u32 4294901760, %v279_v5  ;;  %v11783_v57 = vand.u32 4294901760, %v11769_v9 }
0x122b   : > { %v9800_v62 = vpop.f32.mrf.mxu0 }
0x122c   : > { %v9833_v35 = vpop.f32.mrf.mxu1  ;;  %v4720_v21 = vadd.f32 %v4719_v59, %v4643_v11  ;;  %v11771_v59 = vand.u32 4294901760, %v280_v28  ;;  %v11792_v11 = vand.u32 4294901760, %v11776_v2 }
0x122d   : > { %v5448_v35 = vsel %vm438_vm0, %v5435_v1, 0 }
0x122e   : > { %v11786_v62 = vsub.f32 %v280_v28, %v11771_v59 }
0x1232   : > { %v4802_v22 = vpop.f32.mrf.mxu0 }
0x1233   : > { %v4803_v20 = vadd.f32 %v4802_v22, %v4720_v21  ;;  %v11795_v21 = vsub.f32 %v279_v5, %v11778_v8  ;;  %v5648_v22 = vsub.f32 %v11769_v9, %v11783_v57 }
0x1234   : > { %v9822_v32 = vpop.f32.mrf.mxu0 }
0x1235   : > { %v4878_v4 = vadd.f32 %v4877_v54, %v4803_v20  ;;  %v11803_v20 = vand.u32 4294901760, %v5448_v35  ;;  %v5436_v32 = vld [vmem:[#allocation3 + $0x8] sm:$0xff] }
0x1237   : > { %v4888_v37 = vadd.f32 %v4878_v4, %v11317_v61  ;;  %v4881_v19 = vadd.f32 %v4878_v4, %v4393_v16  ;;  %v5437_v4 = vld [vmem:[#allocation3 + $0x10] sm:$0xff] }
0x1239   : > { %4890 = vrot.lane.b32.xlu1 %v4888_v37, %s10758_s14  ;;  %v8664_v17 = vmul.f32 -1.442695, %v4881_v19  ;;  %v5451_v37 = vsel %vm438_vm0, %v5436_v32, 0  ;;  %v5438_v19 = vld [vmem:[#allocation3 + $0x18] sm:$0xff] }
0x123b   : > { %10552 = vpow2.f32 %v8664_v17 }
0x1248   : > { %v10553_v42 = vpop.eup %10552 }
0x1249   : > { %v4885_v43 = vadd.f32 1.0, %v10553_v42 }
0x124b   : > { %10554 = vrcp.f32 %v4885_v43  ;;  %v5439_v43 = vld [vmem:[#allocation3 + $0x20] sm:$0xff] }
0x1258   : > { %v10555_v41 = vpop.eup %10554 }
0x1259   : > { %v4900_v56 = vsub.f32 1.0, %v10555_v41  ;;  %v4906_v46 = vmul.f32 %v10555_v41, %v11678_v60 }
0x12ab   : > { %v4891_v44 = vpop.permute.xlu1 %4890 }
0x12ac   : > { %v4893_v45 = vmul.f32 %v10555_v41, %v4891_v44  ;;  %v11837_v41 = vand.u32 4294901760, %v5451_v37 }
0x12ae   : > { %4895 = vrot.lane.b32.xlu0 %v4893_v45, %s10758_s14  ;;  %v5457_v45 = vsel %vm438_vm0, %v5438_v19, 0 }
0x1320   : > { %v4896_v6 = vpop.permute.xlu0 %4895 }
0x1321   : > { %v4898_v47 = vadd.f32 %v4896_v6, %v4393_v16  ;;  %v11826_v16 = vsub.f32 %v5448_v35, %v11803_v20  ;;  %v5460_v6 = vsel %vm438_vm0, %v5439_v43, 0 }
0x1323   : > { %10556 = vtanh.f32 %v4898_v47  ;;  %v5440_v47 = vld [vmem:[#allocation3 + $0x28] sm:$0xff] }
0x1330   : > { %v10557_v48 = vpop.eup %10556 }
0x1331   : > { %4902 = vrot.lane.b32.xlu1 %v10557_v48, %s10761_s15 }
0x13a3   : > { %v4903_v12 = vpop.permute.xlu1 %4902 }
0x13a4   : > { %v4905_v49 = vmul.f32 %v4903_v12, %v4900_v56  ;;  %v11851_v12 = vand.u32 4294901760, %v5457_v45 }
0x13a6   : > { %v11749_v58 = vadd.f32 %v4906_v46, %v4905_v49  ;;  %v11857_v49 = vand.u32 4294901760, %v5460_v6 }
0x13a8   : > { %4909 = vrot.lane.b32.xlu0 %v11749_v58, %s10761_s15 }
0x141a   : > { %v4910_v13 = vpop.permute.xlu0 %4909 }
0x141b   : > { %4912 = vst.msk [vmem:[#allocation3 + $0x30] sm:$0xff] %vm438_vm0, %v4910_v13  ;;  %v4915_v51 = vsel %vm438_vm0, %v4910_v13, 0  ;;  %v5463_v13 = vsel %vm438_vm0, %v5440_v47, 0 }
0x141c   : > { %v11755_v52 = vand.u32 4294901760, %v4915_v51  ;;  %v11870_v0 = vand.u32 4294901760, %v5463_v13 }
0x141e   : > { %v4987_v30 = vsub.f32 %v4915_v51, %v11755_v52  ;;  %9854 = vmatmul.mubr.f32.vlgmr.msra.gmra.mxu1 %v11755_v52 }
0x141f   : > { %9868 = vmatpush3.msra.mxu1 %v11121_v18  ;;  %9875 = vmatprep.mubr.msk.f32.mxu1 %vm10760_vm1, %v12975_v7 }
0x1420   : > { %v4988_v63 = vand.u32 4294901760, %v4987_v30  ;;  %9869 = vmatprep.subr.mxu1 %v12975_v7 }
0x1421   : > { %9870 = vmatpush3.msra.mxu1 %v11136_v23 }
0x1422   : > { %v4989_v10 = vsub.f32 %v4987_v30, %v4988_v63  ;;  %9871 = vmatprep.subr.mxu1 %v12975_v7  ;;  %v5441_v56 = vld [vmem:[#allocation3 + $0x30] sm:$0xff] }
0x1423   : > { %9872 = vmatpush3.msra.mxu1 %v11157_v25 }
0x1424   : > { %9873 = vmatprep.subr.mxu1 %v12975_v7  ;;  %v4990_v54 = vand.u32 4294901760, %v4989_v10  ;;  %v11892_v10 = vsub.f32 %v5463_v13, %v11870_v0 }
0x1425   : > { %9874 = vmatpush3.msra.mxu1 %v11171_v33 }
0x1426   : > { %9876 = vmatmul.mubr.f32.vlgmr.msra.gmra.mxu1 %v4988_v63  ;;  %9889 = vmatprep.subr.mxu1 %v12975_v7 }
0x1427   : > { %9843 = vmatmul.mubr.f32.vlgmr.msra.gmra.mxu0 %v4990_v54  ;;  %9890 = vmatpush3.msra.mxu1 %v11121_v18  ;;  %v11806_v18 = vand.u32 4294901760, %v11786_v62 }
0x1428   : > { %9857 = vmatpush3.msra.mxu0 %v11134_v38  ;;  %9891 = vmatprep.subr.mxu1 %v12975_v7  ;;  %v5655_v38 = vsub.f32 %v11776_v2, %v11792_v11 }
0x1429   : > { %9858 = vmatprep.subr.mxu0 %v12975_v7  ;;  %9892 = vmatpush3.msra.mxu1 %v11136_v23  ;;  %v11815_v23 = vand.u32 4294901760, %v11795_v21 }
0x142a   : > { %9859 = vmatpush3.msra.mxu0 %v11152_v24  ;;  %9893 = vmatprep.subr.mxu1 %v12975_v7  ;;  %v5649_v24 = vand.u32 4294901760, %v5648_v22  ;;  %v5656_v17 = vand.u32 4294901760, %v5655_v38  ;;  %v5592_v38 = vand.u32 4294901760, %v11892_v10 }
0x142b   : > { %9860 = vmatprep.subr.mxu0 %v12975_v7  ;;  %9894 = vmatpush3.msra.mxu1 %v11157_v25  ;;  %v5662_v25 = vsub.f32 %v11786_v62, %v11806_v18  ;;  %v5669_v42 = vsub.f32 %v11795_v21, %v11815_v23 }
0x142c   : > { %9861 = vmatpush3.msra.mxu0 %v11177_v36  ;;  %9895 = vmatprep.subr.mxu1 %v12975_v7  ;;  %v5454_v36 = vsel %vm438_vm0, %v5437_v4, 0 }
0x142d   : > { %9862 = vmatprep.subr.mxu0 %v12975_v7  ;;  %9864 = vmatprep.mubr.msk.f32.mxu0 %vm10760_vm1, %v12975_v7  ;;  %v11841_v44 = vand.u32 4294901760, %v5454_v36  ;;  %v5670_v48 = vand.u32 4294901760, %v5669_v42 }
0x142e   : > { %9863 = vmatpush3.msra.mxu0 %v11191_v39  ;;  %9896 = vmatpush3.msra.mxu1 %v11171_v33  ;;  %v5663_v33 = vand.u32 4294901760, %v5662_v25  ;;  %v5542_v39 = vand.u32 4294901760, %v11826_v16 }
0x142f   : > { %9897 = vmatprep.mubr.msk.f32.mxu1 %vm10760_vm1, %v12975_v7  ;;  %9865 = vmatmul.mubr.f32.vlgmr.msra.gmra.mxu0 %v4987_v30  ;;  %v11861_v14 = vsub.f32 %v5454_v36, %v11841_v44  ;;  %v11873_v30 = vsub.f32 %v5457_v45, %v11851_v12  ;;  %v5593_v36 = vsub.f32 %v11892_v10, %v5592_v38 }
0x1430   : > { %9878 = vmatprep.subr.mxu0 %v12975_v7  ;;  %9898 = vmatmul.mubr.f32.vlgmr.msra.gmra.mxu1 %v11755_v52  ;;  %v5543_v46 = vsub.f32 %v11826_v16, %v5542_v39 }
0x1431   : > { %9920 = vmatprep.subr.mxu1 %v5649_v24  ;;  %9879 = vmatpush3.msra.mxu0 %v11149_v3  ;;  %v11849_v3 = vsub.f32 %v5451_v37, %v11837_v41  ;;  %v5562_v28 = vand.u32 4294901760, %v11861_v14  ;;  %v5572_v5 = vand.u32 4294901760, %v11873_v30  ;;  %v5594_v42 = vand.u32 4294901760, %v5593_v36 }
0x1432   : > { %9921 = vmatpush3.msra.mxu1 %v5649_v24  ;;  %9928 = vmatprep.mubr.f32.mxu1 %v11803_v20 }
0x1433   : > { %9880 = vmatprep.subr.mxu0 %v12975_v7  ;;  %9922 = vmatprep.subr.mxu1 %v5656_v17  ;;  %v5552_v51 = vand.u32 4294901760, %v11849_v3  ;;  %v5563_v1 = vsub.f32 %v11861_v14, %v5562_v28  ;;  %v5573_v32 = vsub.f32 %v11873_v30, %v5572_v5 }
0x1434   : > { %9881 = vmatpush3.msra.mxu0 %v11169_v27  ;;  %9923 = vmatpush3.msra.mxu1 %v5656_v17  ;;  %v5466_v27 = vsel %vm438_vm0, %v5441_v56, 0 }
0x1435   : > { %9882 = vmatprep.subr.mxu0 %v12975_v7  ;;  %9924 = vmatprep.subr.mxu1 %v5663_v33  ;;  %v11877_v63 = vand.u32 4294901760, %v5466_v27  ;;  %v5564_v4 = vand.u32 4294901760, %v5563_v1  ;;  %v5574_v37 = vand.u32 4294901760, %v5573_v32 }
0x1436   : > { %9883 = vmatpush3.msra.mxu0 %v11196_v40  ;;  %9925 = vmatpush3.msra.mxu1 %v5663_v33  ;;  %v5544_v40 = vand.u32 4294901760, %v5543_v46 }
0x1437   : > { %9884 = vmatprep.subr.mxu0 %v12975_v7  ;;  %9926 = vmatprep.subr.mxu1 %v5670_v48  ;;  %v11900_v35 = vsub.f32 %v5466_v27, %v11877_v63 }
0x1438   : > { %9885 = vmatpush3.msra.mxu0 %v11207_v15  ;;  %9886 = vmatprep.mubr.msk.f32.mxu0 %vm10760_vm1, %v12975_v7  ;;  %v11880_v15 = vsub.f32 %v5460_v6, %v11857_v49 }
0x1439   : > { %9927 = vmatpush3.msra.mxu1 %v5670_v48  ;;  %9887 = vmatmul.mubr.f32.vlgmr.msra.gmra.mxu0 %v11755_v52  ;;  %v5553_v52 = vsub.f32 %v11849_v3, %v5552_v51  ;;  %v5602_v25 = vand.u32 4294901760, %v11900_v35 }
0x143a   : > { %9900 = vmatprep.subr.mxu0 %v11757_v26  ;;  %9929 = vmatmul.mubr.f32.vlgmr.msra.gmra.mxu1 %v11837_v41  ;;  %v5582_v54 = vand.u32 4294901760, %v11880_v15 }
0x143b   : > { %9901 = vmatpush3.msra.mxu0 %v11757_v26  ;;  %9908 = vmatprep.mubr.f32.mxu0 %v5544_v40  ;;  %v5554_v22 = vand.u32 4294901760, %v5553_v52  ;;  %v5603_v17 = vsub.f32 %v11900_v35, %v5602_v25 }
0x143c   : > { %9931 = vmatprep.mubr.f32.mxu1 %v11841_v44  ;;  %9902 = vmatprep.subr.mxu0 %v11764_v29  ;;  %v5583_v24 = vsub.f32 %v11880_v15, %v5582_v54 }
0x143d   : > { %9903 = vmatpush3.msra.mxu0 %v11764_v29  ;;  %9960 = vmatprep.subr.mxu1 %v11757_v26  ;;  %v5604_v43 = vand.u32 4294901760, %v5603_v17 }
0x143e   : > { %9904 = vmatprep.subr.mxu0 %v11771_v59  ;;  %9932 = vmatmul.mubr.f32.gmra.mxu1 %v11851_v12  ;;  %v5584_v19 = vand.u32 4294901760, %v5583_v24 }
0x143f   : > { %9905 = vmatpush3.msra.mxu0 %v11771_v59  ;;  %9934 = vmatprep.mubr.f32.mxu1 %v11857_v49 }
0x1440   : > { %9906 = vmatprep.subr.mxu0 %v11778_v8  ;;  %9961 = vmatpush3.msra.mxu1 %v11757_v26 }
0x1441   : > { %9907 = vmatpush3.msra.mxu0 %v11778_v8  ;;  %9962 = vmatprep.subr.mxu1 %v11764_v29 }
0x1442   : > { %9909 = vmatmul.mubr.f32.vlgmr.msra.gmra.mxu0 %v5554_v22  ;;  %9935 = vmatmul.mubr.f32.gmra.mxu1 %v11870_v0 }
0x1443   : > { %9911 = vmatprep.mubr.f32.mxu0 %v5564_v4  ;;  %9937 = vmatprep.mubr.f32.mxu1 %v11877_v63 }
0x1444   : > { %9940 = vmatprep.subr.mxu0 %v11769_v9  ;;  %9963 = vmatpush3.msra.mxu1 %v11764_v29 }
0x1445   : > { %9941 = vmatpush3.msra.mxu0 %v11769_v9  ;;  %9964 = vmatprep.subr.mxu1 %v11771_v59 }
0x1446   : > { %9912 = vmatmul.mubr.f32.gmra.mxu0 %v5574_v37  ;;  %9942 = vmatprep.subr.mxu0 %v11776_v2  ;;  %v8666_v37 = vld [vmem:[#allocation7 + $0x142] ss:$0 sm:$0xff] }
0x1447   : > { %9914 = vmatprep.mubr.f32.mxu0 %v5584_v19  ;;  %9943 = vmatpush3.msra.mxu0 %v11776_v2 }
0x1448   : > { %9965 = vmatpush3.msra.mxu1 %v11771_v59  ;;  %9944 = vmatprep.subr.mxu0 %v11786_v62 }
0x1449   : > { %9966 = vmatprep.subr.mxu1 %v11778_v8  ;;  %9945 = vmatpush3.msra.mxu0 %v11786_v62 }
0x144a   : > { %9915 = vmatmul.mubr.f32.gmra.mxu0 %v5594_v42  ;;  %9967 = vmatpush3.msra.mxu1 %v11778_v8 }
0x144b   : > { %9917 = vmatprep.mubr.f32.mxu0 %v5604_v43  ;;  %9946 = vmatprep.subr.mxu0 %v11795_v21  ;;  %v4914_v43 = vld [vmem:[#allocation2 + $0x38] sm:$0xff] }
0x144c   : > { %9947 = vmatpush3.msra.mxu0 %v11795_v21  ;;  %10000 = vmatprep.subr.mxu1 %v11757_v26 }
0x144d   : > { %9980 = vmatprep.subr.mxu0 %v11783_v57 }
0x14de   : > { %v5083_v9 = vpop.f32.mrf.mxu1 }
0x14e0   : > { %v9855_v2 = vpop.f32.mrf.mxu1 }
0x14e6   : > { %v5240_v33 = vpop.f32.mrf.mxu1 }
0x14e7   : > { %v4992_v45 = vpop.f32.mrf.mxu0 }
0x14e8   : > { %v9877_v6 = vpop.f32.mrf.mxu1  ;;  %v5084_v46 = vadd.f32 %v5083_v9, %v4992_v45 }
0x14e9   : > { %v9844_v47 = vpop.f32.mrf.mxu0 }
0x14ef   : > { %v5163_v48 = vpop.f32.mrf.mxu0 }
0x14f0   : > { %v5398_v62 = vpop.f32.mrf.mxu1  ;;  %v5164_v27 = vadd.f32 %v5163_v48, %v5084_v46  ;;  %v2308_v46 = vadd.f32 %v11394_v55, %v11323_v34  ;;  %v332_v55 = vld [vmem:[%s331_s21] sm:$0x1]  ;;  %s10764_s21 = smov 3  }
0x14f1   : > { %v9866_v56 = vpop.f32.mrf.mxu0 }
0x14f2   : > { %v9899_v13 = vpop.f32.mrf.mxu1  ;;  %v5241_v40 = vadd.f32 %v5240_v33, %v5164_v27 }
0x14f3   : > { %v2829_v13 = vadd.f32 %v11465_v31, %v2308_v46  ;;  %v334_v31 = vld [vmem:[%s333_s22] sm:$0x1]  ;;  %s10765_s22 = smov 5  }
0x14f5   : > { %v3350_v27 = vadd.f32 %v11536_v53, %v2829_v13  ;;  %v335_v53 = vmul.f32 %v334_v31, %v332_v55 }
0x14f9   : > { %v5323_v52 = vpop.f32.mrf.mxu0 }
0x14fa   : > { %v5324_v1 = vadd.f32 %v5323_v52, %v5241_v40  ;;  %v11944_v4 = vpop.f32.mrf.mxu1  ;;  %v3871_v40 = vadd.f32 %v11607_v50, %v3350_v27  ;;  %v340_v50 = vld [vmem:[%s339_s29] sm:$0x1]  ;;  %s10769_s29 = smov 39  }
0x14fb   : > { %v9888_v21 = vpop.f32.mrf.mxu0 }
0x14fc   : > { %v5399_v22 = vadd.f32 %v5398_v62, %v5324_v1  ;;  %v5707_v17 = vpop.f32.mrf.mxu1  ;;  %v4392_v21 = vadd.f32 %v11678_v60, %v3871_v40  ;;  %v342_v60 = vld [vmem:[%s341_s1] sm:$0x1]  ;;  %s10770_s1 = smov 32  }
0x14fe   : > { %v5409_v32 = vadd.f32 %v5399_v22, %v11317_v61  ;;  %v5402_v9 = vadd.f32 %v5399_v22, %v4914_v43 }
0x1500   : > { %5411 = vrot.lane.b32.xlu1 %v5409_v32, %s10758_s14  ;;  %v8665_v2 = vmul.f32 -1.442695, %v5402_v9 }
0x1502   : > { %v11946_v24 = vpop.f32.mrf.mxu0  ;;  %10558 = vpow2.f32 %v8665_v2  ;;  %v343_v2 = vmul.f32 %v342_v60, %v340_v50  ;;  %v374_v50 = vld [vmem:[%s373_s20] sm:$0x1] }
0x1504   : > { %v5546_v36 = vpop.f32.mrf.mxu0  ;;  %v388_v27 = vrot.slane %v343_v2, 6 }
0x1505   : > { %v5547_v19 = vadd.f32 %v8666_v37, %v5546_v36  ;;  %v4913_v36 = vadd.f32 %v11749_v58, %v4392_v21 }
0x1507   : > { %v11948_v42 = vadd.f32 %v5707_v17, %v5547_v19  ;;  %v326_v17 = vld [vmem:[%s325_s3] sm:$0x1]  ;;  %s357_s3 = scalar_lea.vmem [#allocation11], %s11978_s19  ;;  %s10762_s19 = smov 1  }
0x1508   : > { %v358_v46 = vld [vmem:[%s357_s3] sm:$0x1] }
0x150f   : > { %v10559_v33 = vpop.eup %10558 }
0x1510   : > { %v5406_v45 = vadd.f32 1.0, %v10559_v33  ;;  %v350_v33 = vld [vmem:[%s349_s26] sm:$0x1]  ;;  %s270_s26 = scalar_lea.vmem %s12866_s6, %s8647_s17 }
0x1512   : > { %10560 = vrcp.f32 %v5406_v45 }
0x151f   : > { %v10561_v61 = vpop.eup %10560 }
0x1520   : > { %v5421_v52 = vsub.f32 1.0, %v10561_v61  ;;  %v5427_v22 = vmul.f32 %v10561_v61, %v11749_v58  ;;  %v324_v58 = vld [vmem:[%s323_s2] sm:$0x1]  ;;  %s355_s2 = scalar_lea.vmem [#allocation9], %s11974_s24  ;;  %s381_s24 = scalar_lea.vmem [#allocation11], %s11996_s8 }
0x1572   : > { %v5412_v6 = vpop.permute.xlu1 %5411 }
0x1573   : > { %v5414_v47 = vmul.f32 %v10561_v61, %v5412_v6  ;;  %v327_v61 = vmul.f32 %v326_v17, %v324_v58  ;;  %v385_v6 = vrot.slane %v335_v53, 7  ;;  %v372_v53 = vld [vmem:[%s371_s11] sm:$0x1] }
0x1574   : > { %v375_v17 = vmul.f32 %v374_v50, %v372_v53 }
0x1575   : > { %5416 = vrot.lane.b32.xlu0 %v5414_v47, %s10758_s14  ;;  %s11983_s14 = sld [smem:[#allocation5 + %s360_s23]] }
0x157b   : > { %s363_s12 = scalar_lea.vmem [#allocation9], %s11983_s14  ;;  %s10766_s14 = smov 4  }
0x15e7   : > { %v5417_v48 = vpop.permute.xlu0 %5416 }
0x15e8   : > { %v5419_v62 = vadd.f32 %v5417_v48, %v4914_v43  ;;  %v348_v43 = vld [vmem:[%s347_s0] sm:$0x1]  ;;  %v286_v48 = vld [vmem:[#allocation7 + $0x78] sm:$0xff] }
0x15e9   : > { %v12008_v40 = vand.u32 4294901760, %v286_v48 }
0x15ea   : > { %10562 = vtanh.f32 %v5419_v62  ;;  %v351_v62 = vmul.f32 %v350_v33, %v348_v43 }
0x15eb   : > { %v12020_v55 = vsub.f32 %v286_v48, %v12008_v40 }
0x15ed   : > { %v6370_v2 = vand.u32 4294901760, %v12020_v55 }
0x15f7   : > { %v10563_v56 = vpop.eup %10562 }
0x15f8   : > { %5423 = vrot.lane.b32.xlu1 %v10563_v56, %s10761_s15  ;;  %v356_v56 = vld [vmem:[%s355_s2] sm:$0x1] }
0x166a   : > { %v5424_v1 = vpop.permute.xlu1 %5423 }
0x166b   : > { %v5426_v32 = vmul.f32 %v5424_v1, %v5421_v52  ;;  %v364_v52 = vld [vmem:[%s363_s12] sm:$0x1]  ;;  %v406_v1 = vsel %vm405_vm3, %v327_v61, %v385_v6  ;;  %vm8497_vm3 = vcmask 523264  }
0x166c   : > { %v283_v61 = vld [vmem:[#allocation7 + $0x60] sm:$0xff] }
0x166d   : > { %v5428_v37 = vadd.f32 %v5427_v22, %v5426_v32  ;;  %v359_v22 = vmul.f32 %v358_v46, %v356_v56  ;;  %v12058_v48 = vand.u32 4294901760, %v283_v61 }
0x166f   : > { %5430 = vrot.lane.b32.xlu0 %v5428_v37, %s10761_s15  ;;  %v5434_v19 = vadd.f32 %v5428_v37, %v4913_v36  ;;  %v285_v37 = vld [vmem:[#allocation7 + $0x70] sm:$0xff]  ;;  %v391_v36 = vrot.slane %v351_v62, 5  ;;  %v394_v58 = vrot.slane %v359_v22, 4 }
0x1670   : > { %v12025_v60 = vand.u32 4294901760, %v285_v37 }
0x1671   : > { %7353 = vrot.lane.b32.xlu1 %v5434_v19, %s10761_s15  ;;  %s11985_s15 = sld [smem:[#allocation6 + %s360_s23]]  ;;  %v408_v19 = vsel %vm407_vm4, %v406_v1, %v388_v27  ;;  %s379_s23 = scalar_lea.vmem [#allocation9], %s11993_s28  ;;  %vm8517_vm4 = vcmask 326656  }
0x1672   : > { %v380_v43 = vld [vmem:[%s379_s23] sm:$0x1]  ;;  %v12038_v33 = vsub.f32 %v285_v37, %v12025_v60 }
0x1677   : > { %s365_s16 = scalar_lea.vmem [#allocation11], %s11985_s15  ;;  %s10767_s15 = smov 7  }
0x1678   : > { %v366_v32 = vld [vmem:[%s365_s16] sm:$0x1] }
0x1679   : > { %v367_v31 = vmul.f32 %v366_v32, %v364_v52  ;;  %v292_v52 = vld [vmem:[#allocation7 + $0xa8] sm:$0xff] }
0x167a   : > { %v12143_v22 = vand.u32 4294901760, %v292_v52 }
0x16e1   : > { %v11976_v34 = vpop.permute.xlu0 %5430 }
0x16e2   : > { %12978 = vst [vmem:[#allocation18_spill] sm:$0xff] %v11976_v34  ;;  %5433 = vst.msk [vmem:[#allocation3 + $0x38] sm:$0xff] %vm438_vm0, %v11976_v34 }
0x16e9   : > { %v5442_v9 = vld [vmem:[#allocation3 + $0x38] sm:$0xff] }
0x16ea   : > { %v5469_v45 = vsel %vm438_vm0, %v5442_v9, 0  ;;  %v382_v9 = vld [vmem:[%s381_s24] sm:$0x1] }
0x16eb   : > { %v11998_v47 = vand.u32 4294901760, %v5469_v45  ;;  %v383_v6 = vmul.f32 %v382_v9, %v380_v43  ;;  %v289_v43 = vld [vmem:[#allocation7 + $0x90] sm:$0xff] }
0x16ed   : > { %9938 = vmatmul.mubr.f32.gmra.mxu1 %v11998_v47  ;;  %v12004_v13 = vsub.f32 %v5469_v45, %v11998_v47 }
0x16ee   : > { %9968 = vmatprep.mubr.f32.mxu1 %v5542_v39 }
0x16ef   : > { %v5612_v21 = vand.u32 4294901760, %v12004_v13 }
0x16f1   : > { %9969 = vmatmul.mubr.f32.vlgmr.msra.gmra.mxu1 %v5552_v51  ;;  %v5613_v39 = vsub.f32 %v12004_v13, %v5612_v21 }
0x16f2   : > { %9971 = vmatprep.mubr.f32.mxu1 %v5562_v28  ;;  %10001 = vmatpush3.msra.mxu1 %v11757_v26  ;;  %v284_v28 = vld [vmem:[#allocation7 + $0x68] sm:$0xff]  ;;  %v410_v26 = vsel %vm409_vm5, %v408_v19, %v391_v36  ;;  %v12162_v36 = vsub.f32 %v292_v52, %v12143_v22  ;;  %vm8519_vm5 = vcmask 334848  }
0x16f3   : > { %v5614_v51 = vand.u32 4294901760, %v5613_v39  ;;  %10002 = vmatprep.subr.mxu1 %v11764_v29  ;;  %v12040_v45 = vand.u32 4294901760, %v284_v28 }
0x16f4   : > { %10003 = vmatpush3.msra.mxu1 %v11764_v29  ;;  %v397_v29 = vrot.slane %v367_v31, 3  ;;  %v6987_v31 = vand.u32 4294901760, %v12162_v36 }
0x16f5   : > { %9918 = vmatmul.mubr.f32.gmra.mxu0 %v5614_v51  ;;  %9972 = vmatmul.mubr.f32.gmra.mxu1 %v5572_v5  ;;  %v412_v5 = vsel %vm411_vm6, %v410_v26, %v394_v58 }
0x16f6   : > { %9948 = vmatprep.mubr.f32.mxu0 %v11826_v16  ;;  %9974 = vmatprep.mubr.f32.mxu1 %v5582_v54  ;;  %v400_v16 = vrot.slane %v375_v17, 2  ;;  %v414_v54 = vsel %vm413_vm7, %v412_v5, %v397_v29  ;;  %v290_v17 = vld [vmem:[#allocation7 + $0x98] sm:$0xff]  ;;  %v12234_v29 = vand.u32 4294901760, %v289_v43 }
0x16f7   : > { %10004 = vmatprep.subr.mxu1 %v11771_v59  ;;  %v12228_v9 = vand.u32 4294901760, %v290_v17 }
0x16f8   : > { %10005 = vmatpush3.msra.mxu1 %v11771_v59  ;;  %v6371_v59 = vsub.f32 %v12020_v55, %v6370_v2 }
0x16f9   : > { %9949 = vmatmul.mubr.f32.vlgmr.msra.gmra.mxu0 %v11849_v3  ;;  %9975 = vmatmul.mubr.f32.gmra.mxu1 %v5592_v38  ;;  %v6377_v3 = vand.u32 4294901760, %v12038_v33  ;;  %v12056_v38 = vsub.f32 %v284_v28, %v12040_v45 }
0x16fa   : > { %9951 = vmatprep.mubr.f32.mxu0 %v11861_v14  ;;  %9977 = vmatprep.mubr.f32.mxu1 %v5602_v25  ;;  %v403_v14 = vrot.slane %v383_v6, 1  ;;  %v6372_v25 = vand.u32 4294901760, %v6371_v59 }
0x16fb   : > { %9981 = vmatpush3.msra.mxu0 %v11783_v57  ;;  %10006 = vmatprep.subr.mxu1 %v11778_v8  ;;  %v416_v57 = vsel %vm415_vm8, %v414_v54, %v400_v16  ;;  %v6378_v62 = vsub.f32 %v12038_v33, %v6377_v3 }
0x16fc   : > { %9982 = vmatprep.subr.mxu0 %v11792_v11  ;;  %10007 = vmatpush3.msra.mxu1 %v11778_v8  ;;  %v6384_v8 = vand.u32 4294901760, %v12056_v38 }
0x16fd   : > { %9952 = vmatmul.mubr.f32.gmra.mxu0 %v11873_v30  ;;  %9978 = vmatmul.mubr.f32.gmra.mxu1 %v5612_v21  ;;  %v12072_v30 = vsub.f32 %v283_v61, %v12058_v48  ;;  %v12251_v61 = vsub.f32 %v289_v43, %v12234_v29 }
0x16fe   : > { %9954 = vmatprep.mubr.f32.mxu0 %v11880_v15  ;;  %9983 = vmatpush3.msra.mxu0 %v11792_v11  ;;  %v418_v15 = vsel %vm417_vm9, %v416_v57, %v403_v14  ;;  %v6379_v11 = vand.u32 4294901760, %v6378_v62  ;;  %v6385_v56 = vsub.f32 %v12056_v38, %v6384_v8  ;;  %v7354_v14 = vpop.permute.xlu1 %7353 }
0x16ff   : > { %10008 = vmatprep.mubr.f32.mxu1 %v11803_v20  ;;  %9984 = vmatprep.subr.mxu0 %v11806_v18  ;;  %v6262_v46 = vsel %vm438_vm0, %v418_v15, 0  ;;  %v7470_v59 = vand.u32 4294901760, %v12251_v61 }
0x1700   : > { %9985 = vmatpush3.msra.mxu0 %v11806_v18  ;;  %10031 = vmatprep.subr.mxu1 %v12975_v7  ;;  %v6391_v18 = vand.u32 4294901760, %v12072_v30 }
0x1701   : > { %9955 = vmatmul.mubr.f32.gmra.mxu0 %v11892_v10  ;;  %10009 = vmatmul.mubr.f32.vlgmr.msra.gmra.mxu1 %v11837_v41  ;;  %v12092_v10 = vand.u32 4294901760, %v6262_v46  ;;  %v7471_v57 = vsub.f32 %v12251_v61, %v7470_v59 }
0x1702   : > { %9957 = vmatprep.mubr.f32.mxu0 %v11900_v35  ;;  %10011 = vmatprep.mubr.f32.mxu1 %v11841_v44  ;;  %v6386_v35 = vand.u32 4294901760, %v6385_v56 }
0x1703   : > { %9986 = vmatprep.subr.mxu0 %v11815_v23  ;;  %10032 = vmatpush3.msra.mxu1 %v6372_v25  ;;  %v7472_v15 = vand.u32 4294901760, %v7471_v57 }
0x1704   : > { %9987 = vmatpush3.msra.mxu0 %v11815_v23  ;;  %10033 = vmatprep.subr.mxu1 %v12975_v7  ;;  %v6392_v23 = vsub.f32 %v12072_v30, %v6391_v18 }
0x1705   : > { %9958 = vmatmul.mubr.f32.gmra.mxu0 %v12004_v13  ;;  %10012 = vmatmul.mubr.f32.gmra.mxu1 %v11851_v12 }
0x1706   : > { %9988 = vmatprep.mubr.f32.mxu0 %v11803_v20  ;;  %10014 = vmatprep.mubr.f32.mxu1 %v11857_v49  ;;  %v12104_v20 = vsub.f32 %v6262_v46, %v12092_v10  ;;  %v6393_v13 = vand.u32 4294901760, %v6392_v23 }
0x1707   : > { %10020 = vmatprep.subr.mxu0 %v12975_v7  ;;  %10034 = vmatpush3.msra.mxu1 %v6379_v11 }
0x1708   : > { %10035 = vmatprep.subr.mxu1 %v12975_v7 }
0x1709   : > { %9989 = vmatmul.mubr.f32.vlgmr.msra.gmra.mxu0 %v11837_v41  ;;  %10015 = vmatmul.mubr.f32.gmra.mxu1 %v11870_v0  ;;  %v12114_v41 = vand.u32 4294901760, %v12104_v20 }
0x170a   : > { %9991 = vmatprep.mubr.f32.mxu0 %v11841_v44  ;;  %10017 = vmatprep.mubr.f32.mxu1 %v11877_v63  ;;  %v294_v44 = vld [vmem:[#allocation7 + $0xb8] sm:$0xff] }
0x170b   : > { %10021 = vmatpush3.msra.mxu0 %v12008_v40  ;;  %10036 = vmatpush3.msra.mxu1 %v6386_v35  ;;  %v12126_v27 = vand.u32 4294901760, %v294_v44 }
0x170c   : > { %10022 = vmatprep.subr.mxu0 %v12975_v7  ;;  %10037 = vmatprep.subr.mxu1 %v12975_v7 }
0x170d   : > { %9992 = vmatmul.mubr.f32.gmra.mxu0 %v11851_v12  ;;  %10018 = vmatmul.mubr.f32.gmra.mxu1 %v11998_v47  ;;  %v293_v12 = vld [vmem:[#allocation7 + $0xb0] sm:$0xff]  ;;  %v12141_v21 = vsub.f32 %v294_v44, %v12126_v27 }
0x170e   : > { %9994 = vmatprep.mubr.f32.mxu0 %v11857_v49  ;;  %10023 = vmatpush3.msra.mxu0 %v12025_v60  ;;  %v6336_v49 = vsub.f32 %v12104_v20, %v12114_v41  ;;  %v309_v44 = vld [vmem:[#allocation7 + $0x130] sm:$0xff] }
0x170f   : > { %10038 = vmatpush3.msra.mxu1 %v6393_v13  ;;  %10039 = vmatprep.mubr.msk.f32.mxu1 %vm10760_vm1, %v12975_v7  ;;  %v6973_v37 = vand.u32 4294901760, %v12141_v21  ;;  %v310_v13 = vld [vmem:[#allocation7 + $0x138] sm:$0xff] }
0x1710   : > { %10053 = vmatprep.subr.mxu1 %v12975_v7  ;;  %10024 = vmatprep.subr.mxu0 %v12975_v7  ;;  %v12138_v1 = vand.u32 4294901760, %v6336_v49  ;;  %v12397_v49 = vand.u32 4294901760, %v309_v44 }
0x1711   : > { %9995 = vmatmul.mubr.f32.gmra.mxu0 %v11870_v0  ;;  %10040 = vmatmul.mubr.f32.vlgmr.msra.gmra.mxu1 %v12092_v10  ;;  %v12132_v0 = vand.u32 4294901760, %v293_v12 }
0x1712   : > { %10054 = vmatpush3.msra.mxu1 %v12008_v40  ;;  %9997 = vmatprep.mubr.f32.mxu0 %v11877_v63  ;;  %v291_v63 = vld [vmem:[#allocation7 + $0xa0] sm:$0xff]  ;;  %12981 = vst [vmem:[#allocation21_spill] sm:$0xff] %v12397_v49 }
0x1713   : > { %10025 = vmatpush3.msra.mxu0 %v12040_v45  ;;  %10055 = vmatprep.subr.mxu1 %v12975_v7  ;;  %v12153_v32 = vand.u32 4294901760, %v291_v63 }
0x1714   : > { %10056 = vmatpush3.msra.mxu1 %v12025_v60  ;;  %10026 = vmatprep.subr.mxu0 %v12975_v7 }
0x1715   : > { %10057 = vmatprep.subr.mxu1 %v12975_v7  ;;  %9998 = vmatmul.mubr.f32.gmra.mxu0 %v11998_v47  ;;  %v12151_v47 = vsub.f32 %v293_v12, %v12132_v0  ;;  %v12170_v19 = vsub.f32 %v291_v63, %v12153_v32 }
0x1716   : > { %10058 = vmatpush3.msra.mxu1 %v12040_v45  ;;  %10027 = vmatpush3.msra.mxu0 %v12058_v48 }
0x1717   : > { %10059 = vmatprep.subr.mxu1 %v12975_v7  ;;  %10028 = vmatprep.mubr.msk.f32.mxu0 %vm10760_vm1, %v12975_v7  ;;  %v6980_v39 = vand.u32 4294901760, %v12151_v47  ;;  %v6994_v50 = vand.u32 4294901760, %v12170_v19 }
0x1718   : > { %10060 = vmatpush3.msra.mxu1 %v12058_v48  ;;  %10042 = vmatprep.subr.mxu0 %v12975_v7 }
0x1719   : > { %10061 = vmatprep.mubr.msk.f32.mxu1 %vm10760_vm1, %v12975_v7  ;;  %10075 = vmatprep.subr.mxu1 %v12975_v7  ;;  %v6981_v53 = vsub.f32 %v12151_v47, %v6980_v39  ;;  %v6995_v28 = vsub.f32 %v12170_v19, %v6994_v50 }
0x171a   : > { %10029 = vmatmul.mubr.f32.vlgmr.msra.gmra.mxu0 %v12138_v1  ;;  %10062 = vmatmul.mubr.f32.vlgmr.msra.gmra.mxu1 %v12114_v41 }
0x171b   : > { %10043 = vmatpush3.msra.mxu0 %v12020_v55  ;;  %10076 = vmatpush3.msra.mxu1 %v12008_v40  ;;  %v6974_v40 = vsub.f32 %v12141_v21, %v6973_v37  ;;  %v6982_v58 = vand.u32 4294901760, %v6981_v53  ;;  %v6996_v55 = vand.u32 4294901760, %v6995_v28  ;;  %v305_v53 = vld [vmem:[#allocation7 + $0x110] sm:$0xff] }
0x171c   : > { %10044 = vmatprep.subr.mxu0 %v12975_v7  ;;  %10077 = vmatprep.subr.mxu1 %v12975_v7 }
0x171d   : > { %10045 = vmatpush3.msra.mxu0 %v12038_v33  ;;  %10078 = vmatpush3.msra.mxu1 %v12025_v60  ;;  %v6975_v51 = vand.u32 4294901760, %v6974_v40  ;;  %v6988_v60 = vsub.f32 %v12162_v36, %v6987_v31  ;;  %v287_v33 = vld [vmem:[#allocation7 + $0x80] sm:$0xff] }
0x171e   : > { %10046 = vmatprep.subr.mxu0 %v12975_v7  ;;  %10079 = vmatprep.subr.mxu1 %v12975_v7  ;;  %v12253_v6 = vand.u32 4294901760, %v287_v33 }
0x171f   : > { %10047 = vmatpush3.msra.mxu0 %v12056_v38  ;;  %10080 = vmatpush3.msra.mxu1 %v12040_v45  ;;  %v6989_v26 = vand.u32 4294901760, %v6988_v60  ;;  %v12241_v45 = vsub.f32 %v290_v17, %v12228_v9 }
0x1720   : > { %10048 = vmatprep.subr.mxu0 %v12975_v7  ;;  %10081 = vmatprep.subr.mxu1 %v12975_v7 }
0x1721   : > { %10049 = vmatpush3.msra.mxu0 %v12072_v30  ;;  %10050 = vmatprep.mubr.msk.f32.mxu0 %vm10760_vm1, %v12975_v7  ;;  %v7463_v16 = vand.u32 4294901760, %v12241_v45  ;;  %v7355_v30 = vsel %vm438_vm0, %v7354_v14, 0  ;;  %v301_v14 = vld [vmem:[#allocation7 + $0xf0] sm:$0xff] }
0x1722   : > { %10082 = vmatpush3.msra.mxu1 %v12058_v48  ;;  %10051 = vmatmul.mubr.f32.vlgmr.msra.gmra.mxu0 %v12104_v20  ;;  %v12307_v56 = vand.u32 4294901760, %v7355_v30 }
0x1723   : > { %10064 = vmatprep.subr.mxu0 %v12975_v7  ;;  %10083 = vmatprep.mubr.msk.f32.mxu1 %vm10760_vm1, %v12975_v7  ;;  %v7464_v38 = vsub.f32 %v12241_v45, %v7463_v16 }
0x1724   : > { %10097 = vmatprep.subr.mxu1 %v12975_v7  ;;  %10065 = vmatpush3.msra.mxu0 %v6370_v2  ;;  %v288_v2 = vld [vmem:[#allocation7 + $0x88] sm:$0xff]  ;;  %v7427_v35 = vsub.f32 %v7355_v30, %v12307_v56  ;;  %v12486_v30 = vand.u32 4294901760, %v301_v14 }
0x1725   : > { %10084 = vmatmul.mubr.f32.vlgmr.msra.gmra.mxu1 %v12092_v10  ;;  %10066 = vmatprep.subr.mxu0 %v12975_v7  ;;  %v12243_v5 = vand.u32 4294901760, %v288_v2  ;;  %v7465_v62 = vand.u32 4294901760, %v7464_v38 }
0x1726   : > { %10098 = vmatpush3.msra.mxu1 %v6975_v51  ;;  %10067 = vmatpush3.msra.mxu0 %v6377_v3  ;;  %v12270_v3 = vsub.f32 %v287_v33, %v12253_v6  ;;  %v7428_v23 = vand.u32 4294901760, %v7427_v35  ;;  %12997 = vst [vmem:[#allocation37_spill] sm:$0xff] %v12486_v30 }
0x1727   : > { %10099 = vmatprep.subr.mxu1 %v12975_v7  ;;  %10068 = vmatprep.subr.mxu0 %v12975_v7  ;;  %v12262_v54 = vsub.f32 %v288_v2, %v12243_v5 }
0x1728   : > { %10100 = vmatpush3.msra.mxu1 %v6982_v58  ;;  %10069 = vmatpush3.msra.mxu0 %v6384_v8  ;;  %v7484_v25 = vand.u32 4294901760, %v12270_v3  ;;  %v12435_v58 = vand.u32 4294901760, %v305_v53 }
0x1729   : > { %10101 = vmatprep.subr.mxu1 %v12975_v7  ;;  %10070 = vmatprep.subr.mxu0 %v12975_v7  ;;  %v7477_v48 = vand.u32 4294901760, %v12262_v54 }
0x172a   : > { %10102 = vmatpush3.msra.mxu1 %v6989_v26  ;;  %10071 = vmatpush3.msra.mxu0 %v6391_v18  ;;  %v7485_v11 = vsub.f32 %v12270_v3, %v7484_v25  ;;  %12988 = vst [vmem:[#allocation28_spill] sm:$0xff] %v12435_v58  ;;  %v304_v26 = vld [vmem:[#allocation7 + $0x108] sm:$0xff]  ;;  %v12446_v43 = vsub.f32 %v305_v53, %v12435_v58 }
0x172b   : > { %10103 = vmatprep.subr.mxu1 %v12975_v7  ;;  %10072 = vmatprep.mubr.msk.f32.mxu0 %vm10760_vm1, %v12975_v7  ;;  %v7478_v8 = vsub.f32 %v12262_v54, %v7477_v48 }
0x172c   : > { %10104 = vmatpush3.msra.mxu1 %v6996_v55  ;;  %10073 = vmatmul.mubr.f32.vlgmr.msra.gmra.mxu0 %v12092_v10  ;;  %v7486_v46 = vand.u32 4294901760, %v7485_v11  ;;  %12990 = vst [vmem:[#allocation30_spill] sm:$0xff] %v12446_v43 }
0x172d   : > { %10086 = vmatprep.subr.mxu0 %v12975_v7  ;;  %10105 = vmatprep.mubr.msk.f32.mxu1 %vm10760_vm1, %v12975_v7  ;;  %v7479_v18 = vand.u32 4294901760, %v7478_v8 }
0x172e   : > { %10119 = vmatprep.subr.mxu1 %v12975_v7  ;;  %10087 = vmatpush3.msra.mxu0 %v12126_v27 }
0x172f   : > { %10106 = vmatmul.mubr.f32.vlgmr.msra.gmra.mxu1 %v12092_v10  ;;  %10088 = vmatprep.subr.mxu0 %v12975_v7 }
0x1730   : > { %10120 = vmatpush3.msra.mxu1 %v12126_v27  ;;  %10089 = vmatpush3.msra.mxu0 %v12132_v0 }
0x1731   : > { %10121 = vmatprep.subr.mxu1 %v12975_v7  ;;  %10090 = vmatprep.subr.mxu0 %v12975_v7 }
0x1732   : > { %10122 = vmatpush3.msra.mxu1 %v12132_v0  ;;  %10091 = vmatpush3.msra.mxu0 %v12143_v22 }
0x1733   : > { %10123 = vmatprep.subr.mxu1 %v12975_v7  ;;  %10092 = vmatprep.subr.mxu0 %v12975_v7 }
0x1734   : > { %10124 = vmatpush3.msra.mxu1 %v12143_v22  ;;  %10093 = vmatpush3.msra.mxu0 %v12153_v32 }
0x1735   : > { %10125 = vmatprep.subr.mxu1 %v12975_v7  ;;  %10094 = vmatprep.mubr.msk.f32.mxu0 %vm10760_vm1, %v12975_v7 }
0x1736   : > { %10126 = vmatpush3.msra.mxu1 %v12153_v32  ;;  %10108 = vmatprep.subr.mxu0 %v12975_v7 }
0x1737   : > { %10127 = vmatprep.mubr.msk.f32.mxu1 %vm10760_vm1, %v12975_v7  ;;  %10141 = vmatprep.subr.mxu1 %v12975_v7 }
0x1738   : > { %10095 = vmatmul.mubr.f32.vlgmr.msra.gmra.mxu0 %v12138_v1  ;;  %10128 = vmatmul.mubr.f32.vlgmr.msra.gmra.mxu1 %v12114_v41  ;;  %v12392_v41 = vand.u32 4294901760, %v310_v13  ;;  %v307_v1 = vld [vmem:[#allocation7 + $0x120] sm:$0xff] }
0x1739   : > { %10109 = vmatpush3.msra.mxu0 %v12141_v21  ;;  %10142 = vmatpush3.msra.mxu1 %v12126_v27  ;;  %v308_v27 = vld [vmem:[#allocation7 + $0x128] sm:$0xff] }
0x173a   : > { %10110 = vmatprep.subr.mxu0 %v12975_v7  ;;  %10143 = vmatprep.subr.mxu1 %v12975_v7  ;;  %12979 = vst [vmem:[#allocation19_spill] sm:$0xff] %v12392_v41  ;;  %v12395_v12 = vsub.f32 %v310_v13, %v12392_v41  ;;  %v12405_v63 = vand.u32 4294901760, %v308_v27 }
0x173b   : > { %10111 = vmatpush3.msra.mxu0 %v12151_v47  ;;  %10144 = vmatpush3.msra.mxu1 %v12132_v0  ;;  %v12403_v0 = vsub.f32 %v309_v44, %v12397_v49 }
0x173c   : > { %10112 = vmatprep.subr.mxu0 %v12975_v7  ;;  %10145 = vmatprep.subr.mxu1 %v12975_v7  ;;  %12980 = vst [vmem:[#allocation20_spill] sm:$0xff] %v12395_v12  ;;  %v12892_v52 = vand.u32 4294901760, %v12395_v12  ;;  %12983 = vst [vmem:[#allocation23_spill] sm:$0xff] %v12405_v63  ;;  %v12414_v47 = vsub.f32 %v308_v27, %v12405_v63 }
0x173d   : > { %10113 = vmatpush3.msra.mxu0 %v12162_v36  ;;  %10146 = vmatpush3.msra.mxu1 %v12143_v22  ;;  %12982 = vst [vmem:[#allocation22_spill] sm:$0xff] %v12403_v0  ;;  %v12891_v22 = vand.u32 4294901760, %v12403_v0 }
0x173e   : > { %10114 = vmatprep.subr.mxu0 %v12975_v7  ;;  %10147 = vmatprep.subr.mxu1 %v12975_v7  ;;  %v7946_v21 = vsub.f32 %v12395_v12, %v12892_v52  ;;  %12984 = vst [vmem:[#allocation24_spill] sm:$0xff] %v12414_v47 }
0x173f   : > { %10115 = vmatpush3.msra.mxu0 %v12170_v19  ;;  %10148 = vmatpush3.msra.mxu1 %v12153_v32  ;;  %v12416_v32 = vand.u32 4294901760, %v307_v1  ;;  %v12890_v19 = vand.u32 4294901760, %v12414_v47 }
0x1740   : > { %10116 = vmatprep.mubr.msk.f32.mxu0 %vm10760_vm1, %v12975_v7  ;;  %10130 = vmatprep.subr.mxu0 %v12975_v7  ;;  %v7947_v36 = vand.u32 4294901760, %v7946_v21  ;;  %v12513_v21 = vpop.f32.mrf.mxu1 }
0x1741   : > { %10149 = vmatprep.mubr.msk.f32.mxu1 %vm10760_vm1, %v12975_v7  ;;  %10163 = vmatprep.subr.mxu1 %v12975_v7  ;;  %12985 = vst [vmem:[#allocation25_spill] sm:$0xff] %v12416_v32  ;;  %v12425_v40 = vsub.f32 %v307_v1, %v12416_v32  ;;  %v7960_v51 = vsub.f32 %v12414_v47, %v12890_v19  ;;  %v298_v1 = vld [vmem:[#allocation7 + $0xd8] sm:$0xff] }
0x1742   : > { %10117 = vmatmul.mubr.f32.vlgmr.msra.gmra.mxu0 %v12104_v20  ;;  %10150 = vmatmul.mubr.f32.vlgmr.msra.gmra.mxu1 %v12092_v10  ;;  %v7429_v20 = vsub.f32 %v7427_v35, %v7428_v23  ;;  %v12520_v53 = vand.u32 4294901760, %v298_v1 }
0x1743   : > { %10131 = vmatpush3.msra.mxu0 %v6973_v37  ;;  %10164 = vmatpush3.msra.mxu1 %v7465_v62  ;;  %v306_v37 = vld [vmem:[#allocation7 + $0x118] sm:$0xff]  ;;  %12986 = vst [vmem:[#allocation26_spill] sm:$0xff] %v12425_v40  ;;  %v12889_v60 = vand.u32 4294901760, %v12425_v40  ;;  %v7961_v55 = vand.u32 4294901760, %v7960_v51  ;;  %v297_v51 = vld [vmem:[#allocation7 + $0xd0] sm:$0xff] }
0x1744   : > { %10132 = vmatprep.subr.mxu0 %v12975_v7  ;;  %10165 = vmatprep.subr.mxu1 %v12975_v7  ;;  %13003 = vst [vmem:[#allocation43_spill] sm:$0xff] %v12520_v53 }
0x1745   : > { %10133 = vmatpush3.msra.mxu0 %v6980_v39  ;;  %10166 = vmatpush3.msra.mxu1 %v7472_v15  ;;  %v7953_v39 = vsub.f32 %v12403_v0, %v12891_v22  ;;  %v7967_v17 = vsub.f32 %v12425_v40, %v12889_v60  ;;  %v300_v15 = vld [vmem:[#allocation7 + $0xe8] sm:$0xff] }
0x1746   : > { %10134 = vmatprep.subr.mxu0 %v12975_v7  ;;  %10167 = vmatprep.subr.mxu1 %v12975_v7 }
0x1747   : > { %10135 = vmatpush3.msra.mxu0 %v6987_v31  ;;  %10168 = vmatpush3.msra.mxu1 %v7479_v18  ;;  %v12428_v31 = vand.u32 4294901760, %v306_v37  ;;  %v7968_v33 = vand.u32 4294901760, %v7967_v17  ;;  %v12533_v17 = vsub.f32 %v298_v1, %v12520_v53 }
0x1748   : > { %10136 = vmatprep.subr.mxu0 %v12975_v7  ;;  %10169 = vmatprep.subr.mxu1 %v12975_v7 }
0x1749   : > { %10137 = vmatpush3.msra.mxu0 %v6994_v50  ;;  %10170 = vmatpush3.msra.mxu1 %v7486_v46  ;;  %12987 = vst [vmem:[#allocation27_spill] sm:$0xff] %v12428_v31  ;;  %v7954_v50 = vand.u32 4294901760, %v7953_v39  ;;  %v12439_v28 = vsub.f32 %v306_v37, %v12428_v31  ;;  %v12494_v46 = vand.u32 4294901760, %v300_v15  ;;  %13004 = vst [vmem:[#allocation44_spill] sm:$0xff] %v12533_v17 }
0x174a   : > { %10171 = vmatprep.mubr.msk.f32.mxu1 %vm10760_vm1, %v12975_v7  ;;  %10138 = vmatprep.mubr.msk.f32.mxu0 %vm10760_vm1, %v12975_v7 }
0x174b   : > { %10152 = vmatprep.subr.mxu0 %v12975_v7  ;;  %10172 = vmatmul.mubr.f32.vlgmr.msra.gmra.mxu1 %v12307_v56  ;;  %12989 = vst [vmem:[#allocation29_spill] sm:$0xff] %v12439_v28  ;;  %v12888_v2 = vand.u32 4294901760, %v12439_v28  ;;  %12998 = vst [vmem:[#allocation38_spill] sm:$0xff] %v12494_v46  ;;  %v12506_v13 = vsub.f32 %v300_v15, %v12494_v46  ;;  %v295_v15 = vld [vmem:[#allocation7 + $0xc0] sm:$0xff] }
0x174c   : > { %10185 = vmatprep.subr.mxu1 %v12975_v7  ;;  %10139 = vmatmul.mubr.f32.vlgmr.msra.gmra.mxu0 %v12092_v10  ;;  %v7430_v10 = vand.u32 4294901760, %v7429_v20 }
0x174d   : > { %10153 = vmatpush3.msra.mxu0 %v12228_v9  ;;  %10186 = vmatpush3.msra.mxu1 %v12228_v9  ;;  %13000 = vst [vmem:[#allocation40_spill] sm:$0xff] %v12506_v13 }
0x174e   : > { %10154 = vmatprep.subr.mxu0 %v12975_v7  ;;  %10187 = vmatprep.subr.mxu1 %v12975_v7 }
0x174f   : > { %10155 = vmatpush3.msra.mxu0 %v12234_v29  ;;  %10188 = vmatpush3.msra.mxu1 %v12234_v29 }
0x1750   : > { %10156 = vmatprep.subr.mxu0 %v12975_v7  ;;  %10189 = vmatprep.subr.mxu1 %v12975_v7 }
0x1751   : > { %10157 = vmatpush3.msra.mxu0 %v12243_v5  ;;  %10190 = vmatpush3.msra.mxu1 %v12243_v5 }
0x1752   : > { %10158 = vmatprep.subr.mxu0 %v12975_v7  ;;  %10191 = vmatprep.subr.mxu1 %v12975_v7 }
0x1753   : > { %10159 = vmatpush3.msra.mxu0 %v12253_v6  ;;  %10160 = vmatprep.mubr.msk.f32.mxu0 %vm10760_vm1, %v12975_v7 }
0x1754   : > { %10192 = vmatpush3.msra.mxu1 %v12253_v6  ;;  %10193 = vmatprep.mubr.msk.f32.mxu1 %vm10760_vm1, %v12975_v7 }
0x1755   : > { %10161 = vmatmul.mubr.f32.vlgmr.msra.gmra.mxu0 %v7430_v10  ;;  %10174 = vmatprep.subr.mxu0 %v12975_v7 }
0x1756   : > { %10194 = vmatmul.mubr.f32.vlgmr.msra.gmra.mxu1 %v7428_v23  ;;  %10207 = vmatprep.subr.mxu1 %v12975_v7  ;;  %v299_v23 = vld [vmem:[#allocation7 + $0xe0] sm:$0xff] }
0x1757   : > { %10175 = vmatpush3.msra.mxu0 %v12241_v45  ;;  %10208 = vmatpush3.msra.mxu1 %v12228_v9  ;;  %v12448_v9 = vand.u32 4294901760, %v304_v26  ;;  %v12887_v45 = vand.u32 4294901760, %v12446_v43  ;;  %v12508_v44 = vand.u32 4294901760, %v299_v23 }
0x1758   : > { %10176 = vmatprep.subr.mxu0 %v12975_v7  ;;  %10209 = vmatprep.subr.mxu1 %v12975_v7 }
0x1759   : > { %10177 = vmatpush3.msra.mxu0 %v12251_v61  ;;  %10210 = vmatpush3.msra.mxu1 %v12234_v29  ;;  %12991 = vst [vmem:[#allocation31_spill] sm:$0xff] %v12448_v9  ;;  %v303_v29 = vld [vmem:[#allocation7 + $0x100] sm:$0xff]  ;;  %13001 = vst [vmem:[#allocation41_spill] sm:$0xff] %v12508_v44  ;;  %v12518_v39 = vsub.f32 %v299_v23, %v12508_v44 }
0x175a   : > { %10178 = vmatprep.subr.mxu0 %v12975_v7  ;;  %10211 = vmatprep.subr.mxu1 %v12975_v7  ;;  %v12458_v61 = vand.u32 4294901760, %v303_v29 }
0x175b   : > { %10179 = vmatpush3.msra.mxu0 %v12262_v54  ;;  %10212 = vmatpush3.msra.mxu1 %v12243_v5  ;;  %v12456_v5 = vsub.f32 %v304_v26, %v12448_v9  ;;  %v7981_v54 = vsub.f32 %v12446_v43, %v12887_v45  ;;  %13002 = vst [vmem:[#allocation42_spill] sm:$0xff] %v12518_v39 }
0x175c   : > { %10180 = vmatprep.subr.mxu0 %v12975_v7  ;;  %10213 = vmatprep.subr.mxu1 %v12975_v7  ;;  %12993 = vst [vmem:[#allocation33_spill] sm:$0xff] %v12458_v61 }
0x175d   : > { %10181 = vmatpush3.msra.mxu0 %v12270_v3  ;;  %10182 = vmatprep.mubr.msk.f32.mxu0 %vm10760_vm1, %v12975_v7  ;;  %12992 = vst [vmem:[#allocation32_spill] sm:$0xff] %v12456_v5  ;;  %v12471_v3 = vsub.f32 %v303_v29, %v12458_v61  ;;  %v7982_v57 = vand.u32 4294901760, %v7981_v54  ;;  %v12535_v29 = vand.u32 4294901760, %v297_v51 }
0x175e   : > { %10214 = vmatpush3.msra.mxu1 %v12253_v6  ;;  %10215 = vmatprep.mubr.msk.f32.mxu1 %vm10760_vm1, %v12975_v7  ;;  %v7974_v6 = vsub.f32 %v12439_v28, %v12888_v2 }
0x175f   : > { %10183 = vmatmul.mubr.f32.vlgmr.msra.gmra.mxu0 %v7427_v35  ;;  %10196 = vmatprep.subr.mxu0 %v12975_v7  ;;  %12994 = vst [vmem:[#allocation34_spill] sm:$0xff] %v12471_v3  ;;  %v12885_v62 = vand.u32 4294901760, %v12471_v3  ;;  %v12498_v35 = vsub.f32 %v301_v14, %v12486_v30  ;;  %13005 = vst [vmem:[#allocation45_spill] sm:$0xff] %v12535_v29  ;;  %v12878_v14 = vand.u32 4294901760, %v12533_v17 }
0x1760   : > { %10216 = vmatmul.mubr.f32.vlgmr.msra.gmra.mxu1 %v12307_v56  ;;  %10197 = vmatpush3.msra.mxu0 %v7463_v16  ;;  %v302_v16 = vld [vmem:[#allocation7 + $0xf8] sm:$0xff] }
0x1761   : > { %10198 = vmatprep.subr.mxu0 %v12975_v7  ;;  %10204 = vmatprep.mubr.msk.f32.mxu0 %vm10760_vm1, %v12975_v7  ;;  %v12473_v38 = vand.u32 4294901760, %v302_v16  ;;  %12999 = vst [vmem:[#allocation39_spill] sm:$0xff] %v12498_v35  ;;  %v12883_v27 = vand.u32 4294901760, %v12498_v35 }
0x1762   : > { %10199 = vmatpush3.msra.mxu0 %v7470_v59  ;;  %10253 = vmatprep.subr.mxu1 %v12975_v7  ;;  %v12886_v59 = vand.u32 4294901760, %v12456_v5 }
0x1763   : > { %10200 = vmatprep.subr.mxu0 %v12975_v7  ;;  %10285 = vmatprep.mubr.msk.f32.mxu1 %vm10760_vm1, %v12975_v7  ;;  %12995 = vst [vmem:[#allocation35_spill] sm:$0xff] %v12473_v38  ;;  %v12483_v8 = vsub.f32 %v302_v16, %v12473_v38  ;;  %v12539_v16 = vpop.f32.mrf.mxu1 }
0x1764   : > { %10201 = vmatpush3.msra.mxu0 %v7477_v48  ;;  %10254 = vmatpush3.msra.mxu1 %v7947_v36  ;;  %v7975_v48 = vand.u32 4294901760, %v7974_v6  ;;  %v12881_v36 = vand.u32 4294901760, %v12506_v13  ;;  %v296_v6 = vld [vmem:[#allocation7 + $0xc8] sm:$0xff] }
0x1765   : > { %10202 = vmatprep.subr.mxu0 %v12975_v7  ;;  %10255 = vmatprep.subr.mxu1 %v12975_v7  ;;  %12996 = vst [vmem:[#allocation36_spill] sm:$0xff] %v12483_v8  ;;  %v12884_v18 = vand.u32 4294901760, %v12483_v8  ;;  %v12565_v1 = vpop.f32.mrf.mxu1 }
0x1766   : > { %10203 = vmatpush3.msra.mxu0 %v7484_v25  ;;  %10256 = vmatpush3.msra.mxu1 %v7954_v50  ;;  %v7988_v25 = vsub.f32 %v12456_v5, %v12886_v59  ;;  %v8009_v50 = vsub.f32 %v12498_v35, %v12883_v27  ;;  %v8016_v26 = vsub.f32 %v12506_v13, %v12881_v36 }
0x1767   : > { %10205 = vmatmul.mubr.f32.vlgmr.msra.gmra.mxu0 %v12307_v56  ;;  %10218 = vmatprep.subr.mxu0 %v12975_v7  ;;  %v7995_v56 = vsub.f32 %v12471_v3, %v12885_v62  ;;  %v8002_v10 = vsub.f32 %v12483_v8, %v12884_v18 }
0x1768   : > { %10250 = vmatprep.mubr.msk.f32.mxu0 %vm10760_vm1, %v12975_v7  ;;  %10219 = vmatpush3.msra.mxu0 %v12392_v41  ;;  %v7989_v11 = vand.u32 4294901760, %v7988_v25  ;;  %v8017_v54 = vand.u32 4294901760, %v8016_v26  ;;  %v12550_v25 = vand.u32 4294901760, %v296_v6 }
0x1769   : > { %10220 = vmatprep.subr.mxu0 %v12975_v7  ;;  %10257 = vmatprep.subr.mxu1 %v12975_v7  ;;  %v7996_v20 = vand.u32 4294901760, %v7995_v56  ;;  %v8003_v37 = vand.u32 4294901760, %v8002_v10  ;;  %v8030_v56 = vsub.f32 %v12533_v17, %v12878_v14 }
0x176a   : > { %10221 = vmatpush3.msra.mxu0 %v12397_v49  ;;  %10258 = vmatpush3.msra.mxu1 %v7961_v55  ;;  %v12879_v55 = vand.u32 4294901760, %v12518_v39  ;;  %13007 = vst [vmem:[#allocation47_spill] sm:$0xff] %v12550_v25  ;;  %v12562_v10 = vsub.f32 %v296_v6, %v12550_v25 }
0x176b   : > { %10222 = vmatprep.subr.mxu0 %v12975_v7  ;;  %10259 = vmatprep.subr.mxu1 %v12975_v7 }
0x176c   : > { %10223 = vmatpush3.msra.mxu0 %v12405_v63  ;;  %10260 = vmatpush3.msra.mxu1 %v7968_v33  ;;  %v8010_v33 = vand.u32 4294901760, %v8009_v50  ;;  %13009 = vst [vmem:[#allocation49_spill] sm:$0xff] %v12562_v10  ;;  %v8031_v50 = vand.u32 4294901760, %v8030_v56 }
0x176d   : > { %10224 = vmatprep.subr.mxu0 %v12975_v7  ;;  %10261 = vmatprep.subr.mxu1 %v12975_v7 }
0x176e   : > { %10225 = vmatpush3.msra.mxu0 %v12416_v32  ;;  %10262 = vmatpush3.msra.mxu1 %v7975_v48  ;;  %v8023_v48 = vsub.f32 %v12518_v39, %v12879_v55 }
0x176f   : > { %10226 = vmatprep.subr.mxu0 %v12975_v7  ;;  %10263 = vmatprep.subr.mxu1 %v12975_v7 }
0x1770   : > { %10227 = vmatpush3.msra.mxu0 %v12428_v31  ;;  %10264 = vmatpush3.msra.mxu1 %v7982_v57  ;;  %v12547_v57 = vsub.f32 %v297_v51, %v12535_v29 }
0x1771   : > { %10228 = vmatprep.subr.mxu0 %v12975_v7  ;;  %10265 = vmatprep.subr.mxu1 %v12975_v7 }
0x1772   : > { %10229 = vmatpush3.msra.mxu0 %v12435_v58  ;;  %10266 = vmatpush3.msra.mxu1 %v7989_v11  ;;  %13006 = vst [vmem:[#allocation46_spill] sm:$0xff] %v12547_v57  ;;  %v8024_v11 = vand.u32 4294901760, %v8023_v48  ;;  %v12877_v23 = vand.u32 4294901760, %v12547_v57 }
0x1773   : > { %10230 = vmatprep.subr.mxu0 %v12975_v7  ;;  %10267 = vmatprep.subr.mxu1 %v12975_v7 }
0x1774   : > { %10231 = vmatpush3.msra.mxu0 %v12448_v9  ;;  %10268 = vmatpush3.msra.mxu1 %v7996_v20  ;;  %v12558_v20 = vand.u32 4294901760, %v295_v15  ;;  %v8037_v51 = vsub.f32 %v12547_v57, %v12877_v23  ;;  %v8667_v9 = vld [vmem:[#allocation7 + $0x143] ss:$0 sm:$0xff] }
0x1775   : > { %10232 = vmatprep.subr.mxu0 %v12975_v7  ;;  %10269 = vmatprep.subr.mxu1 %v12975_v7 }
0x1776   : > { %10233 = vmatpush3.msra.mxu0 %v12458_v61  ;;  %10270 = vmatpush3.msra.mxu1 %v8003_v37  ;;  %13008 = vst [vmem:[#allocation48_spill] sm:$0xff] %v12558_v20  ;;  %v12567_v37 = vpop.f32.mrf.mxu0  ;;  %v12574_v26 = vsub.f32 %v295_v15, %v12558_v20  ;;  %v8038_v6 = vand.u32 4294901760, %v8037_v51  ;;  %v12585_v15 = vpop.f32.mrf.mxu1  ;;  %v10572_v61 = vld [vmem:[#allocation7 + $0x142] ss:$0 sm:$0xff] }
0x1777   : > { %10234 = vmatprep.subr.mxu0 %v12975_v7  ;;  %10271 = vmatprep.subr.mxu1 %v12975_v7  ;;  %v5557_v40 = vadd.f32 %v10572_v61, %v11946_v24  ;;  %v5577_v47 = vadd.f32 %v10572_v61, %v12567_v37 }
0x1778   : > { %10235 = vmatpush3.msra.mxu0 %v12473_v38  ;;  %10272 = vmatpush3.msra.mxu1 %v8010_v33  ;;  %13010 = vst [vmem:[#allocation50_spill] sm:$0xff] %v12574_v26  ;;  %v12880_v33 = vand.u32 4294901760, %v12562_v10  ;;  %v5566_v56 = vpop.f32.mrf.mxu0 }
0x1779   : > { %10236 = vmatprep.subr.mxu0 %v12975_v7  ;;  %10273 = vmatprep.subr.mxu1 %v12975_v7  ;;  %v5567_v58 = vadd.f32 %v10572_v61, %v5566_v56  ;;  %v5714_v63 = vadd.f32 %v11944_v4, %v5557_v40  ;;  %v5726_v49 = vadd.f32 %v12513_v21, %v5577_v47 }
0x177a   : > { %10237 = vmatpush3.msra.mxu0 %v12486_v30  ;;  %10274 = vmatpush3.msra.mxu1 %v8017_v54  ;;  %v12882_v54 = vand.u32 4294901760, %v12574_v26  ;;  %v8044_v48 = vsub.f32 %v12562_v10, %v12880_v33  ;;  %v9916_v14 = vpop.f32.mrf.mxu0 }
0x177b   : > { %10238 = vmatprep.subr.mxu0 %v12975_v7  ;;  %10275 = vmatprep.subr.mxu1 %v12975_v7  ;;  %v5597_v0 = vadd.f32 %v10572_v61, %v9916_v14 }
0x177c   : > { %10239 = vmatpush3.msra.mxu0 %v12494_v46  ;;  %10276 = vmatpush3.msra.mxu1 %v8024_v11  ;;  %v8051_v11 = vsub.f32 %v12574_v26, %v12882_v54  ;;  %v8045_v51 = vand.u32 4294901760, %v8044_v48  ;;  %v5586_v36 = vpop.f32.mrf.mxu0 }
0x177d   : > { %10240 = vmatprep.subr.mxu0 %v12975_v7  ;;  %10277 = vmatprep.subr.mxu1 %v12975_v7  ;;  %v5587_v31 = vadd.f32 %v10572_v61, %v5586_v36 }
0x177e   : > { %10241 = vmatpush3.msra.mxu0 %v12508_v44  ;;  %10278 = vmatpush3.msra.mxu1 %v8031_v50  ;;  %v8052_v50 = vand.u32 4294901760, %v8051_v11 }
0x177f   : > { %10242 = vmatprep.subr.mxu0 %v12975_v7  ;;  %10279 = vmatprep.subr.mxu1 %v12975_v7  ;;  %v5732_v24 = vadd.f32 %v12585_v15, %v5587_v31 }
0x1780   : > { %10243 = vmatpush3.msra.mxu0 %v12520_v53  ;;  %10280 = vmatpush3.msra.mxu1 %v8038_v6 }
0x1781   : > { %10244 = vmatprep.subr.mxu0 %v12975_v7  ;;  %10281 = vmatprep.subr.mxu1 %v12975_v7 }
0x1782   : > { %10245 = vmatpush3.msra.mxu0 %v12535_v29  ;;  %10282 = vmatpush3.msra.mxu1 %v8045_v51 }
0x1783   : > { %10246 = vmatprep.subr.mxu0 %v12975_v7  ;;  %10283 = vmatprep.subr.mxu1 %v12975_v7 }
0x1784   : > { %10247 = vmatpush3.msra.mxu0 %v12550_v25  ;;  %10284 = vmatpush3.msra.mxu1 %v8052_v50 }
0x1785   : > { %10248 = vmatprep.subr.mxu0 %v12975_v7  ;;  %10323 = vmatprep.subr.mxu1 %v12975_v7 }
0x1786   : > { %10249 = vmatpush3.msra.mxu0 %v12558_v20 }
0x1787   : > { %10288 = vmatprep.subr.mxu0 %v12975_v7  ;;  %v5720_v7 = vadd.f32 %v12539_v16, %v5567_v58 }
0x17ad   : > { %v12591_v23 = vpop.f32.mrf.mxu1 }
0x17af   : > { %v12594_v55 = vpop.f32.mrf.mxu1 }
0x17b1   : > { %v12597_v33 = vpop.f32.mrf.mxu1 }
0x17b3   : > { %v5955_v54 = vpop.f32.mrf.mxu1 }
0x17b5   : > { %v9919_v6 = vpop.f32.mrf.mxu0  ;;  %v12600_v48 = vpop.f32.mrf.mxu1 }
0x17b6   : > { %v5617_v12 = vadd.f32 %v10572_v61, %v9919_v6 }
0x17b7   : > { %v5606_v27 = vpop.f32.mrf.mxu0  ;;  %v12602_v18 = vpop.f32.mrf.mxu1 }
0x17b8   : > { %v5750_v37 = vadd.f32 %v12591_v23, %v5617_v12 }
0x17b9   : > { %v9950_v11 = vpop.f32.mrf.mxu0  ;;  %v12604_v51 = vpop.f32.mrf.mxu1 }
0x17ba   : > { %v5837_v41 = vadd.f32 %v9950_v11, %v5714_v63 }
0x17bb   : > { %v5829_v62 = vpop.f32.mrf.mxu0  ;;  %v12606_v59 = vpop.f32.mrf.mxu1 }
0x17bc   : > { %v5830_v50 = vadd.f32 %v5829_v62, %v11948_v42 }
0x17bd   : > { %v9953_v45 = vpop.f32.mrf.mxu0  ;;  %v12609_v2 = vpop.f32.mrf.mxu1 }
0x17be   : > { %v12611_v60 = vadd.f32 %v5955_v54, %v5830_v50  ;;  %v5851_v14 = vadd.f32 %v9953_v45, %v5726_v49 }
0x17bf   : > { %v5843_v19 = vpop.f32.mrf.mxu0  ;;  %v12613_v22 = vpop.f32.mrf.mxu1 }
0x17c0   : > { %v5844_v36 = vadd.f32 %v5843_v19, %v5720_v7  ;;  %v5980_v63 = vadd.f32 %v12600_v48, %v5851_v14 }
0x17c1   : > { %v9956_v52 = vpop.f32.mrf.mxu0  ;;  %v12615_v34 = vpop.f32.mrf.mxu1 }
0x17c2   : > { %v5972_v31 = vadd.f32 %v12602_v18, %v5844_v36 }
0x17c3   : > { %v5857_v26 = vpop.f32.mrf.mxu0  ;;  %v12617_v10 = vpop.f32.mrf.mxu1 }
0x17c4   : > { %13011 = vst [vmem:[#allocation51_spill] sm:$0xff] %v12617_v10  ;;  %v5858_v4 = vadd.f32 %v5857_v26, %v5732_v24 }
0x17c5   : > { %v9959_v57 = vpop.f32.mrf.mxu0  ;;  %v12619_v17 = vpop.f32.mrf.mxu1 }
0x17c6   : > { %v5879_v40 = vadd.f32 %v9959_v57, %v5750_v37  ;;  %v5988_v7 = vadd.f32 %v12606_v59, %v5858_v4 }
0x17c7   : > { %v5871_v20 = vpop.f32.mrf.mxu0  ;;  %v12621_v39 = vpop.f32.mrf.mxu1 }
0x17c9   : > { %v9990_v42 = vpop.f32.mrf.mxu0  ;;  %v12623_v62 = vpop.f32.mrf.mxu1 }
0x17cb   : > { %v12625_v54 = vpop.f32.mrf.mxu0  ;;  %v12627_v50 = vpop.f32.mrf.mxu1  ;;  %v13012_v37 = vld [vmem:[#allocation51_spill] sm:$0xff] }
0x17cc   : > { %v6095_v11 = vadd.f32 %v12625_v54, %v12611_v60 }
0x17cd   : > { %v9993_v25 = vpop.f32.mrf.mxu0  ;;  %v12629_v13 = vpop.f32.mrf.mxu1 }
0x17cf   : > { %v6106_v29 = vpop.f32.mrf.mxu0  ;;  %v12631_v35 = vpop.f32.mrf.mxu1 }
0x17d0   : > { %v6107_v19 = vadd.f32 %v6106_v29, %v5972_v31 }
0x17d1   : > { %v9996_v53 = vpop.f32.mrf.mxu0  ;;  %v6430_v8 = vpop.f32.mrf.mxu1 }
0x17d3   : > { %v6118_v44 = vpop.f32.mrf.mxu0  ;;  %v10041_v3 = vpop.f32.mrf.mxu1 }
0x17d5   : > { %v9999_v46 = vpop.f32.mrf.mxu0 }
0x17d7   : > { %v6130_v5 = vpop.f32.mrf.mxu0 }
0x17da   : > { %v6339_v30 = vpop.f32.mrf.mxu0  ;;  %v6587_v43 = vpop.f32.mrf.mxu1 }
0x17db   : > { %v6340_v32 = vadd.f32 %v8667_v9, %v6339_v30 }
0x17dc   : > { %v10030_v38 = vpop.f32.mrf.mxu0  ;;  %v10063_v28 = vpop.f32.mrf.mxu1 }
0x17dd   : > { %v5738_v28 = vadd.f32 %v12565_v1, %v5597_v0  ;;  %v5607_v38 = vadd.f32 %v10572_v61, %v5606_v27  ;;  %v6431_v9 = vadd.f32 %v6430_v8, %v6340_v32  ;;  %v5964_v0 = vadd.f32 %v12597_v33, %v5837_v41 }
0x17de   : > { %v6113_v32 = vadd.f32 %v9993_v25, %v5980_v63  ;;  %v6119_v27 = vadd.f32 %v6118_v44, %v5988_v7 }
0x17df   : > { %v5865_v6 = vadd.f32 %v9956_v52, %v5738_v28  ;;  %v5744_v58 = vadd.f32 %v12594_v55, %v5607_v38  ;;  %v6101_v49 = vadd.f32 %v9990_v42, %v5964_v0  ;;  %v6012_v52 = vadd.f32 %v12609_v2, %v5879_v40 }
0x17e0   : > { %v6230_v23 = vadd.f32 %v12619_v17, %v6113_v32 }
0x17e1   : > { %v5996_v12 = vadd.f32 %v12604_v51, %v5865_v6  ;;  %v5872_v61 = vadd.f32 %v5871_v20, %v5744_v58  ;;  %v6137_v21 = vadd.f32 %v9999_v46, %v6012_v52  ;;  %v6218_v16 = vadd.f32 %v12615_v34, %v6101_v49 }
0x17e2   : > { %v6510_v3 = vpop.f32.mrf.mxu0  ;;  %v6224_v20 = vadd.f32 %v12621_v39, %v6107_v19 }
0x17e3   : > { %v6511_v10 = vadd.f32 %v6510_v3, %v6431_v9  ;;  %v6125_v45 = vadd.f32 %v9996_v53, %v5996_v12  ;;  %v6004_v18 = vadd.f32 %v12613_v22, %v5872_v61  ;;  %v6236_v53 = vadd.f32 %v12627_v50, %v6119_v27  ;;  %v8668_v22 = vld [vmem:[#allocation7 + $0x144] ss:$0 sm:$0xff] }
0x17e4   : > { %v10052_v56 = vpop.f32.mrf.mxu0 }
0x17e5   : > { %v6745_v30 = vpop.f32.mrf.mxu1  ;;  %v6588_v8 = vadd.f32 %v6587_v43, %v6511_v10  ;;  %v6242_v59 = vadd.f32 %v12623_v62, %v6125_v45  ;;  %v6254_v43 = vadd.f32 %v12629_v13, %v6137_v21  ;;  %v6131_v46 = vadd.f32 %v6130_v5, %v6004_v18 }
0x17e6   : > { %v6212_v56 = vadd.f32 %v13012_v37, %v6095_v11  ;;  %v13014_v11 = vmov 0.0   ;;  %v13022_v37 = vld [vmem:[#allocation24_spill] sm:$0xff] }
0x17e7   : > { %v10085_v47 = vpop.f32.mrf.mxu1  ;;  %v6248_v51 = vadd.f32 %v12631_v35, %v6131_v46 }
0x17ec   : > { %v6670_v55 = vpop.f32.mrf.mxu0 }
0x17ed   : > { %v6671_v41 = vadd.f32 %v6670_v55, %v6588_v8 }
0x17ee   : > { %v10074_v57 = vpop.f32.mrf.mxu0 }
0x17ef   : > { %v6746_v2 = vadd.f32 %v6745_v30, %v6671_v41  ;;  %v7033_v25 = vpop.f32.mrf.mxu1 }
0x17f1   : > { %v6750_v44 = vadd.f32 %v6746_v2, %v6218_v16  ;;  %v6751_v29 = vadd.f32 %v6746_v2, %v6224_v20  ;;  %v10107_v10 = vpop.f32.mrf.mxu1  ;;  %v6752_v34 = vadd.f32 %v6746_v2, %v6230_v23  ;;  %v6754_v1 = vadd.f32 %v6746_v2, %v6242_v59 }
0x17f2   : > { %v6753_v26 = vadd.f32 %v6746_v2, %v6236_v53  ;;  %v6756_v33 = vadd.f32 %v6746_v2, %v6254_v43  ;;  %v6755_v50 = vadd.f32 %v6746_v2, %v6248_v51  ;;  %v6749_v6 = vadd.f32 %v6746_v2, %v6212_v56  ;;  %v13023_v56 = vld [vmem:[#allocation31_spill] sm:$0xff] }
0x17f3   : > { %v6758_v17 = vmax.f32 %v6750_v44, 0.0  ;;  %v6759_v15 = vmax.f32 %v6751_v29, 0.0  ;;  %v6760_v39 = vmax.f32 %v6752_v34, 0.0  ;;  %v6762_v48 = vmax.f32 %v6754_v1, 0.0 }
0x17f4   : > { %v6761_v5 = vmax.f32 %v6753_v26, 0.0  ;;  %v6764_v62 = vmax.f32 %v6756_v33, 0.0  ;;  %v6763_v35 = vmax.f32 %v6755_v50, 0.0  ;;  %v6757_v63 = vmax.f32 %v6749_v6, 0.0  ;;  %v13017_v50 = vld [vmem:[#allocation25_spill] sm:$0xff] }
0x17f5   : > { %v6770_v42 = vmul.f32 %v8668_v22, %v6758_v17  ;;  %v6771_v13 = vmul.f32 %v8668_v22, %v6759_v15  ;;  %v6772_v38 = vmul.f32 %v8668_v22, %v6760_v39  ;;  %v6774_v24 = vmul.f32 %v8668_v22, %v6762_v48  ;;  %v13013_v48 = vld [vmem:[#allocation19_spill] sm:$0xff]  ;;  %v13029_v6 = vld [vmem:[#allocation37_spill] sm:$0xff] }
0x17f6   : > { %v6773_v4 = vmul.f32 %v8668_v22, %v6761_v5  ;;  %v6776_v40 = vmul.f32 %v8668_v22, %v6764_v62  ;;  %v6775_v0 = vmul.f32 %v8668_v22, %v6763_v35  ;;  %v6769_v49 = vmul.f32 %v8668_v22, %v6757_v63  ;;  %v8670_v22 = vld [vmem:[#allocation7 + $0x145] ss:$0 sm:$0xff]  ;;  %v13016_v5 = vld [vmem:[#allocation23_spill] sm:$0xff]  ;;  %v13028_v35 = vld [vmem:[#allocation30_spill] sm:$0xff] }
0x17f7   : > { %v6780_v3 = vsel %vm438_vm0, %v6770_v42, 0.0  ;;  %v6783_v28 = vsel %vm438_vm0, %v6771_v13, 0.0  ;;  %v6786_v9 = vsel %vm438_vm0, %v6772_v38, 0.0  ;;  %v6792_v30 = vsel %vm438_vm0, %v6774_v24, 0.0  ;;  %v13015_v42 = vld [vmem:[#allocation21_spill] sm:$0xff]  ;;  %v13020_v38 = vld [vmem:[#allocation22_spill] sm:$0xff] }
0x17f8   : > { %6781 = vadd.xlane.f32.xlu0 %v6780_v3  ;;  %6784 = vadd.xlane.f32.xlu1 %v6783_v28  ;;  %v7190_v14 = vpop.f32.mrf.mxu1  ;;  %v6942_v36 = vpop.f32.mrf.mxu0  ;;  %v6789_v47 = vsel %vm438_vm0, %v6773_v4, 0.0  ;;  %v6798_v58 = vsel %vm438_vm0, %v6776_v40, 0.0  ;;  %v6795_v61 = vsel %vm438_vm0, %v6775_v0, 0.0  ;;  %v6777_v32 = vsel %vm438_vm0, %v6769_v49, 0.0  ;;  %v13018_v3 = vld [vmem:[#allocation20_spill] sm:$0xff]  ;;  %v13019_v28 = vld [vmem:[#allocation27_spill] sm:$0xff] }
0x17f9   : > { %v7034_v19 = vadd.f32 %v7033_v25, %v6942_v36  ;;  %v13021_v24 = vld [vmem:[#allocation28_spill] sm:$0xff]  ;;  %v13025_v36 = vld [vmem:[#allocation33_spill] sm:$0xff]  ;;  %v13032_v4 = vld [vmem:[#allocation34_spill] sm:$0xff] }
0x17fa   : > { %v10129_v60 = vpop.f32.mrf.mxu1  ;;  %v10096_v54 = vpop.f32.mrf.mxu0  ;;  %v13033_v40 = vld [vmem:[#allocation41_spill] sm:$0xff]  ;;  %v13036_v0 = vld [vmem:[#allocation39_spill] sm:$0xff]  ;;  %v13041_v49 = vld [vmem:[#allocation48_spill] sm:$0xff] }
0x17fb   : > { %v13026_v60 = vld [vmem:[#allocation29_spill] sm:$0xff]  ;;  %v13027_v54 = vld [vmem:[#allocation35_spill] sm:$0xff] }
0x17fc   : > { %6787 = vadd.xlane.f32.xlu0 %v6786_v9  ;;  %6793 = vadd.xlane.f32.xlu1 %v6792_v30  ;;  %v13030_v9 = vld [vmem:[#allocation32_spill] sm:$0xff]  ;;  %v13031_v30 = vld [vmem:[#allocation38_spill] sm:$0xff]  ;;  %v13037_v63 = vld [vmem:[#allocation45_spill] sm:$0xff] }
0x1800   : > { %6790 = vadd.xlane.f32.xlu0 %v6789_v47  ;;  %6799 = vadd.xlane.f32.xlu1 %v6798_v58  ;;  %v13034_v47 = vld [vmem:[#allocation36_spill] sm:$0xff]  ;;  %v13035_v58 = vld [vmem:[#allocation43_spill] sm:$0xff] }
0x1802   : > { %v7348_v31 = vpop.f32.mrf.mxu1  ;;  %v7113_v12 = vpop.f32.mrf.mxu0 }
0x1803   : > { %v7114_v8 = vadd.f32 %v7113_v12, %v7034_v19  ;;  %v13039_v12 = vld [vmem:[#allocation47_spill] sm:$0xff]  ;;  %v13045_v19 = vld [vmem:[#allocation50_spill] sm:$0xff] }
0x1804   : > { %v10151_v7 = vpop.f32.mrf.mxu1  ;;  %6796 = vadd.xlane.f32.xlu0 %v6795_v61  ;;  %v10118_v52 = vpop.f32.mrf.mxu0  ;;  %v13040_v61 = vld [vmem:[#allocation42_spill] sm:$0xff] }
0x1805   : > { %v7191_v41 = vadd.f32 %v7190_v14, %v7114_v8  ;;  %v13024_v14 = vld [vmem:[#allocation26_spill] sm:$0xff]  ;;  %v13042_v7 = vld [vmem:[#allocation44_spill] sm:$0xff]  ;;  %v13047_v8 = vand.u32 4294901760, %v13020_v38 }
0x1806   : > { %v13043_v52 = vld [vmem:[#allocation46_spill] sm:$0xff] }
0x1808   : > { %6778 = vadd.xlane.f32.xlu0 %v6777_v32  ;;  %v13044_v32 = vld [vmem:[#allocation49_spill] sm:$0xff] }
0x180b   : > { %v7523_v45 = vpop.f32.mrf.mxu1 }
0x180c   : > { %v7273_v27 = vpop.f32.mrf.mxu0 }
0x180d   : > { %v10173_v21 = vpop.f32.mrf.mxu1  ;;  %v7274_v16 = vadd.f32 %v7273_v27, %v7191_v41  ;;  %v13048_v27 = vand.u32 4294901760, %v13022_v37  ;;  %v13051_v41 = vand.u32 4294901760, %v13028_v35 }
0x180e   : > { %v10140_v55 = vpop.f32.mrf.mxu0  ;;  %v13049_v21 = vand.u32 4294901760, %v13024_v14 }
0x180f   : > { %v7349_v20 = vadd.f32 %v7348_v31, %v7274_v16  ;;  %v13038_v31 = vld [vmem:[#allocation40_spill] sm:$0xff]  ;;  %v13050_v55 = vand.u32 4294901760, %v13026_v60  ;;  %v13052_v16 = vand.u32 4294901760, %v13030_v9 }
0x1815   : > { %v7432_v18 = vpop.f32.mrf.mxu0 }
0x1816   : > { %v7680_v57 = vpop.f32.mrf.mxu1  ;;  %v7433_v2 = vadd.f32 %v7432_v18, %v7349_v20  ;;  %v13053_v18 = vand.u32 4294901760, %v13032_v4  ;;  %v13056_v20 = vand.u32 4294901760, %v13038_v31 }
0x1817   : > { %v10162_v23 = vpop.f32.mrf.mxu0 }
0x1818   : > { %v10195_v59 = vpop.f32.mrf.mxu1  ;;  %v7524_v43 = vadd.f32 %v7523_v45, %v7433_v2  ;;  %v13046_v45 = vand.u32 4294901760, %v13018_v3  ;;  %v13055_v23 = vand.u32 4294901760, %v13036_v0  ;;  %v13058_v2 = vand.u32 4294901760, %v13042_v7 }
0x1819   : > { %v13057_v59 = vand.u32 4294901760, %v13040_v61 }
0x181f   : > { %v7603_v53 = vpop.f32.mrf.mxu0 }
0x1820   : > { %v7838_v46 = vpop.f32.mrf.mxu1  ;;  %v7604_v29 = vadd.f32 %v7603_v53, %v7524_v43  ;;  %v13059_v53 = vand.u32 4294901760, %v13043_v52  ;;  %v13060_v43 = vand.u32 4294901760, %v13044_v32 }
0x1821   : > { %v10184_v44 = vpop.f32.mrf.mxu0 }
0x1822   : > { %v10217_v25 = vpop.f32.mrf.mxu1  ;;  %v7681_v10 = vadd.f32 %v7680_v57, %v7604_v29  ;;  %v13054_v57 = vand.u32 4294901760, %v13034_v47  ;;  %v12828_v44 = vld [vmem:[#allocation7 + $0x148] ss:$0 sm:$0xff] }
0x1827   : > { %v7763_v34 = vpop.f32.mrf.mxu0 }
0x1828   : > { %v7764_v1 = vadd.f32 %v7763_v34, %v7681_v10 }
0x1829   : > { %v10206_v26 = vpop.f32.mrf.mxu0 }
0x182a   : > { %v7839_v33 = vadd.f32 %v7838_v46, %v7764_v1  ;;  %v13061_v46 = vand.u32 4294901760, %v13045_v19 }
0x182c   : > { %v7846_v17 = vadd.f32 %v8670_v22, %v7839_v33 }
0x182e   : > { %v12667_v15 = vand.u32 4294901760, %v7846_v17 }
0x1830   : > { %v12670_v39 = vsub.f32 %v7846_v17, %v12667_v15  ;;  %10286 = vmatmul.mubr.f32.vlgmr.msra.gmra.mxu1 %v12667_v15 }
0x1831   : > { %10324 = vmatpush3.msra.mxu1 %v13013_v48  ;;  %10355 = vmatprep.mubr.msk.f32.mxu1 %vm10760_vm1, %v13014_v11 }
0x1832   : > { %v7934_v51 = vand.u32 4294901760, %v12670_v39  ;;  %10325 = vmatprep.subr.mxu1 %v13014_v11 }
0x1833   : > { %10326 = vmatpush3.msra.mxu1 %v13015_v42 }
0x1834   : > { %v7935_v13 = vsub.f32 %v12670_v39, %v7934_v51  ;;  %10327 = vmatprep.subr.mxu1 %v13014_v11 }
0x1835   : > { %10328 = vmatpush3.msra.mxu1 %v13016_v5 }
0x1836   : > { %v7936_v62 = vand.u32 4294901760, %v7935_v13  ;;  %10329 = vmatprep.subr.mxu1 %v13014_v11 }
0x1837   : > { %10330 = vmatpush3.msra.mxu1 %v13017_v50 }
0x1838   : > { %10331 = vmatprep.subr.mxu1 %v13014_v11  ;;  %10251 = vmatmul.mubr.f32.vlgmr.msra.gmra.mxu0 %v7936_v62 }
0x1839   : > { %10289 = vmatpush3.msra.mxu0 %v13018_v3  ;;  %10332 = vmatpush3.msra.mxu1 %v13019_v28 }
0x183a   : > { %10290 = vmatprep.subr.mxu0 %v13014_v11  ;;  %10333 = vmatprep.subr.mxu1 %v13014_v11 }
0x183b   : > { %10291 = vmatpush3.msra.mxu0 %v13020_v38  ;;  %10334 = vmatpush3.msra.mxu1 %v13021_v24 }
0x183c   : > { %10292 = vmatprep.subr.mxu0 %v13014_v11  ;;  %10335 = vmatprep.subr.mxu1 %v13014_v11 }
0x183d   : > { %10293 = vmatpush3.msra.mxu0 %v13022_v37  ;;  %10336 = vmatpush3.msra.mxu1 %v13023_v56 }
0x183e   : > { %10294 = vmatprep.subr.mxu0 %v13014_v11  ;;  %10337 = vmatprep.subr.mxu1 %v13014_v11 }
0x183f   : > { %10295 = vmatpush3.msra.mxu0 %v13024_v14  ;;  %10338 = vmatpush3.msra.mxu1 %v13025_v36 }
0x1840   : > { %10296 = vmatprep.subr.mxu0 %v13014_v11  ;;  %10339 = vmatprep.subr.mxu1 %v13014_v11 }
0x1841   : > { %10297 = vmatpush3.msra.mxu0 %v13026_v60  ;;  %10340 = vmatpush3.msra.mxu1 %v13027_v54 }
0x1842   : > { %10298 = vmatprep.subr.mxu0 %v13014_v11  ;;  %10341 = vmatprep.subr.mxu1 %v13014_v11 }
0x1843   : > { %10299 = vmatpush3.msra.mxu0 %v13028_v35  ;;  %10342 = vmatpush3.msra.mxu1 %v13029_v6 }
0x1844   : > { %10300 = vmatprep.subr.mxu0 %v13014_v11  ;;  %10343 = vmatprep.subr.mxu1 %v13014_v11 }
0x1845   : > { %10301 = vmatpush3.msra.mxu0 %v13030_v9  ;;  %10344 = vmatpush3.msra.mxu1 %v13031_v30 }
0x1846   : > { %10302 = vmatprep.subr.mxu0 %v13014_v11  ;;  %10345 = vmatprep.subr.mxu1 %v13014_v11 }
0x1847   : > { %10303 = vmatpush3.msra.mxu0 %v13032_v4  ;;  %10346 = vmatpush3.msra.mxu1 %v13033_v40 }
0x1848   : > { %10304 = vmatprep.subr.mxu0 %v13014_v11  ;;  %10347 = vmatprep.subr.mxu1 %v13014_v11 }
0x1849   : > { %10305 = vmatpush3.msra.mxu0 %v13034_v47  ;;  %10348 = vmatpush3.msra.mxu1 %v13035_v58 }
0x184a   : > { %10306 = vmatprep.subr.mxu0 %v13014_v11  ;;  %10349 = vmatprep.subr.mxu1 %v13014_v11 }
0x184b   : > { %10307 = vmatpush3.msra.mxu0 %v13036_v0  ;;  %10350 = vmatpush3.msra.mxu1 %v13037_v63 }
0x184c   : > { %10308 = vmatprep.subr.mxu0 %v13014_v11  ;;  %10351 = vmatprep.subr.mxu1 %v13014_v11 }
0x184d   : > { %10309 = vmatpush3.msra.mxu0 %v13038_v31  ;;  %10352 = vmatpush3.msra.mxu1 %v13039_v12  ;;  %v8671_v31 = vld [vmem:[#allocation7 + $0x146] ss:$0 sm:$0xff] }
0x184e   : > { %10310 = vmatprep.subr.mxu0 %v13014_v11  ;;  %10353 = vmatprep.subr.mxu1 %v13014_v11 }
0x184f   : > { %10311 = vmatpush3.msra.mxu0 %v13040_v61  ;;  %10354 = vmatpush3.msra.mxu1 %v13041_v49 }
0x1850   : > { %10312 = vmatprep.subr.mxu0 %v13014_v11  ;;  %10356 = vmatmul.mubr.f32.vlgmr.msra.gmra.mxu1 %v7934_v51 }
0x1851   : > { %10393 = vmatprep.subr.mxu1 %v13014_v11  ;;  %10313 = vmatpush3.msra.mxu0 %v13042_v7 }
0x1852   : > { %10394 = vmatpush3.msra.mxu1 %v13013_v48  ;;  %10314 = vmatprep.subr.mxu0 %v13014_v11 }
0x1853   : > { %10395 = vmatprep.subr.mxu1 %v13014_v11  ;;  %10315 = vmatpush3.msra.mxu0 %v13043_v52 }
0x1854   : > { %10396 = vmatpush3.msra.mxu1 %v13015_v42  ;;  %10316 = vmatprep.subr.mxu0 %v13014_v11 }
0x1855   : > { %10397 = vmatprep.subr.mxu1 %v13014_v11  ;;  %10317 = vmatpush3.msra.mxu0 %v13044_v32 }
0x1856   : > { %10398 = vmatpush3.msra.mxu1 %v13016_v5  ;;  %10318 = vmatprep.subr.mxu0 %v13014_v11 }
0x1857   : > { %10399 = vmatprep.subr.mxu1 %v13014_v11  ;;  %10319 = vmatpush3.msra.mxu0 %v13045_v19 }
0x1858   : > { %10320 = vmatprep.mubr.msk.f32.mxu0 %vm10760_vm1, %v13014_v11  ;;  %10400 = vmatpush3.msra.mxu1 %v13017_v50 }
0x1859   : > { %10321 = vmatmul.mubr.f32.vlgmr.msra.gmra.mxu0 %v12670_v39  ;;  %10358 = vmatprep.subr.mxu0 %v13014_v11 }
0x185a   : > { %10401 = vmatprep.subr.mxu1 %v13014_v11  ;;  %10359 = vmatpush3.msra.mxu0 %v13046_v45 }
0x185b   : > { %10402 = vmatpush3.msra.mxu1 %v13019_v28  ;;  %10360 = vmatprep.subr.mxu0 %v13014_v11 }
0x185c   : > { %10403 = vmatprep.subr.mxu1 %v13014_v11  ;;  %10361 = vmatpush3.msra.mxu0 %v13047_v8 }
0x185d   : > { %10404 = vmatpush3.msra.mxu1 %v13021_v24  ;;  %10362 = vmatprep.subr.mxu0 %v13014_v11 }
0x185e   : > { %10405 = vmatprep.subr.mxu1 %v13014_v11  ;;  %10363 = vmatpush3.msra.mxu0 %v13048_v27  ;;  %v8672_v27 = vld [vmem:[#allocation7 + $0x147] ss:$0 sm:$0xff] }
0x185f   : > { %10406 = vmatpush3.msra.mxu1 %v13023_v56  ;;  %10364 = vmatprep.subr.mxu0 %v13014_v11 }
0x1860   : > { %10407 = vmatprep.subr.mxu1 %v13014_v11  ;;  %10365 = vmatpush3.msra.mxu0 %v13049_v21 }
0x1861   : > { %10408 = vmatpush3.msra.mxu1 %v13025_v36  ;;  %10366 = vmatprep.subr.mxu0 %v13014_v11 }
0x1862   : > { %10409 = vmatprep.subr.mxu1 %v13014_v11  ;;  %10367 = vmatpush3.msra.mxu0 %v13050_v55 }
0x1863   : > { %10410 = vmatpush3.msra.mxu1 %v13027_v54  ;;  %10368 = vmatprep.subr.mxu0 %v13014_v11 }
0x1864   : > { %10411 = vmatprep.subr.mxu1 %v13014_v11  ;;  %10369 = vmatpush3.msra.mxu0 %v13051_v41 }
0x1865   : > { %10412 = vmatpush3.msra.mxu1 %v13029_v6  ;;  %10370 = vmatprep.subr.mxu0 %v13014_v11 }
0x1866   : > { %10413 = vmatprep.subr.mxu1 %v13014_v11  ;;  %10371 = vmatpush3.msra.mxu0 %v13052_v16 }
0x1867   : > { %10414 = vmatpush3.msra.mxu1 %v13031_v30  ;;  %10372 = vmatprep.subr.mxu0 %v13014_v11 }
0x1868   : > { %10415 = vmatprep.subr.mxu1 %v13014_v11  ;;  %10373 = vmatpush3.msra.mxu0 %v13053_v18 }
0x1869   : > { %10416 = vmatpush3.msra.mxu1 %v13033_v40  ;;  %10374 = vmatprep.subr.mxu0 %v13014_v11 }
0x186a   : > { %10417 = vmatprep.subr.mxu1 %v13014_v11  ;;  %10375 = vmatpush3.msra.mxu0 %v13054_v57 }
0x186b   : > { %10418 = vmatpush3.msra.mxu1 %v13035_v58  ;;  %10376 = vmatprep.subr.mxu0 %v13014_v11 }
0x186c   : > { %10419 = vmatprep.subr.mxu1 %v13014_v11  ;;  %10377 = vmatpush3.msra.mxu0 %v13055_v23 }
0x186d   : > { %10420 = vmatpush3.msra.mxu1 %v13037_v63  ;;  %10378 = vmatprep.subr.mxu0 %v13014_v11 }
0x186e   : > { %10421 = vmatprep.subr.mxu1 %v13014_v11  ;;  %10379 = vmatpush3.msra.mxu0 %v13056_v20 }
0x186f   : > { %10422 = vmatpush3.msra.mxu1 %v13039_v12  ;;  %10380 = vmatprep.subr.mxu0 %v13014_v11 }
0x1870   : > { %10423 = vmatprep.subr.mxu1 %v13014_v11  ;;  %10381 = vmatpush3.msra.mxu0 %v13057_v59 }
0x1871   : > { %10424 = vmatpush3.msra.mxu1 %v13041_v49  ;;  %10425 = vmatprep.mubr.msk.f32.mxu1 %vm10760_vm1, %v13014_v11 }
0x1872   : > { %10382 = vmatprep.subr.mxu0 %v13014_v11  ;;  %10426 = vmatmul.mubr.f32.vlgmr.msra.gmra.mxu1 %v12667_v15 }
0x1873   : > { %10383 = vmatpush3.msra.mxu0 %v13058_v2  ;;  %10390 = vmatprep.mubr.msk.f32.mxu0 %vm10760_vm1, %v13014_v11  ;;  %vm6853_vm1 = vcmask 56320  }
0x1874   : > { %10384 = vmatprep.subr.mxu0 %v13014_v11 }
0x1875   : > { %10385 = vmatpush3.msra.mxu0 %v13059_v53 }
0x1876   : > { %10386 = vmatprep.subr.mxu0 %v13014_v11 }
0x1877   : > { %10387 = vmatpush3.msra.mxu0 %v13060_v43 }
0x1878   : > { %10388 = vmatprep.subr.mxu0 %v13014_v11 }
0x1879   : > { %10389 = vmatpush3.msra.mxu0 %v13061_v46 }
0x187a   : > { %10391 = vmatmul.mubr.f32.vlgmr.msra.gmra.mxu0 %v12667_v15 }
0x1881   : > { %v6782_v29 = vpop.xlane.xlu0 %6781  ;;  %v6785_v25 = vpop.xlane.xlu1 %6784 }
0x1882   : > { %v6806_v10 = vadd.f32 %v12828_v44, %v6782_v29  ;;  %v6807_v34 = vadd.f32 %v12828_v44, %v6785_v25 }
0x1884   : > { %6814 = vrot.lane.b32.xlu1 %v6806_v10, %s10762_s19  ;;  %6818 = vrot.lane.b32.xlu0 %v6807_v34, %s10763_s25 }
0x1885   : > { %v6788_v1 = vpop.xlane.xlu0 %6787  ;;  %v6794_v22 = vpop.xlane.xlu1 %6793 }
0x1886   : > { %v6808_v26 = vadd.f32 %v12828_v44, %v6788_v1  ;;  %v6810_v33 = vadd.f32 %v12828_v44, %v6794_v22  ;;  %v13062_v22 = vld [vmem:[#allocation18_spill] sm:$0xff] }
0x1888   : > { %6822 = vrot.lane.b32.xlu1 %v6808_v26, %s10764_s21  ;;  %6830 = vrot.lane.b32.xlu0 %v6810_v33, %s10765_s22 }
0x1889   : > { %v6791_v17 = vpop.xlane.xlu0 %6790  ;;  %v6800_v15 = vpop.xlane.xlu1 %6799 }
0x188a   : > { %v6809_v39 = vadd.f32 %v12828_v44, %v6791_v17  ;;  %v6812_v48 = vadd.f32 %v12828_v44, %v6800_v15 }
0x188c   : > { %6826 = vrot.lane.b32.xlu1 %v6809_v39, %s10766_s14  ;;  %6838 = vrot.lane.b32.xlu0 %v6812_v48, %s10767_s15 }
0x188d   : > { %v6797_v11 = vpop.xlane.xlu0 %6796 }
0x188e   : > { %v6811_v51 = vadd.f32 %v12828_v44, %v6797_v11 }
0x1890   : > { %6834 = vrot.lane.b32.xlu1 %v6811_v51, %s10768_s18 }
0x1891   : > { %v6779_v5 = vpop.xlane.xlu0 %6778 }
0x1892   : > { %v6805_v3 = vadd.f32 %v12828_v44, %v6779_v5 }
0x18f0   : > { %v8089_v42 = vpop.f32.mrf.mxu1 }
0x18f2   : > { %v10287_v13 = vpop.f32.mrf.mxu1 }
0x18f6   : > { %v6815_v62 = vpop.permute.xlu1 %6814  ;;  %v6819_v50 = vpop.permute.xlu0 %6818 }
0x18f7   : > { %v6842_v24 = vsel %vm6841_vm10, %v6805_v3, %v6815_v62 }
0x18f8   : > { %v7938_v28 = vpop.f32.mrf.mxu0  ;;  %v6844_v56 = vsel %vm6843_vm11, %v6842_v24, %v6819_v50 }
0x18f9   : > { %v7939_v12 = vadd.f32 %v8671_v31, %v7938_v28 }
0x18fa   : > { %v10252_v38 = vpop.f32.mrf.mxu0  ;;  %v6823_v37 = vpop.permute.xlu1 %6822 }
0x18fb   : > { %v6831_v14 = vpop.permute.xlu0 %6830  ;;  %v6846_v36 = vsel %vm6845_vm12, %v6844_v56, %v6823_v37  ;;  %v8090_v49 = vadd.f32 %v8089_v42, %v7939_v12 }
0x18fe   : > { %v6827_v60 = vpop.permute.xlu1 %6826 }
0x18ff   : > { %v6848_v54 = vsel %vm6847_vm13, %v6846_v36, %v6827_v60  ;;  %v6839_v9 = vpop.permute.xlu0 %6838 }
0x1900   : > { %v6850_v6 = vsel %vm6849_vm14, %v6848_v54, %v6831_v14 }
0x1902   : > { %v6835_v35 = vpop.permute.xlu1 %6834 }
0x1903   : > { %v6852_v30 = vsel %vm6851_vm15, %v6850_v6, %v6835_v35 }
0x1904   : > { %v6854_v4 = vsel %vm6853_vm1, %v6852_v30, %v6839_v9 }
0x1905   : > { %v6856_v40 = vsel %vm6855_vm2, %v6854_v4, -inf }
0x1906   : > { %6857 = vmax.xlane.f32.xlu1 %v6856_v40 }
0x1910   : > { %v8282_v47 = vpop.f32.mrf.mxu1 }
0x1912   : > { %v10357_v58 = vpop.f32.mrf.mxu1 }
0x1919   : > { %v8193_v0 = vpop.f32.mrf.mxu0 }
0x191a   : > { %v8194_v52 = vadd.f32 %v8193_v0, %v8090_v49 }
0x191b   : > { %v10322_v63 = vpop.f32.mrf.mxu0 }
0x191c   : > { %v8283_v32 = vadd.f32 %v8282_v47, %v8194_v52 }
0x1932   : > { %v8488_v61 = vpop.f32.mrf.mxu1 }
0x1934   : > { %v10427_v7 = vpop.f32.mrf.mxu1 }
0x193a   : > { %v8401_v19 = vpop.f32.mrf.mxu0 }
0x193b   : > { %v8402_v45 = vadd.f32 %v8401_v19, %v8283_v32 }
0x193c   : > { %v10392_v8 = vpop.f32.mrf.mxu0 }
0x193d   : > { %v8489_v21 = vadd.f32 %v8488_v61, %v8402_v45 }
0x193f   : > { %v8496_v55 = vmul.f32 %v8672_v27, %v8489_v21 }
0x1941   : > { %v8498_v41 = vsel %vm8497_vm3, %v8496_v55, 0.0 }
0x1942   : > { %8499 = vadd.xlane.f32.xlu0 %v8498_v41 }
0x198f   : > { %v6858_v16 = vpop.xlane.xlu1 %6857 }
0x1990   : > { %v6859_v18 = vsub.f32 %v6854_v4, %v6858_v16 }
0x1992   : > { %v6860_v57 = vmul.f32 1.442695, %v6859_v18 }
0x1994   : > { %10564 = vpow2.f32 %v6860_v57 }
0x19a1   : > { %v10565_v23 = vpop.eup %10564 }
0x19a2   : > { %v6862_v20 = vsel %vm6855_vm2, %v10565_v23, 0.0 }
0x19a3   : > { %6863 = vadd.xlane.f32.xlu0 %v6862_v20 }
0x19cb   : > { %v8500_v59 = vpop.xlane.xlu0 %8499 }
0x19cc   : > { %v8501_v2 = vadd.f32 %v12828_v44, %v8500_v59 }
0x19ce   : > { %v8673_v53 = vmul.f32 -1.442695, %v8501_v2 }
0x19d0   : > { %10566 = vpow2.f32 %v8673_v53 }
0x19dd   : > { %v10567_v43 = vpop.eup %10566 }
0x19de   : > { %v8505_v46 = vadd.f32 1.0, %v10567_v43 }
0x19e0   : > { %10568 = vrcp.f32 %v8505_v46 }
0x19ed   : > { %v10569_v29 = vpop.eup %10568 }
0x19ee   : > { %8513 = vrot.lane.b32.xlu0 %v10569_v29, %s10769_s29 }
0x1a2c   : > { %v6864_v25 = vpop.xlane.xlu0 %6863 }
0x1a2d   : > { %10570 = vrcp.f32 %v6864_v25 }
0x1a3a   : > { %v10571_v10 = vpop.eup %10570 }
0x1a3b   : > { %v6866_v34 = vmul.f32 %v10571_v10, %v10565_v23 }
0x1a3d   : > { %8509 = vrot.lane.b32.xlu1 %v6866_v34, %s10770_s1 }
0x1a60   : > { %v8514_v1 = vpop.permute.xlu0 %8513 }
0x1aaf   : > { %v8510_v44 = vpop.permute.xlu1 %8509 }
0x1ab0   : > { %v8516_v26 = vsel %vm438_vm0, %v13062_v22, %v8510_v44 }
0x1ab1   : > { %v8518_v33 = vsel %vm8517_vm4, %v8516_v26, %v8514_v1 }
0x1ab2   : > { %v8520_v17 = vsel %vm8519_vm5, %v8518_v33, 0.0 }
0x1ab3   : > { %8521 = vst [vmem:[%s270_s26] sm:$0xff] %v8520_v17 }
0x1ab4 PF: > { %p28_p0 = scmp.ge.s32.totalorder %s10834_s10, 4   ;;  %s13063_s1 = smov %s10739_s30 }
0x1ab5   : > { %s13064_s30 = smov %s10743_s7  ;;  %s13065_s7 = smov %s10844_s13 }
0x1ab6   : > { %s13066_s8 = smov %s10834_s10  ;;  %30 = sbr.rel (!%p28_p0) target bundleno = 31 (0x1f), region = 112 }
0x1abb   :  { %8541 = vsyncpa [#allocation8], 1 }
0x1abc   :  { %8543 = vsyncpa [#allocation8 + $0x1], 1 }
0x1abd   :  { %8544 = vsyncpa [#allocation10], 1 }
0x1abe   :  { %8545 = vsyncpa [#allocation13], 1 }
0x1abf   :  { %8547 = vsyncpa [#allocation13 + $0x1], 1 }

</bundles_post_ra>
